<compile_context>
chip_gen: v6e
topology: v6e:2x2x1
jax: 0.10.0
libtpu: 0.0.40
codegen_flags: <defaults>
</compile_context>

<pallas_src>
import jax
import jax.numpy as jnp
import numpy as np
from jax import lax
from jax.experimental import pallas as pl
from jax.experimental.pallas import tpu as pltpu

EPS = 1e-5
LANE = 128


def _round_up(x, m):
  return (x + m - 1) // m * m


def _pick_band_rows(H, W, Cp, budget_bytes=8 << 20):
  """Largest divisor TH of H whose per-band working set fits the VMEM budget,
  preferring >= 2 bands so the grid has something to pipeline / split."""
  pitch = _round_up(W + 2, 8)

  def fits(th):
    work = ((th + 2) * pitch * Cp * 4        # f32 staging scratch
            + th * pitch * Cp * 4            # f32 accumulator
            + 4 * th * W * Cp * 4 * 2)       # band in/out/res blocks, double buffered
    return work <= budget_bytes

  divisors = [d for d in range(1, H + 1) if H % d == 0]
  ok = [d for d in divisors if fits(d)]
  if not ok:
    return 1
  multi = [d for d in ok if H // d >= 2]
  return max(multi) if multi else max(ok)


# ---------------------------------------------------------------------------
# Kernels
# ---------------------------------------------------------------------------
def _bn_relu_conv3x3(x_band_ref, x_top_ref, x_bot_ref, scale_ref, shift_ref,
                     w_ref, b_ref, ybuf_ref):
  """Fused BN-affine -> ReLU -> reflect-pad -> 3x3 conv (+bias) on one band.

  x_band_ref : (1, TH, W, Cp)  band of the unpadded activation
  x_top_ref  : (1, 1,  W, Cp)  halo row above the band (reflection resolved
                               at the DMA level via the index_map)
  x_bot_ref  : (1, 1,  W, Cp)  halo row below the band
  scale_ref  : (1, Cp)  folded BN scale      shift_ref: (1, Cp) folded shift
  w_ref      : (9, Cp, Cp) bf16 conv taps    b_ref    : (1, Cp) conv bias
  ybuf_ref   : ((TH+2)*pitch + 8, Cp) f32 VMEM staging buffer

  Returns the (TH, W, Cp) float32 conv result for this band.
  """
  _, TH, W, Cp = x_band_ref.shape
  pitch = _round_up(W + 2, 8)              # 8-aligned row pitch of the flat buffer

  scale = scale_ref[0]                     # (Cp,)
  shift = shift_ref[0]

  def bn_relu(v):                          # (rows, W, Cp) f32
    return jnp.maximum(v * scale + shift, 0.0)

  # Rows of the reflect-padded band: [top halo, band rows ..., bottom halo].
  y_rows = jnp.concatenate(
      [bn_relu(x_top_ref[0]), bn_relu(x_band_ref[0]), bn_relu(x_bot_ref[0])],
      axis=0)                              # (TH + 2, W, Cp)

  # Stage the padded band once into a flat, lane-dense VMEM buffer; the
  # 1-pixel column reflection is synthesized here (no HBM-padded copy).
  ybuf_ref[...] = jnp.zeros_like(ybuf_ref)
  for r in range(TH + 2):
    row = y_rows[r]                                            # (W, Cp)
    base = r * pitch
    ybuf_ref[pl.ds(base + 1, W), :] = row                      # interior cols
    ybuf_ref[pl.ds(base, 1), :] = row[1:2, :]                  # left reflect
    ybuf_ref[pl.ds(base + W + 1, 1), :] = row[W - 2:W - 1, :]  # right reflect

  # 3x3 conv = 9 shifted contiguous windows, one MXU matmul each
  # (bf16 operands, f32 accumulation).  Junk pitch columns are sliced off
  # once after the loop.
  acc = jnp.zeros((TH * pitch, Cp), jnp.float32)
  for k in range(9):
    dy, dx = divmod(k, 3)
    win = ybuf_ref[pl.ds(dy * pitch + dx, TH * pitch), :]
    acc = acc + jnp.dot(win.astype(jnp.bfloat16), w_ref[k],
                        preferred_element_type=jnp.float32)

  return acc.reshape(TH, pitch, Cp)[:, :W, :] + b_ref[0]


def _stage_stats_kernel(x_band_ref, x_top_ref, x_bot_ref, scale_ref, shift_ref,
                        w_ref, b_ref, out_ref, stats_ref, ybuf_ref):
  """Stage 1: no residual; also emits partial sum / sum-of-squares so the next
  BatchNorm's statistics need no extra HBM pass over h1."""
  h = _bn_relu_conv3x3(x_band_ref, x_top_ref, x_bot_ref, scale_ref, shift_ref,
                       w_ref, b_ref, ybuf_ref)
  out_ref[0] = h.astype(out_ref.dtype)
  psum = jnp.sum(h, axis=(0, 1))           # (Cp,)
  psq = jnp.sum(h * h, axis=(0, 1))        # (Cp,)
  stats_ref[0, 0, 0:1, :] = psum[None, :]
  stats_ref[0, 0, 1:2, :] = psq[None, :]


def _stage_residual_kernel(x_band_ref, x_top_ref, x_bot_ref, res_ref, scale_ref,
                           shift_ref, w_ref, b_ref, out_ref, ybuf_ref):
  """Stage 2: conv output + fused residual band."""
  h = _bn_relu_conv3x3(x_band_ref, x_top_ref, x_bot_ref, scale_ref, shift_ref,
                       w_ref, b_ref, ybuf_ref)
  out_ref[0] = (h + res_ref[0]).astype(out_ref.dtype)


# ---------------------------------------------------------------------------
# Stage wrapper (pallas_call plumbing)
# ---------------------------------------------------------------------------
def _fused_stage(x, scale, shift, w_taps, bias, *, residual, emit_stats):
  """One (BN -> ReLU -> reflect-pad -> conv3x3 -> +bias [-> +residual]) stage.

  x / residual : (N, H, W, Cp) f32     scale/shift/bias : (1, Cp) f32
  w_taps       : (9, Cp, Cp) bf16
  """
  N, H, W, Cp = x.shape
  TH = _pick_band_rows(H, W, Cp)
  n_bands = H // TH
  pitch = _round_up(W + 2, 8)
  rows_buf = (TH + 2) * pitch + 8          # slack so flat tap windows stay in-bounds

  band_map = lambda n, b: (n, b, 0, 0)
  # 1-pixel reflection halo rows, resolved at the DMA level.
  top_map = lambda n, b: (n, jnp.where(b == 0, 1, b * TH - 1), 0, 0)
  bot_map = lambda n, b: (n, jnp.where(b == n_bands - 1, H - 2, (b + 1) * TH), 0, 0)
  vec_map = lambda n, b: (0, 0)
  w_map = lambda n, b: (0, 0, 0)

  in_specs = [
      pl.BlockSpec((1, TH, W, Cp), band_map),
      pl.BlockSpec((1, 1, W, Cp), top_map),
      pl.BlockSpec((1, 1, W, Cp), bot_map),
  ]
  args = [x, x, x]
  if residual is not None:
    in_specs.append(pl.BlockSpec((1, TH, W, Cp), band_map))
    args.append(residual)
  in_specs += [
      pl.BlockSpec((1, Cp), vec_map),
      pl.BlockSpec((1, Cp), vec_map),
      pl.BlockSpec((9, Cp, Cp), w_map),
      pl.BlockSpec((1, Cp), vec_map),
  ]
  args += [scale, shift, w_taps, bias]

  out_block = pl.BlockSpec((1, TH, W, Cp), band_map)
  if emit_stats:
    out_shape = (jax.ShapeDtypeStruct((N, H, W, Cp), jnp.float32),
                 jax.ShapeDtypeStruct((N, n_bands, 2, Cp), jnp.float32))
    out_specs = (out_block, pl.BlockSpec((1, 1, 2, Cp), lambda n, b: (n, b, 0, 0)))
    kernel = _stage_stats_kernel
  else:
    out_shape = jax.ShapeDtypeStruct((N, H, W, Cp), jnp.float32)
    out_specs = out_block
    kernel = _stage_residual_kernel

  elems = N * H * W * Cp
  cost = pl.CostEstimate(
      flops=2 * 9 * elems * Cp,
      transcendentals=0,
      bytes_accessed=(4 * elems * (2 if residual is None else 3)   # x (+res), out
                      + 4 * elems * 2 // TH                        # halo rows
                      + 2 * 9 * Cp * Cp                            # bf16 weights
                      + (4 * N * n_bands * 2 * Cp if emit_stats else 0)))

  return pl.pallas_call(
      kernel,
      out_shape=out_shape,
      grid=(N, n_bands),
      in_specs=in_specs,
      out_specs=out_specs,
      scratch_shapes=[pltpu.VMEM((rows_buf, Cp), jnp.float32)],
      compiler_params=pltpu.CompilerParams(
          dimension_semantics=("parallel", "parallel"),
          vmem_limit_bytes=32 * 1024 * 1024),
      cost_estimate=cost,
  )(*args)


# ---------------------------------------------------------------------------
# Public forward
# ---------------------------------------------------------------------------
@jax.jit
def resblock_v2_forward(x_nchw, params):
  """x_nchw: (N, C, H, W) float32 -> (N, C, H, W) float32."""
  x = jnp.transpose(x_nchw, (0, 2, 3, 1)).astype(jnp.float32)     # NHWC
  N, H, W, C = x.shape
  Cp = _round_up(max(C, LANE), LANE)                              # lane-dense channels

  def pad_c(v):                          # zero-pad last (channel) dim to Cp
    return jnp.pad(v, [(0, 0)] * (v.ndim - 1) + [(0, Cp - C)])

  def prep_w(w):                         # (3,3,Cin,Cout) -> (9, Cp, Cp) bf16
    w = jnp.pad(w.reshape(9, C, C), ((0, 0), (0, Cp - C), (0, Cp - C)))
    return w.astype(jnp.bfloat16)

  x_p = pad_c(x)                                                   # (N, H, W, Cp)
  w1, b1 = prep_w(params["w1"]), pad_c(params["b1"])[None, :]
  w2, b2 = prep_w(params["w2"]), pad_c(params["b2"])[None, :]

  # BN1: biased batch statistics over (N, H, W), folded into scale/shift.
  mean1 = jnp.mean(x, axis=(0, 1, 2))
  var1 = jnp.var(x, axis=(0, 1, 2))
  s1 = params["g1"] / jnp.sqrt(var1 + EPS)
  scale1 = pad_c(s1)[None, :]
  shift1 = pad_c(params["be1"] - mean1 * s1)[None, :]

  # Stage 1: BN1 -> ReLU -> conv1 (+ fused partial stats for BN2, no residual).
  h1, stats = _fused_stage(x_p, scale1, shift1, w1, b1,
                           residual=None, emit_stats=True)

  # BN2 folded from the fused partial sums (no extra HBM pass over h1).
  cnt = float(N * H * W)
  mean2 = jnp.sum(stats[:, :, 0, :], axis=(0, 1)) / cnt
  var2 = jnp.maximum(jnp.sum(stats[:, :, 1, :], axis=(0, 1)) / cnt
                     - mean2 * mean2, 0.0)
  s2 = pad_c(params["g2"]) / jnp.sqrt(var2 + EPS)
  scale2 = s2[None, :]
  shift2 = (pad_c(params["be2"]) - mean2 * s2)[None, :]

  # Stage 2: BN2 -> ReLU -> conv2 -> + x (residual fused in the kernel).
  out_p = _fused_stage(h1, scale2, shift2, w2, b2,
                       residual=x_p, emit_stats=False)

  return jnp.transpose(out_p[..., :C], (0, 3, 1, 2))               # back to NCHW


# ---------------------------------------------------------------------------
# Parameters & pure-JAX reference
# ---------------------------------------------------------------------------
def init_params(key, ch):
  """Deterministic synthetic parameters. Conv weights stored as (3,3,Cin,Cout)."""
  k1, k2, k3, k4 = jax.random.split(key, 4)
  fan = ch * 9
  w1 = jax.random.normal(k1, (3, 3, ch, ch), jnp.float32) / np.sqrt(fan)
  b1 = jax.random.normal(k2, (ch,), jnp.float32) * 0.01
  w2 = jax.random.normal(k3, (3, 3, ch, ch), jnp.float32) / np.sqrt(fan)
  b2 = jax.random.normal(k4, (ch,), jnp.float32) * 0.01
  return dict(w1=w1, b1=b1, g1=jnp.ones((ch,), jnp.float32),
              be1=jnp.zeros((ch,), jnp.float32),
              w2=w2, b2=b2, g2=jnp.ones((ch,), jnp.float32),
              be2=jnp.zeros((ch,), jnp.float32))


def _reflect_pad_nhwc(x):
  return jnp.pad(x, ((0, 0), (1, 1), (1, 1), (0, 0)), mode="reflect")


def _fold_bn(x_nhwc, gamma, beta):
  mean = jnp.mean(x_nhwc, axis=(0, 1, 2))
  var = jnp.var(x_nhwc, axis=(0, 1, 2))            # biased, as in BN training
  scale = gamma / jnp.sqrt(var + EPS)
  shift = beta - mean * scale
  return scale, shift


def _reference_forward(x_nchw, params):
  """Pure-JAX f32 reference of the same forward (for verification)."""
  x = jnp.transpose(x_nchw, (0, 2, 3, 1)).astype(jnp.float32)
  dn = ("NHWC", "HWIO", "NHWC")

  def stage(inp, gamma, beta, w, b):
    s, sh = _fold_bn(inp, gamma, beta)
    y = jnp.maximum(inp * s + sh, 0.0)
    y = _reflect_pad_nhwc(y)
    y = lax.conv_general_dilated(y, w, (1, 1), "VALID", dimension_numbers=dn)
    return y + b

  h1 = stage(x, params["g1"], params["be1"], params["w1"], params["b1"])
  h2 = stage(h1, params["g2"], params["be2"], params["w2"], params["b2"])
  return jnp.transpose(x + h2, (0, 3, 1, 2))


if __name__ == "__main__":
  key = jax.random.PRNGKey(0)
  kx, kp = jax.random.split(key)

  N, C, H, W = 2, 4, 16, 16
  x = jax.random.normal(kx, (N, C, H, W), jnp.float32)
  params = init_params(kp, C)

  out = jax.block_until_ready(resblock_v2_forward(x, params))
  ref = jax.block_until_ready(_reference_forward(x, params))

  assert out.shape == (N, C, H, W)
  # Conv operands run on the MXU in bf16 -> loosened tolerance vs the f32 ref.
  np.testing.assert_allclose(np.asarray(out), np.asarray(ref),
                             rtol=5e-2, atol=5e-2)

  print("KERNEL_OK")
</pallas_src>

<mosaic_0001>
module attributes {stable_mosaic.version = 11 : i64} {
  func.func @_stage_residual_kernel(%arg0: i32, %arg1: i32, %arg2: memref<1x8x16x128xf32, #tpu.memory_space<vmem>>, %arg3: memref<1x1x16x128xf32, #tpu.memory_space<vmem>>, %arg4: memref<1x1x16x128xf32, #tpu.memory_space<vmem>>, %arg5: memref<1x8x16x128xf32, #tpu.memory_space<vmem>>, %arg6: memref<1x128xf32, #tpu.memory_space<vmem>>, %arg7: memref<1x128xf32, #tpu.memory_space<vmem>>, %arg8: memref<9x128x128xbf16, #tpu.memory_space<vmem>>, %arg9: memref<1x128xf32, #tpu.memory_space<vmem>>, %arg10: memref<1x8x16x128xf32, #tpu.memory_space<vmem>>, %arg11: memref<248x128xf32, #tpu.memory_space<vmem>>) attributes {dimension_semantics = [#tpu.dimension_semantics<parallel>, #tpu.dimension_semantics<parallel>], iteration_bounds = array<i64: 2, 2>, scalar_prefetch = 0 : i64, scratch_operands = 1 : i64, tpu.core_type = #tpu.core_type<tc>, window_params = [{transform_indices = @transform_0, window_bounds = array<i64: 1, 8, 16, 128>}, {transform_indices = @transform_1, window_bounds = array<i64: 1, 1, 16, 128>}, {transform_indices = @transform_2, window_bounds = array<i64: 1, 1, 16, 128>}, {transform_indices = @transform_3, window_bounds = array<i64: 1, 8, 16, 128>}, {pipeline_mode = #tpu.pipeline_mode<synchronous>, transform_indices = @transform_4, window_bounds = array<i64: 1, 128>}, {pipeline_mode = #tpu.pipeline_mode<synchronous>, transform_indices = @transform_5, window_bounds = array<i64: 1, 128>}, {pipeline_mode = #tpu.pipeline_mode<synchronous>, transform_indices = @transform_6, window_bounds = array<i64: 9, 128, 128>}, {pipeline_mode = #tpu.pipeline_mode<synchronous>, transform_indices = @transform_7, window_bounds = array<i64: 1, 128>}, {transform_indices = @transform_8, window_bounds = array<i64: 1, 8, 16, 128>}]} {
    %c0 = arith.constant 0 : index
    %c0_0 = arith.constant 0 : index
    %0 = vector.load %arg6[%c0, %c0_0] : memref<1x128xf32, #tpu.memory_space<vmem>>, vector<1x128xf32>
    %1 = vector.shape_cast %0 : vector<1x128xf32> to vector<128xf32>
    %c0_1 = arith.constant 0 : index
    %c0_2 = arith.constant 0 : index
    %2 = vector.load %arg7[%c0_1, %c0_2] : memref<1x128xf32, #tpu.memory_space<vmem>>, vector<1x128xf32>
    %3 = vector.shape_cast %2 : vector<1x128xf32> to vector<128xf32>
    %c0_3 = arith.constant 0 : index
    %c0_4 = arith.constant 0 : index
    %c0_5 = arith.constant 0 : index
    %c0_6 = arith.constant 0 : index
    %4 = vector.load %arg3[%c0_3, %c0_4, %c0_5, %c0_6] : memref<1x1x16x128xf32, #tpu.memory_space<vmem>>, vector<1x1x16x128xf32>
    %5 = vector.shape_cast %4 : vector<1x1x16x128xf32> to vector<1x16x128xf32>
    %6 = vector.shape_cast %1 : vector<128xf32> to vector<1x1x128xf32>
    %7 = vector.broadcast %6 : vector<1x1x128xf32> to vector<1x16x128xf32>
    %8 = arith.mulf %5, %7 : vector<1x16x128xf32>
    %9 = vector.shape_cast %3 : vector<128xf32> to vector<1x1x128xf32>
    %10 = vector.broadcast %9 : vector<1x1x128xf32> to vector<1x16x128xf32>
    %11 = arith.addf %8, %10 : vector<1x16x128xf32>
    %cst = arith.constant 0.000000e+00 : f32
    %12 = vector.broadcast %cst : f32 to vector<1x16x128xf32>
    %13 = arith.maximumf %11, %12 : vector<1x16x128xf32>
    %c0_7 = arith.constant 0 : index
    %c0_8 = arith.constant 0 : index
    %c0_9 = arith.constant 0 : index
    %c0_10 = arith.constant 0 : index
    %14 = vector.load %arg2[%c0_7, %c0_8, %c0_9, %c0_10] : memref<1x8x16x128xf32, #tpu.memory_space<vmem>>, vector<1x8x16x128xf32>
    %15 = vector.shape_cast %14 : vector<1x8x16x128xf32> to vector<8x16x128xf32>
    %16 = vector.shape_cast %1 : vector<128xf32> to vector<1x1x128xf32>
    %17 = vector.broadcast %16 : vector<1x1x128xf32> to vector<8x16x128xf32>
    %18 = arith.mulf %15, %17 : vector<8x16x128xf32>
    %19 = vector.shape_cast %3 : vector<128xf32> to vector<1x1x128xf32>
    %20 = vector.broadcast %19 : vector<1x1x128xf32> to vector<8x16x128xf32>
    %21 = arith.addf %18, %20 : vector<8x16x128xf32>
    %cst_11 = arith.constant 0.000000e+00 : f32
    %22 = vector.broadcast %cst_11 : f32 to vector<8x16x128xf32>
    %23 = arith.maximumf %21, %22 : vector<8x16x128xf32>
    %c0_12 = arith.constant 0 : index
    %c0_13 = arith.constant 0 : index
    %c0_14 = arith.constant 0 : index
    %c0_15 = arith.constant 0 : index
    %24 = vector.load %arg4[%c0_12, %c0_13, %c0_14, %c0_15] : memref<1x1x16x128xf32, #tpu.memory_space<vmem>>, vector<1x1x16x128xf32>
    %25 = vector.shape_cast %24 : vector<1x1x16x128xf32> to vector<1x16x128xf32>
    %26 = vector.shape_cast %1 : vector<128xf32> to vector<1x1x128xf32>
    %27 = vector.broadcast %26 : vector<1x1x128xf32> to vector<1x16x128xf32>
    %28 = arith.mulf %25, %27 : vector<1x16x128xf32>
    %29 = vector.shape_cast %3 : vector<128xf32> to vector<1x1x128xf32>
    %30 = vector.broadcast %29 : vector<1x1x128xf32> to vector<1x16x128xf32>
    %31 = arith.addf %28, %30 : vector<1x16x128xf32>
    %cst_16 = arith.constant 0.000000e+00 : f32
    %32 = vector.broadcast %cst_16 : f32 to vector<1x16x128xf32>
    %33 = arith.maximumf %31, %32 : vector<1x16x128xf32>
    %34 = tpu.concatenate %13, %23, %33 in 0 : vector<1x16x128xf32>, vector<8x16x128xf32>, vector<1x16x128xf32> -> vector<10x16x128xf32>
    %cst_17 = arith.constant 0.000000e+00 : f32
    %35 = vector.broadcast %cst_17 : f32 to vector<248x128xf32>
    %c0_18 = arith.constant 0 : index
    %c0_19 = arith.constant 0 : index
    %36 = vector.load %arg11[%c0_18, %c0_19] : memref<248x128xf32, #tpu.memory_space<vmem>>, vector<248x128xf32>
    tpu.vector_store %arg11[%c0_18, %c0_19], %35 {strides = array<i32>} : memref<248x128xf32, #tpu.memory_space<vmem>>, vector<248x128xf32>,
    %37 = vector.extract_strided_slice %34 {offsets = [0, 0, 0], sizes = [1, 16, 128], strides = [1, 1, 1]} : vector<10x16x128xf32> to vector<1x16x128xf32>
    %38 = vector.shape_cast %37 : vector<1x16x128xf32> to vector<16x128xf32>
    %c1 = arith.constant 1 : index
    %c0_20 = arith.constant 0 : index
    %39 = vector.load %arg11[%c1, %c0_20] : memref<248x128xf32, #tpu.memory_space<vmem>>, vector<16x128xf32>
    tpu.vector_store %arg11[%c1, %c0_20], %38 {strides = array<i32>} : memref<248x128xf32, #tpu.memory_space<vmem>>, vector<16x128xf32>,
    %40 = vector.extract_strided_slice %38 {offsets = [1, 0], sizes = [1, 128], strides = [1, 1]} : vector<16x128xf32> to vector<1x128xf32>
    %c0_21 = arith.constant 0 : index
    %c0_22 = arith.constant 0 : index
    %41 = vector.load %arg11[%c0_21, %c0_22] : memref<248x128xf32, #tpu.memory_space<vmem>>, vector<1x128xf32>
    tpu.vector_store %arg11[%c0_21, %c0_22], %40 {strides = array<i32>} : memref<248x128xf32, #tpu.memory_space<vmem>>, vector<1x128xf32>,
    %42 = vector.extract_strided_slice %38 {offsets = [14, 0], sizes = [1, 128], strides = [1, 1]} : vector<16x128xf32> to vector<1x128xf32>
    %c17 = arith.constant 17 : index
    %c0_23 = arith.constant 0 : index
    %43 = vector.load %arg11[%c17, %c0_23] : memref<248x128xf32, #tpu.memory_space<vmem>>, vector<1x128xf32>
    tpu.vector_store %arg11[%c17, %c0_23], %42 {strides = array<i32>} : memref<248x128xf32, #tpu.memory_space<vmem>>, vector<1x128xf32>,
    %44 = vector.extract_strided_slice %34 {offsets = [1, 0, 0], sizes = [1, 16, 128], strides = [1, 1, 1]} : vector<10x16x128xf32> to vector<1x16x128xf32>
    %45 = vector.shape_cast %44 : vector<1x16x128xf32> to vector<16x128xf32>
    %c25 = arith.constant 25 : index
    %c0_24 = arith.constant 0 : index
    %46 = vector.load %arg11[%c25, %c0_24] : memref<248x128xf32, #tpu.memory_space<vmem>>, vector<16x128xf32>
    tpu.vector_store %arg11[%c25, %c0_24], %45 {strides = array<i32>} : memref<248x128xf32, #tpu.memory_space<vmem>>, vector<16x128xf32>,
    %47 = vector.extract_strided_slice %45 {offsets = [1, 0], sizes = [1, 128], strides = [1, 1]} : vector<16x128xf32> to vector<1x128xf32>
    %c24 = arith.constant 24 : index
    %c0_25 = arith.constant 0 : index
    %48 = vector.load %arg11[%c24, %c0_25] : memref<248x128xf32, #tpu.memory_space<vmem>>, vector<1x128xf32>
    tpu.vector_store %arg11[%c24, %c0_25], %47 {strides = array<i32>} : memref<248x128xf32, #tpu.memory_space<vmem>>, vector<1x128xf32>,
    %49 = vector.extract_strided_slice %45 {offsets = [14, 0], sizes = [1, 128], strides = [1, 1]} : vector<16x128xf32> to vector<1x128xf32>
    %c41 = arith.constant 41 : index
    %c0_26 = arith.constant 0 : index
    %50 = vector.load %arg11[%c41, %c0_26] : memref<248x128xf32, #tpu.memory_space<vmem>>, vector<1x128xf32>
    tpu.vector_store %arg11[%c41, %c0_26], %49 {strides = array<i32>} : memref<248x128xf32, #tpu.memory_space<vmem>>, vector<1x128xf32>,
    %51 = vector.extract_strided_slice %34 {offsets = [2, 0, 0], sizes = [1, 16, 128], strides = [1, 1, 1]} : vector<10x16x128xf32> to vector<1x16x128xf32>
    %52 = vector.shape_cast %51 : vector<1x16x128xf32> to vector<16x128xf32>
    %c49 = arith.constant 49 : index
    %c0_27 = arith.constant 0 : index
    %53 = vector.load %arg11[%c49, %c0_27] : memref<248x128xf32, #tpu.memory_space<vmem>>, vector<16x128xf32>
    tpu.vector_store %arg11[%c49, %c0_27], %52 {strides = array<i32>} : memref<248x128xf32, #tpu.memory_space<vmem>>, vector<16x128xf32>,
    %54 = vector.extract_strided_slice %52 {offsets = [1, 0], sizes = [1, 128], strides = [1, 1]} : vector<16x128xf32> to vector<1x128xf32>
    %c48 = arith.constant 48 : index
    %c0_28 = arith.constant 0 : index
    %55 = vector.load %arg11[%c48, %c0_28] : memref<248x128xf32, #tpu.memory_space<vmem>>, vector<1x128xf32>
    tpu.vector_store %arg11[%c48, %c0_28], %54 {strides = array<i32>} : memref<248x128xf32, #tpu.memory_space<vmem>>, vector<1x128xf32>,
    %56 = vector.extract_strided_slice %52 {offsets = [14, 0], sizes = [1, 128], strides = [1, 1]} : vector<16x128xf32> to vector<1x128xf32>
    %c65 = arith.constant 65 : index
    %c0_29 = arith.constant 0 : index
    %57 = vector.load %arg11[%c65, %c0_29] : memref<248x128xf32, #tpu.memory_space<vmem>>, vector<1x128xf32>
    tpu.vector_store %arg11[%c65, %c0_29], %56 {strides = array<i32>} : memref<248x128xf32, #tpu.memory_space<vmem>>, vector<1x128xf32>,
    %58 = vector.extract_strided_slice %34 {offsets = [3, 0, 0], sizes = [1, 16, 128], strides = [1, 1, 1]} : vector<10x16x128xf32> to vector<1x16x128xf32>
    %59 = vector.shape_cast %58 : vector<1x16x128xf32> to vector<16x128xf32>
    %c73 = arith.constant 73 : index
    %c0_30 = arith.constant 0 : index
    %60 = vector.load %arg11[%c73, %c0_30] : memref<248x128xf32, #tpu.memory_space<vmem>>, vector<16x128xf32>
    tpu.vector_store %arg11[%c73, %c0_30], %59 {strides = array<i32>} : memref<248x128xf32, #tpu.memory_space<vmem>>, vector<16x128xf32>,
    %61 = vector.extract_strided_slice %59 {offsets = [1, 0], sizes = [1, 128], strides = [1, 1]} : vector<16x128xf32> to vector<1x128xf32>
    %c72 = arith.constant 72 : index
    %c0_31 = arith.constant 0 : index
    %62 = vector.load %arg11[%c72, %c0_31] : memref<248x128xf32, #tpu.memory_space<vmem>>, vector<1x128xf32>
    tpu.vector_store %arg11[%c72, %c0_31], %61 {strides = array<i32>} : memref<248x128xf32, #tpu.memory_space<vmem>>, vector<1x128xf32>,
    %63 = vector.extract_strided_slice %59 {offsets = [14, 0], sizes = [1, 128], strides = [1, 1]} : vector<16x128xf32> to vector<1x128xf32>
    %c89 = arith.constant 89 : index
    %c0_32 = arith.constant 0 : index
    %64 = vector.load %arg11[%c89, %c0_32] : memref<248x128xf32, #tpu.memory_space<vmem>>, vector<1x128xf32>
    tpu.vector_store %arg11[%c89, %c0_32], %63 {strides = array<i32>} : memref<248x128xf32, #tpu.memory_space<vmem>>, vector<1x128xf32>,
    %65 = vector.extract_strided_slice %34 {offsets = [4, 0, 0], sizes = [1, 16, 128], strides = [1, 1, 1]} : vector<10x16x128xf32> to vector<1x16x128xf32>
    %66 = vector.shape_cast %65 : vector<1x16x128xf32> to vector<16x128xf32>
    %c97 = arith.constant 97 : index
    %c0_33 = arith.constant 0 : index
    %67 = vector.load %arg11[%c97, %c0_33] : memref<248x128xf32, #tpu.memory_space<vmem>>, vector<16x128xf32>
    tpu.vector_store %arg11[%c97, %c0_33], %66 {strides = array<i32>} : memref<248x128xf32, #tpu.memory_space<vmem>>, vector<16x128xf32>,
    %68 = vector.extract_strided_slice %66 {offsets = [1, 0], sizes = [1, 128], strides = [1, 1]} : vector<16x128xf32> to vector<1x128xf32>
    %c96 = arith.constant 96 : index
    %c0_34 = arith.constant 0 : index
    %69 = vector.load %arg11[%c96, %c0_34] : memref<248x128xf32, #tpu.memory_space<vmem>>, vector<1x128xf32>
    tpu.vector_store %arg11[%c96, %c0_34], %68 {strides = array<i32>} : memref<248x128xf32, #tpu.memory_space<vmem>>, vector<1x128xf32>,
    %70 = vector.extract_strided_slice %66 {offsets = [14, 0], sizes = [1, 128], strides = [1, 1]} : vector<16x128xf32> to vector<1x128xf32>
    %c113 = arith.constant 113 : index
    %c0_35 = arith.constant 0 : index
    %71 = vector.load %arg11[%c113, %c0_35] : memref<248x128xf32, #tpu.memory_space<vmem>>, vector<1x128xf32>
    tpu.vector_store %arg11[%c113, %c0_35], %70 {strides = array<i32>} : memref<248x128xf32, #tpu.memory_space<vmem>>, vector<1x128xf32>,
    %72 = vector.extract_strided_slice %34 {offsets = [5, 0, 0], sizes = [1, 16, 128], strides = [1, 1, 1]} : vector<10x16x128xf32> to vector<1x16x128xf32>
    %73 = vector.shape_cast %72 : vector<1x16x128xf32> to vector<16x128xf32>
    %c121 = arith.constant 121 : index
    %c0_36 = arith.constant 0 : index
    %74 = vector.load %arg11[%c121, %c0_36] : memref<248x128xf32, #tpu.memory_space<vmem>>, vector<16x128xf32>
    tpu.vector_store %arg11[%c121, %c0_36], %73 {strides = array<i32>} : memref<248x128xf32, #tpu.memory_space<vmem>>, vector<16x128xf32>,
    %75 = vector.extract_strided_slice %73 {offsets = [1, 0], sizes = [1, 128], strides = [1, 1]} : vector<16x128xf32> to vector<1x128xf32>
    %c120 = arith.constant 120 : index
    %c0_37 = arith.constant 0 : index
    %76 = vector.load %arg11[%c120, %c0_37] : memref<248x128xf32, #tpu.memory_space<vmem>>, vector<1x128xf32>
    tpu.vector_store %arg11[%c120, %c0_37], %75 {strides = array<i32>} : memref<248x128xf32, #tpu.memory_space<vmem>>, vector<1x128xf32>,
    %77 = vector.extract_strided_slice %73 {offsets = [14, 0], sizes = [1, 128], strides = [1, 1]} : vector<16x128xf32> to vector<1x128xf32>
    %c137 = arith.constant 137 : index
    %c0_38 = arith.constant 0 : index
    %78 = vector.load %arg11[%c137, %c0_38] : memref<248x128xf32, #tpu.memory_space<vmem>>, vector<1x128xf32>
    tpu.vector_store %arg11[%c137, %c0_38], %77 {strides = array<i32>} : memref<248x128xf32, #tpu.memory_space<vmem>>, vector<1x128xf32>,
    %79 = vector.extract_strided_slice %34 {offsets = [6, 0, 0], sizes = [1, 16, 128], strides = [1, 1, 1]} : vector<10x16x128xf32> to vector<1x16x128xf32>
    %80 = vector.shape_cast %79 : vector<1x16x128xf32> to vector<16x128xf32>
    %c145 = arith.constant 145 : index
    %c0_39 = arith.constant 0 : index
    %81 = vector.load %arg11[%c145, %c0_39] : memref<248x128xf32, #tpu.memory_space<vmem>>, vector<16x128xf32>
    tpu.vector_store %arg11[%c145, %c0_39], %80 {strides = array<i32>} : memref<248x128xf32, #tpu.memory_space<vmem>>, vector<16x128xf32>,
    %82 = vector.extract_strided_slice %80 {offsets = [1, 0], sizes = [1, 128], strides = [1, 1]} : vector<16x128xf32> to vector<1x128xf32>
    %c144 = arith.constant 144 : index
    %c0_40 = arith.constant 0 : index
    %83 = vector.load %arg11[%c144, %c0_40] : memref<248x128xf32, #tpu.memory_space<vmem>>, vector<1x128xf32>
    tpu.vector_store %arg11[%c144, %c0_40], %82 {strides = array<i32>} : memref<248x128xf32, #tpu.memory_space<vmem>>, vector<1x128xf32>,
    %84 = vector.extract_strided_slice %80 {offsets = [14, 0], sizes = [1, 128], strides = [1, 1]} : vector<16x128xf32> to vector<1x128xf32>
    %c161 = arith.constant 161 : index
    %c0_41 = arith.constant 0 : index
    %85 = vector.load %arg11[%c161, %c0_41] : memref<248x128xf32, #tpu.memory_space<vmem>>, vector<1x128xf32>
    tpu.vector_store %arg11[%c161, %c0_41], %84 {strides = array<i32>} : memref<248x128xf32, #tpu.memory_space<vmem>>, vector<1x128xf32>,
    %86 = vector.extract_strided_slice %34 {offsets = [7, 0, 0], sizes = [1, 16, 128], strides = [1, 1, 1]} : vector<10x16x128xf32> to vector<1x16x128xf32>
    %87 = vector.shape_cast %86 : vector<1x16x128xf32> to vector<16x128xf32>
    %c169 = arith.constant 169 : index
    %c0_42 = arith.constant 0 : index
    %88 = vector.load %arg11[%c169, %c0_42] : memref<248x128xf32, #tpu.memory_space<vmem>>, vector<16x128xf32>
    tpu.vector_store %arg11[%c169, %c0_42], %87 {strides = array<i32>} : memref<248x128xf32, #tpu.memory_space<vmem>>, vector<16x128xf32>,
    %89 = vector.extract_strided_slice %87 {offsets = [1, 0], sizes = [1, 128], strides = [1, 1]} : vector<16x128xf32> to vector<1x128xf32>
    %c168 = arith.constant 168 : index
    %c0_43 = arith.constant 0 : index
    %90 = vector.load %arg11[%c168, %c0_43] : memref<248x128xf32, #tpu.memory_space<vmem>>, vector<1x128xf32>
    tpu.vector_store %arg11[%c168, %c0_43], %89 {strides = array<i32>} : memref<248x128xf32, #tpu.memory_space<vmem>>, vector<1x128xf32>,
    %91 = vector.extract_strided_slice %87 {offsets = [14, 0], sizes = [1, 128], strides = [1, 1]} : vector<16x128xf32> to vector<1x128xf32>
    %c185 = arith.constant 185 : index
    %c0_44 = arith.constant 0 : index
    %92 = vector.load %arg11[%c185, %c0_44] : memref<248x128xf32, #tpu.memory_space<vmem>>, vector<1x128xf32>
    tpu.vector_store %arg11[%c185, %c0_44], %91 {strides = array<i32>} : memref<248x128xf32, #tpu.memory_space<vmem>>, vector<1x128xf32>,
    %93 = vector.extract_strided_slice %34 {offsets = [8, 0, 0], sizes = [1, 16, 128], strides = [1, 1, 1]} : vector<10x16x128xf32> to vector<1x16x128xf32>
    %94 = vector.shape_cast %93 : vector<1x16x128xf32> to vector<16x128xf32>
    %c193 = arith.constant 193 : index
    %c0_45 = arith.constant 0 : index
    %95 = vector.load %arg11[%c193, %c0_45] : memref<248x128xf32, #tpu.memory_space<vmem>>, vector<16x128xf32>
    tpu.vector_store %arg11[%c193, %c0_45], %94 {strides = array<i32>} : memref<248x128xf32, #tpu.memory_space<vmem>>, vector<16x128xf32>,
    %96 = vector.extract_strided_slice %94 {offsets = [1, 0], sizes = [1, 128], strides = [1, 1]} : vector<16x128xf32> to vector<1x128xf32>
    %c192 = arith.constant 192 : index
    %c0_46 = arith.constant 0 : index
    %97 = vector.load %arg11[%c192, %c0_46] : memref<248x128xf32, #tpu.memory_space<vmem>>, vector<1x128xf32>
    tpu.vector_store %arg11[%c192, %c0_46], %96 {strides = array<i32>} : memref<248x128xf32, #tpu.memory_space<vmem>>, vector<1x128xf32>,
    %98 = vector.extract_strided_slice %94 {offsets = [14, 0], sizes = [1, 128], strides = [1, 1]} : vector<16x128xf32> to vector<1x128xf32>
    %c209 = arith.constant 209 : index
    %c0_47 = arith.constant 0 : index
    %99 = vector.load %arg11[%c209, %c0_47] : memref<248x128xf32, #tpu.memory_space<vmem>>, vector<1x128xf32>
    tpu.vector_store %arg11[%c209, %c0_47], %98 {strides = array<i32>} : memref<248x128xf32, #tpu.memory_space<vmem>>, vector<1x128xf32>,
    %100 = vector.extract_strided_slice %34 {offsets = [9, 0, 0], sizes = [1, 16, 128], strides = [1, 1, 1]} : vector<10x16x128xf32> to vector<1x16x128xf32>
    %101 = vector.shape_cast %100 : vector<1x16x128xf32> to vector<16x128xf32>
    %c217 = arith.constant 217 : index
    %c0_48 = arith.constant 0 : index
    %102 = vector.load %arg11[%c217, %c0_48] : memref<248x128xf32, #tpu.memory_space<vmem>>, vector<16x128xf32>
    tpu.vector_store %arg11[%c217, %c0_48], %101 {strides = array<i32>} : memref<248x128xf32, #tpu.memory_space<vmem>>, vector<16x128xf32>,
    %103 = vector.extract_strided_slice %101 {offsets = [1, 0], sizes = [1, 128], strides = [1, 1]} : vector<16x128xf32> to vector<1x128xf32>
    %c216 = arith.constant 216 : index
    %c0_49 = arith.constant 0 : index
    %104 = vector.load %arg11[%c216, %c0_49] : memref<248x128xf32, #tpu.memory_space<vmem>>, vector<1x128xf32>
    tpu.vector_store %arg11[%c216, %c0_49], %103 {strides = array<i32>} : memref<248x128xf32, #tpu.memory_space<vmem>>, vector<1x128xf32>,
    %105 = vector.extract_strided_slice %101 {offsets = [14, 0], sizes = [1, 128], strides = [1, 1]} : vector<16x128xf32> to vector<1x128xf32>
    %c233 = arith.constant 233 : index
    %c0_50 = arith.constant 0 : index
    %106 = vector.load %arg11[%c233, %c0_50] : memref<248x128xf32, #tpu.memory_space<vmem>>, vector<1x128xf32>
    tpu.vector_store %arg11[%c233, %c0_50], %105 {strides = array<i32>} : memref<248x128xf32, #tpu.memory_space<vmem>>, vector<1x128xf32>,
    %cst_51 = arith.constant 0.000000e+00 : f32
    %107 = vector.broadcast %cst_51 : f32 to vector<192x128xf32>
    %c0_52 = arith.constant 0 : index
    %c0_53 = arith.constant 0 : index
    %108 = vector.load %arg11[%c0_52, %c0_53] : memref<248x128xf32, #tpu.memory_space<vmem>>, vector<192x128xf32>
    %109 = arith.truncf %108 : vector<192x128xf32> to vector<192x128xbf16>
    %c0_54 = arith.constant 0 : index
    %c0_55 = arith.constant 0 : index
    %c0_56 = arith.constant 0 : index
    %110 = vector.load %arg8[%c0_54, %c0_55, %c0_56] : memref<9x128x128xbf16, #tpu.memory_space<vmem>>, vector<1x128x128xbf16>
    %111 = vector.shape_cast %110 : vector<1x128x128xbf16> to vector<128x128xbf16>
    %cst_57 = arith.constant dense<0.000000e+00> : vector<192x128xf32>
    %112 = tpu.matmul %109, %111, %cst_57 {dimension_numbers = #tpu.dot_dimension_numbers<[1], [0], [0], [1], [0, 0, 1, 1], [], []>} : vector<192x128xbf16>, vector<128x128xbf16>, vector<192x128xf32> -> vector<192x128xf32>
    %113 = arith.addf %107, %112 : vector<192x128xf32>
    %c1_58 = arith.constant 1 : index
    %c0_59 = arith.constant 0 : index
    %114 = vector.load %arg11[%c1_58, %c0_59] : memref<248x128xf32, #tpu.memory_space<vmem>>, vector<192x128xf32>
    %115 = arith.truncf %114 : vector<192x128xf32> to vector<192x128xbf16>
    %c1_60 = arith.constant 1 : index
    %c0_61 = arith.constant 0 : index
    %c0_62 = arith.constant 0 : index
    %116 = vector.load %arg8[%c1_60, %c0_61, %c0_62] : memref<9x128x128xbf16, #tpu.memory_space<vmem>>, vector<1x128x128xbf16>
    %117 = vector.shape_cast %116 : vector<1x128x128xbf16> to vector<128x128xbf16>
    %cst_63 = arith.constant dense<0.000000e+00> : vector<192x128xf32>
    %118 = tpu.matmul %115, %117, %cst_63 {dimension_numbers = #tpu.dot_dimension_numbers<[1], [0], [0], [1], [0, 0, 1, 1], [], []>} : vector<192x128xbf16>, vector<128x128xbf16>, vector<192x128xf32> -> vector<192x128xf32>
    %119 = arith.addf %113, %118 : vector<192x128xf32>
    %c2 = arith.constant 2 : index
    %c0_64 = arith.constant 0 : index
    %120 = vector.load %arg11[%c2, %c0_64] : memref<248x128xf32, #tpu.memory_space<vmem>>, vector<192x128xf32>
    %121 = arith.truncf %120 : vector<192x128xf32> to vector<192x128xbf16>
    %c2_65 = arith.constant 2 : index
    %c0_66 = arith.constant 0 : index
    %c0_67 = arith.constant 0 : index
    %122 = vector.load %arg8[%c2_65, %c0_66, %c0_67] : memref<9x128x128xbf16, #tpu.memory_space<vmem>>, vector<1x128x128xbf16>
    %123 = vector.shape_cast %122 : vector<1x128x128xbf16> to vector<128x128xbf16>
    %cst_68 = arith.constant dense<0.000000e+00> : vector<192x128xf32>
    %124 = tpu.matmul %121, %123, %cst_68 {dimension_numbers = #tpu.dot_dimension_numbers<[1], [0], [0], [1], [0, 0, 1, 1], [], []>} : vector<192x128xbf16>, vector<128x128xbf16>, vector<192x128xf32> -> vector<192x128xf32>
    %125 = arith.addf %119, %124 : vector<192x128xf32>
    %c24_69 = arith.constant 24 : index
    %c0_70 = arith.constant 0 : index
    %126 = vector.load %arg11[%c24_69, %c0_70] : memref<248x128xf32, #tpu.memory_space<vmem>>, vector<192x128xf32>
    %127 = arith.truncf %126 : vector<192x128xf32> to vector<192x128xbf16>
    %c3 = arith.constant 3 : index
    %c0_71 = arith.constant 0 : index
    %c0_72 = arith.constant 0 : index
    %128 = vector.load %arg8[%c3, %c0_71, %c0_72] : memref<9x128x128xbf16, #tpu.memory_space<vmem>>, vector<1x128x128xbf16>
    %129 = vector.shape_cast %128 : vector<1x128x128xbf16> to vector<128x128xbf16>
    %cst_73 = arith.constant dense<0.000000e+00> : vector<192x128xf32>
    %130 = tpu.matmul %127, %129, %cst_73 {dimension_numbers = #tpu.dot_dimension_numbers<[1], [0], [0], [1], [0, 0, 1, 1], [], []>} : vector<192x128xbf16>, vector<128x128xbf16>, vector<192x128xf32> -> vector<192x128xf32>
    %131 = arith.addf %125, %130 : vector<192x128xf32>
    %c25_74 = arith.constant 25 : index
    %c0_75 = arith.constant 0 : index
    %132 = vector.load %arg11[%c25_74, %c0_75] : memref<248x128xf32, #tpu.memory_space<vmem>>, vector<192x128xf32>
    %133 = arith.truncf %132 : vector<192x128xf32> to vector<192x128xbf16>
    %c4 = arith.constant 4 : index
    %c0_76 = arith.constant 0 : index
    %c0_77 = arith.constant 0 : index
    %134 = vector.load %arg8[%c4, %c0_76, %c0_77] : memref<9x128x128xbf16, #tpu.memory_space<vmem>>, vector<1x128x128xbf16>
    %135 = vector.shape_cast %134 : vector<1x128x128xbf16> to vector<128x128xbf16>
    %cst_78 = arith.constant dense<0.000000e+00> : vector<192x128xf32>
    %136 = tpu.matmul %133, %135, %cst_78 {dimension_numbers = #tpu.dot_dimension_numbers<[1], [0], [0], [1], [0, 0, 1, 1], [], []>} : vector<192x128xbf16>, vector<128x128xbf16>, vector<192x128xf32> -> vector<192x128xf32>
    %137 = arith.addf %131, %136 : vector<192x128xf32>
    %c26 = arith.constant 26 : index
    %c0_79 = arith.constant 0 : index
    %138 = vector.load %arg11[%c26, %c0_79] : memref<248x128xf32, #tpu.memory_space<vmem>>, vector<192x128xf32>
    %139 = arith.truncf %138 : vector<192x128xf32> to vector<192x128xbf16>
    %c5 = arith.constant 5 : index
    %c0_80 = arith.constant 0 : index
    %c0_81 = arith.constant 0 : index
    %140 = vector.load %arg8[%c5, %c0_80, %c0_81] : memref<9x128x128xbf16, #tpu.memory_space<vmem>>, vector<1x128x128xbf16>
    %141 = vector.shape_cast %140 : vector<1x128x128xbf16> to vector<128x128xbf16>
    %cst_82 = arith.constant dense<0.000000e+00> : vector<192x128xf32>
    %142 = tpu.matmul %139, %141, %cst_82 {dimension_numbers = #tpu.dot_dimension_numbers<[1], [0], [0], [1], [0, 0, 1, 1], [], []>} : vector<192x128xbf16>, vector<128x128xbf16>, vector<192x128xf32> -> vector<192x128xf32>
    %143 = arith.addf %137, %142 : vector<192x128xf32>
    %c48_83 = arith.constant 48 : index
    %c0_84 = arith.constant 0 : index
    %144 = vector.load %arg11[%c48_83, %c0_84] : memref<248x128xf32, #tpu.memory_space<vmem>>, vector<192x128xf32>
    %145 = arith.truncf %144 : vector<192x128xf32> to vector<192x128xbf16>
    %c6 = arith.constant 6 : index
    %c0_85 = arith.constant 0 : index
    %c0_86 = arith.constant 0 : index
    %146 = vector.load %arg8[%c6, %c0_85, %c0_86] : memref<9x128x128xbf16, #tpu.memory_space<vmem>>, vector<1x128x128xbf16>
    %147 = vector.shape_cast %146 : vector<1x128x128xbf16> to vector<128x128xbf16>
    %cst_87 = arith.constant dense<0.000000e+00> : vector<192x128xf32>
    %148 = tpu.matmul %145, %147, %cst_87 {dimension_numbers = #tpu.dot_dimension_numbers<[1], [0], [0], [1], [0, 0, 1, 1], [], []>} : vector<192x128xbf16>, vector<128x128xbf16>, vector<192x128xf32> -> vector<192x128xf32>
    %149 = arith.addf %143, %148 : vector<192x128xf32>
    %c49_88 = arith.constant 49 : index
    %c0_89 = arith.constant 0 : index
    %150 = vector.load %arg11[%c49_88, %c0_89] : memref<248x128xf32, #tpu.memory_space<vmem>>, vector<192x128xf32>
    %151 = arith.truncf %150 : vector<192x128xf32> to vector<192x128xbf16>
    %c7 = arith.constant 7 : index
    %c0_90 = arith.constant 0 : index
    %c0_91 = arith.constant 0 : index
    %152 = vector.load %arg8[%c7, %c0_90, %c0_91] : memref<9x128x128xbf16, #tpu.memory_space<vmem>>, vector<1x128x128xbf16>
    %153 = vector.shape_cast %152 : vector<1x128x128xbf16> to vector<128x128xbf16>
    %cst_92 = arith.constant dense<0.000000e+00> : vector<192x128xf32>
    %154 = tpu.matmul %151, %153, %cst_92 {dimension_numbers = #tpu.dot_dimension_numbers<[1], [0], [0], [1], [0, 0, 1, 1], [], []>} : vector<192x128xbf16>, vector<128x128xbf16>, vector<192x128xf32> -> vector<192x128xf32>
    %155 = arith.addf %149, %154 : vector<192x128xf32>
    %c50 = arith.constant 50 : index
    %c0_93 = arith.constant 0 : index
    %156 = vector.load %arg11[%c50, %c0_93] : memref<248x128xf32, #tpu.memory_space<vmem>>, vector<192x128xf32>
    %157 = arith.truncf %156 : vector<192x128xf32> to vector<192x128xbf16>
    %c8 = arith.constant 8 : index
    %c0_94 = arith.constant 0 : index
    %c0_95 = arith.constant 0 : index
    %158 = vector.load %arg8[%c8, %c0_94, %c0_95] : memref<9x128x128xbf16, #tpu.memory_space<vmem>>, vector<1x128x128xbf16>
    %159 = vector.shape_cast %158 : vector<1x128x128xbf16> to vector<128x128xbf16>
    %cst_96 = arith.constant dense<0.000000e+00> : vector<192x128xf32>
    %160 = tpu.matmul %157, %159, %cst_96 {dimension_numbers = #tpu.dot_dimension_numbers<[1], [0], [0], [1], [0, 0, 1, 1], [], []>} : vector<192x128xbf16>, vector<128x128xbf16>, vector<192x128xf32> -> vector<192x128xf32>
    %161 = arith.addf %155, %160 : vector<192x128xf32>
    %162 = vector.shape_cast %161 : vector<192x128xf32> to vector<8x24x128xf32>
    %163 = vector.extract_strided_slice %162 {offsets = [0, 0, 0], sizes = [8, 16, 128], strides = [1, 1, 1]} : vector<8x24x128xf32> to vector<8x16x128xf32>
    %c0_97 = arith.constant 0 : index
    %c0_98 = arith.constant 0 : index
    %164 = vector.load %arg9[%c0_97, %c0_98] : memref<1x128xf32, #tpu.memory_space<vmem>>, vector<1x128xf32>
    %165 = vector.shape_cast %164 : vector<1x128xf32> to vector<128xf32>
    %166 = vector.shape_cast %165 : vector<128xf32> to vector<1x1x128xf32>
    %167 = vector.broadcast %166 : vector<1x1x128xf32> to vector<8x16x128xf32>
    %168 = arith.addf %163, %167 : vector<8x16x128xf32>
    %c0_99 = arith.constant 0 : index
    %c0_100 = arith.constant 0 : index
    %c0_101 = arith.constant 0 : index
    %c0_102 = arith.constant 0 : index
    %169 = vector.load %arg5[%c0_99, %c0_100, %c0_101, %c0_102] : memref<1x8x16x128xf32, #tpu.memory_space<vmem>>, vector<1x8x16x128xf32>
    %170 = vector.shape_cast %169 : vector<1x8x16x128xf32> to vector<8x16x128xf32>
    %171 = arith.addf %168, %170 : vector<8x16x128xf32>
    %c0_103 = arith.constant 0 : index
    %c0_104 = arith.constant 0 : index
    %c0_105 = arith.constant 0 : index
    %c0_106 = arith.constant 0 : index
    %172 = vector.load %arg10[%c0_103, %c0_104, %c0_105, %c0_106] : memref<1x8x16x128xf32, #tpu.memory_space<vmem>>, vector<1x8x16x128xf32>
    %173 = vector.shape_cast %172 : vector<1x8x16x128xf32> to vector<8x16x128xf32>
    %174 = vector.shape_cast %171 : vector<8x16x128xf32> to vector<1x8x16x128xf32>
    tpu.vector_store %arg10[%c0_103, %c0_104, %c0_105, %c0_106], %174 {strides = array<i32>} : memref<1x8x16x128xf32, #tpu.memory_space<vmem>>, vector<1x8x16x128xf32>,
    return
  }
  func.func @transform_0(%arg0: i32, %arg1: i32) -> (i32, i32, i32, i32) {
    %c0_i32 = arith.constant 0 : i32
    %c0_i32_0 = arith.constant 0 : i32
    %c0_i32_1 = arith.constant 0 : i32
    return %arg0, %arg1, %c0_i32, %c0_i32_0 : i32, i32, i32, i32
  }
  func.func @transform_1(%arg0: i32, %arg1: i32) -> (i32, i32, i32, i32) {
    %c0_i32 = arith.constant 0 : i32
    %0 = arith.cmpi eq, %arg1, %c0_i32 : i32
    %c8_i32 = arith.constant 8 : i32
    %1 = arith.muli %arg1, %c8_i32 : i32
    %c1_i32 = arith.constant 1 : i32
    %2 = arith.subi %1, %c1_i32 : i32
    %c1_i32_0 = arith.constant 1 : i32
    %3 = arith.select %0, %c1_i32_0, %2 : i32
    %c0_i32_1 = arith.constant 0 : i32
    %c0_i32_2 = arith.constant 0 : i32
    %c0_i32_3 = arith.constant 0 : i32
    return %arg0, %3, %c0_i32_1, %c0_i32_2 : i32, i32, i32, i32
  }
  func.func @transform_2(%arg0: i32, %arg1: i32) -> (i32, i32, i32, i32) {
    %c1_i32 = arith.constant 1 : i32
    %0 = arith.cmpi eq, %arg1, %c1_i32 : i32
    %c1_i32_0 = arith.constant 1 : i32
    %1 = arith.addi %arg1, %c1_i32_0 : i32
    %c8_i32 = arith.constant 8 : i32
    %2 = arith.muli %1, %c8_i32 : i32
    %c14_i32 = arith.constant 14 : i32
    %3 = arith.select %0, %c14_i32, %2 : i32
    %c0_i32 = arith.constant 0 : i32
    %c0_i32_1 = arith.constant 0 : i32
    %c0_i32_2 = arith.constant 0 : i32
    return %arg0, %3, %c0_i32, %c0_i32_1 : i32, i32, i32, i32
  }
  func.func @transform_3(%arg0: i32, %arg1: i32) -> (i32, i32, i32, i32) {
    %c0_i32 = arith.constant 0 : i32
    %c0_i32_0 = arith.constant 0 : i32
    %c0_i32_1 = arith.constant 0 : i32
    return %arg0, %arg1, %c0_i32, %c0_i32_0 : i32, i32, i32, i32
  }
  func.func @transform_4(%arg0: i32, %arg1: i32) -> (i32, i32) {
    %c0_i32 = arith.constant 0 : i32
    %c0_i32_0 = arith.constant 0 : i32
    %c0_i32_1 = arith.constant 0 : i32
    return %c0_i32, %c0_i32_0 : i32, i32
  }
  func.func @transform_5(%arg0: i32, %arg1: i32) -> (i32, i32) {
    %c0_i32 = arith.constant 0 : i32
    %c0_i32_0 = arith.constant 0 : i32
    %c0_i32_1 = arith.constant 0 : i32
    return %c0_i32, %c0_i32_0 : i32, i32
  }
  func.func @transform_6(%arg0: i32, %arg1: i32) -> (i32, i32, i32) {
    %c0_i32 = arith.constant 0 : i32
    %c0_i32_0 = arith.constant 0 : i32
    %c0_i32_1 = arith.constant 0 : i32
    %c0_i32_2 = arith.constant 0 : i32
    return %c0_i32, %c0_i32_0, %c0_i32_1 : i32, i32, i32
  }
  func.func @transform_7(%arg0: i32, %arg1: i32) -> (i32, i32) {
    %c0_i32 = arith.constant 0 : i32
    %c0_i32_0 = arith.constant 0 : i32
    %c0_i32_1 = arith.constant 0 : i32
    return %c0_i32, %c0_i32_0 : i32, i32
  }
  func.func @transform_8(%arg0: i32, %arg1: i32) -> (i32, i32, i32, i32) {
    %c0_i32 = arith.constant 0 : i32
    %c0_i32_0 = arith.constant 0 : i32
    %c0_i32_1 = arith.constant 0 : i32
    return %arg0, %arg1, %c0_i32, %c0_i32_0 : i32, i32, i32, i32
  }
}

module attributes {stable_mosaic.version = 11 : i64} {
  func.func @_stage_stats_kernel(%arg0: i32, %arg1: i32, %arg2: memref<1x8x16x128xf32, #tpu.memory_space<vmem>>, %arg3: memref<1x1x16x128xf32, #tpu.memory_space<vmem>>, %arg4: memref<1x1x16x128xf32, #tpu.memory_space<vmem>>, %arg5: memref<1x128xf32, #tpu.memory_space<vmem>>, %arg6: memref<1x128xf32, #tpu.memory_space<vmem>>, %arg7: memref<9x128x128xbf16, #tpu.memory_space<vmem>>, %arg8: memref<1x128xf32, #tpu.memory_space<vmem>>, %arg9: memref<1x8x16x128xf32, #tpu.memory_space<vmem>>, %arg10: memref<1x1x2x128xf32, #tpu.memory_space<vmem>>, %arg11: memref<248x128xf32, #tpu.memory_space<vmem>>) attributes {dimension_semantics = [#tpu.dimension_semantics<parallel>, #tpu.dimension_semantics<parallel>], iteration_bounds = array<i64: 2, 2>, scalar_prefetch = 0 : i64, scratch_operands = 1 : i64, tpu.core_type = #tpu.core_type<tc>, window_params = [{transform_indices = @transform_0, window_bounds = array<i64: 1, 8, 16, 128>}, {transform_indices = @transform_1, window_bounds = array<i64: 1, 1, 16, 128>}, {transform_indices = @transform_2, window_bounds = array<i64: 1, 1, 16, 128>}, {pipeline_mode = #tpu.pipeline_mode<synchronous>, transform_indices = @transform_3, window_bounds = array<i64: 1, 128>}, {pipeline_mode = #tpu.pipeline_mode<synchronous>, transform_indices = @transform_4, window_bounds = array<i64: 1, 128>}, {pipeline_mode = #tpu.pipeline_mode<synchronous>, transform_indices = @transform_5, window_bounds = array<i64: 9, 128, 128>}, {pipeline_mode = #tpu.pipeline_mode<synchronous>, transform_indices = @transform_6, window_bounds = array<i64: 1, 128>}, {transform_indices = @transform_7, window_bounds = array<i64: 1, 8, 16, 128>}, {transform_indices = @transform_8, window_bounds = array<i64: 1, 1, 2, 128>}]} {
    %c0 = arith.constant 0 : index
    %c0_0 = arith.constant 0 : index
    %0 = vector.load %arg5[%c0, %c0_0] : memref<1x128xf32, #tpu.memory_space<vmem>>, vector<1x128xf32>
    %1 = vector.shape_cast %0 : vector<1x128xf32> to vector<128xf32>
    %c0_1 = arith.constant 0 : index
    %c0_2 = arith.constant 0 : index
    %2 = vector.load %arg6[%c0_1, %c0_2] : memref<1x128xf32, #tpu.memory_space<vmem>>, vector<1x128xf32>
    %3 = vector.shape_cast %2 : vector<1x128xf32> to vector<128xf32>
    %c0_3 = arith.constant 0 : index
    %c0_4 = arith.constant 0 : index
    %c0_5 = arith.constant 0 : index
    %c0_6 = arith.constant 0 : index
    %4 = vector.load %arg3[%c0_3, %c0_4, %c0_5, %c0_6] : memref<1x1x16x128xf32, #tpu.memory_space<vmem>>, vector<1x1x16x128xf32>
    %5 = vector.shape_cast %4 : vector<1x1x16x128xf32> to vector<1x16x128xf32>
    %6 = vector.shape_cast %1 : vector<128xf32> to vector<1x1x128xf32>
    %7 = vector.broadcast %6 : vector<1x1x128xf32> to vector<1x16x128xf32>
    %8 = arith.mulf %5, %7 : vector<1x16x128xf32>
    %9 = vector.shape_cast %3 : vector<128xf32> to vector<1x1x128xf32>
    %10 = vector.broadcast %9 : vector<1x1x128xf32> to vector<1x16x128xf32>
    %11 = arith.addf %8, %10 : vector<1x16x128xf32>
    %cst = arith.constant 0.000000e+00 : f32
    %12 = vector.broadcast %cst : f32 to vector<1x16x128xf32>
    %13 = arith.maximumf %11, %12 : vector<1x16x128xf32>
    %c0_7 = arith.constant 0 : index
    %c0_8 = arith.constant 0 : index
    %c0_9 = arith.constant 0 : index
    %c0_10 = arith.constant 0 : index
    %14 = vector.load %arg2[%c0_7, %c0_8, %c0_9, %c0_10] : memref<1x8x16x128xf32, #tpu.memory_space<vmem>>, vector<1x8x16x128xf32>
    %15 = vector.shape_cast %14 : vector<1x8x16x128xf32> to vector<8x16x128xf32>
    %16 = vector.shape_cast %1 : vector<128xf32> to vector<1x1x128xf32>
    %17 = vector.broadcast %16 : vector<1x1x128xf32> to vector<8x16x128xf32>
    %18 = arith.mulf %15, %17 : vector<8x16x128xf32>
    %19 = vector.shape_cast %3 : vector<128xf32> to vector<1x1x128xf32>
    %20 = vector.broadcast %19 : vector<1x1x128xf32> to vector<8x16x128xf32>
    %21 = arith.addf %18, %20 : vector<8x16x128xf32>
    %cst_11 = arith.constant 0.000000e+00 : f32
    %22 = vector.broadcast %cst_11 : f32 to vector<8x16x128xf32>
    %23 = arith.maximumf %21, %22 : vector<8x16x128xf32>
    %c0_12 = arith.constant 0 : index
    %c0_13 = arith.constant 0 : index
    %c0_14 = arith.constant 0 : index
    %c0_15 = arith.constant 0 : index
    %24 = vector.load %arg4[%c0_12, %c0_13, %c0_14, %c0_15] : memref<1x1x16x128xf32, #tpu.memory_space<vmem>>, vector<1x1x16x128xf32>
    %25 = vector.shape_cast %24 : vector<1x1x16x128xf32> to vector<1x16x128xf32>
    %26 = vector.shape_cast %1 : vector<128xf32> to vector<1x1x128xf32>
    %27 = vector.broadcast %26 : vector<1x1x128xf32> to vector<1x16x128xf32>
    %28 = arith.mulf %25, %27 : vector<1x16x128xf32>
    %29 = vector.shape_cast %3 : vector<128xf32> to vector<1x1x128xf32>
    %30 = vector.broadcast %29 : vector<1x1x128xf32> to vector<1x16x128xf32>
    %31 = arith.addf %28, %30 : vector<1x16x128xf32>
    %cst_16 = arith.constant 0.000000e+00 : f32
    %32 = vector.broadcast %cst_16 : f32 to vector<1x16x128xf32>
    %33 = arith.maximumf %31, %32 : vector<1x16x128xf32>
    %34 = tpu.concatenate %13, %23, %33 in 0 : vector<1x16x128xf32>, vector<8x16x128xf32>, vector<1x16x128xf32> -> vector<10x16x128xf32>
    %cst_17 = arith.constant 0.000000e+00 : f32
    %35 = vector.broadcast %cst_17 : f32 to vector<248x128xf32>
    %c0_18 = arith.constant 0 : index
    %c0_19 = arith.constant 0 : index
    %36 = vector.load %arg11[%c0_18, %c0_19] : memref<248x128xf32, #tpu.memory_space<vmem>>, vector<248x128xf32>
    tpu.vector_store %arg11[%c0_18, %c0_19], %35 {strides = array<i32>} : memref<248x128xf32, #tpu.memory_space<vmem>>, vector<248x128xf32>,
    %37 = vector.extract_strided_slice %34 {offsets = [0, 0, 0], sizes = [1, 16, 128], strides = [1, 1, 1]} : vector<10x16x128xf32> to vector<1x16x128xf32>
    %38 = vector.shape_cast %37 : vector<1x16x128xf32> to vector<16x128xf32>
    %c1 = arith.constant 1 : index
    %c0_20 = arith.constant 0 : index
    %39 = vector.load %arg11[%c1, %c0_20] : memref<248x128xf32, #tpu.memory_space<vmem>>, vector<16x128xf32>
    tpu.vector_store %arg11[%c1, %c0_20], %38 {strides = array<i32>} : memref<248x128xf32, #tpu.memory_space<vmem>>, vector<16x128xf32>,
    %40 = vector.extract_strided_slice %38 {offsets = [1, 0], sizes = [1, 128], strides = [1, 1]} : vector<16x128xf32> to vector<1x128xf32>
    %c0_21 = arith.constant 0 : index
    %c0_22 = arith.constant 0 : index
    %41 = vector.load %arg11[%c0_21, %c0_22] : memref<248x128xf32, #tpu.memory_space<vmem>>, vector<1x128xf32>
    tpu.vector_store %arg11[%c0_21, %c0_22], %40 {strides = array<i32>} : memref<248x128xf32, #tpu.memory_space<vmem>>, vector<1x128xf32>,
    %42 = vector.extract_strided_slice %38 {offsets = [14, 0], sizes = [1, 128], strides = [1, 1]} : vector<16x128xf32> to vector<1x128xf32>
    %c17 = arith.constant 17 : index
    %c0_23 = arith.constant 0 : index
    %43 = vector.load %arg11[%c17, %c0_23] : memref<248x128xf32, #tpu.memory_space<vmem>>, vector<1x128xf32>
    tpu.vector_store %arg11[%c17, %c0_23], %42 {strides = array<i32>} : memref<248x128xf32, #tpu.memory_space<vmem>>, vector<1x128xf32>,
    %44 = vector.extract_strided_slice %34 {offsets = [1, 0, 0], sizes = [1, 16, 128], strides = [1, 1, 1]} : vector<10x16x128xf32> to vector<1x16x128xf32>
    %45 = vector.shape_cast %44 : vector<1x16x128xf32> to vector<16x128xf32>
    %c25 = arith.constant 25 : index
    %c0_24 = arith.constant 0 : index
    %46 = vector.load %arg11[%c25, %c0_24] : memref<248x128xf32, #tpu.memory_space<vmem>>, vector<16x128xf32>
    tpu.vector_store %arg11[%c25, %c0_24], %45 {strides = array<i32>} : memref<248x128xf32, #tpu.memory_space<vmem>>, vector<16x128xf32>,
    %47 = vector.extract_strided_slice %45 {offsets = [1, 0], sizes = [1, 128], strides = [1, 1]} : vector<16x128xf32> to vector<1x128xf32>
    %c24 = arith.constant 24 : index
    %c0_25 = arith.constant 0 : index
    %48 = vector.load %arg11[%c24, %c0_25] : memref<248x128xf32, #tpu.memory_space<vmem>>, vector<1x128xf32>
    tpu.vector_store %arg11[%c24, %c0_25], %47 {strides = array<i32>} : memref<248x128xf32, #tpu.memory_space<vmem>>, vector<1x128xf32>,
    %49 = vector.extract_strided_slice %45 {offsets = [14, 0], sizes = [1, 128], strides = [1, 1]} : vector<16x128xf32> to vector<1x128xf32>
    %c41 = arith.constant 41 : index
    %c0_26 = arith.constant 0 : index
    %50 = vector.load %arg11[%c41, %c0_26] : memref<248x128xf32, #tpu.memory_space<vmem>>, vector<1x128xf32>
    tpu.vector_store %arg11[%c41, %c0_26], %49 {strides = array<i32>} : memref<248x128xf32, #tpu.memory_space<vmem>>, vector<1x128xf32>,
    %51 = vector.extract_strided_slice %34 {offsets = [2, 0, 0], sizes = [1, 16, 128], strides = [1, 1, 1]} : vector<10x16x128xf32> to vector<1x16x128xf32>
    %52 = vector.shape_cast %51 : vector<1x16x128xf32> to vector<16x128xf32>
    %c49 = arith.constant 49 : index
    %c0_27 = arith.constant 0 : index
    %53 = vector.load %arg11[%c49, %c0_27] : memref<248x128xf32, #tpu.memory_space<vmem>>, vector<16x128xf32>
    tpu.vector_store %arg11[%c49, %c0_27], %52 {strides = array<i32>} : memref<248x128xf32, #tpu.memory_space<vmem>>, vector<16x128xf32>,
    %54 = vector.extract_strided_slice %52 {offsets = [1, 0], sizes = [1, 128], strides = [1, 1]} : vector<16x128xf32> to vector<1x128xf32>
    %c48 = arith.constant 48 : index
    %c0_28 = arith.constant 0 : index
    %55 = vector.load %arg11[%c48, %c0_28] : memref<248x128xf32, #tpu.memory_space<vmem>>, vector<1x128xf32>
    tpu.vector_store %arg11[%c48, %c0_28], %54 {strides = array<i32>} : memref<248x128xf32, #tpu.memory_space<vmem>>, vector<1x128xf32>,
    %56 = vector.extract_strided_slice %52 {offsets = [14, 0], sizes = [1, 128], strides = [1, 1]} : vector<16x128xf32> to vector<1x128xf32>
    %c65 = arith.constant 65 : index
    %c0_29 = arith.constant 0 : index
    %57 = vector.load %arg11[%c65, %c0_29] : memref<248x128xf32, #tpu.memory_space<vmem>>, vector<1x128xf32>
    tpu.vector_store %arg11[%c65, %c0_29], %56 {strides = array<i32>} : memref<248x128xf32, #tpu.memory_space<vmem>>, vector<1x128xf32>,
    %58 = vector.extract_strided_slice %34 {offsets = [3, 0, 0], sizes = [1, 16, 128], strides = [1, 1, 1]} : vector<10x16x128xf32> to vector<1x16x128xf32>
    %59 = vector.shape_cast %58 : vector<1x16x128xf32> to vector<16x128xf32>
    %c73 = arith.constant 73 : index
    %c0_30 = arith.constant 0 : index
    %60 = vector.load %arg11[%c73, %c0_30] : memref<248x128xf32, #tpu.memory_space<vmem>>, vector<16x128xf32>
    tpu.vector_store %arg11[%c73, %c0_30], %59 {strides = array<i32>} : memref<248x128xf32, #tpu.memory_space<vmem>>, vector<16x128xf32>,
    %61 = vector.extract_strided_slice %59 {offsets = [1, 0], sizes = [1, 128], strides = [1, 1]} : vector<16x128xf32> to vector<1x128xf32>
    %c72 = arith.constant 72 : index
    %c0_31 = arith.constant 0 : index
    %62 = vector.load %arg11[%c72, %c0_31] : memref<248x128xf32, #tpu.memory_space<vmem>>, vector<1x128xf32>
    tpu.vector_store %arg11[%c72, %c0_31], %61 {strides = array<i32>} : memref<248x128xf32, #tpu.memory_space<vmem>>, vector<1x128xf32>,
    %63 = vector.extract_strided_slice %59 {offsets = [14, 0], sizes = [1, 128], strides = [1, 1]} : vector<16x128xf32> to vector<1x128xf32>
    %c89 = arith.constant 89 : index
    %c0_32 = arith.constant 0 : index
    %64 = vector.load %arg11[%c89, %c0_32] : memref<248x128xf32, #tpu.memory_space<vmem>>, vector<1x128xf32>
    tpu.vector_store %arg11[%c89, %c0_32], %63 {strides = array<i32>} : memref<248x128xf32, #tpu.memory_space<vmem>>, vector<1x128xf32>,
    %65 = vector.extract_strided_slice %34 {offsets = [4, 0, 0], sizes = [1, 16, 128], strides = [1, 1, 1]} : vector<10x16x128xf32> to vector<1x16x128xf32>
    %66 = vector.shape_cast %65 : vector<1x16x128xf32> to vector<16x128xf32>
    %c97 = arith.constant 97 : index
    %c0_33 = arith.constant 0 : index
    %67 = vector.load %arg11[%c97, %c0_33] : memref<248x128xf32, #tpu.memory_space<vmem>>, vector<16x128xf32>
    tpu.vector_store %arg11[%c97, %c0_33], %66 {strides = array<i32>} : memref<248x128xf32, #tpu.memory_space<vmem>>, vector<16x128xf32>,
    %68 = vector.extract_strided_slice %66 {offsets = [1, 0], sizes = [1, 128], strides = [1, 1]} : vector<16x128xf32> to vector<1x128xf32>
    %c96 = arith.constant 96 : index
    %c0_34 = arith.constant 0 : index
    %69 = vector.load %arg11[%c96, %c0_34] : memref<248x128xf32, #tpu.memory_space<vmem>>, vector<1x128xf32>
    tpu.vector_store %arg11[%c96, %c0_34], %68 {strides = array<i32>} : memref<248x128xf32, #tpu.memory_space<vmem>>, vector<1x128xf32>,
    %70 = vector.extract_strided_slice %66 {offsets = [14, 0], sizes = [1, 128], strides = [1, 1]} : vector<16x128xf32> to vector<1x128xf32>
    %c113 = arith.constant 113 : index
    %c0_35 = arith.constant 0 : index
    %71 = vector.load %arg11[%c113, %c0_35] : memref<248x128xf32, #tpu.memory_space<vmem>>, vector<1x128xf32>
    tpu.vector_store %arg11[%c113, %c0_35], %70 {strides = array<i32>} : memref<248x128xf32, #tpu.memory_space<vmem>>, vector<1x128xf32>,
    %72 = vector.extract_strided_slice %34 {offsets = [5, 0, 0], sizes = [1, 16, 128], strides = [1, 1, 1]} : vector<10x16x128xf32> to vector<1x16x128xf32>
    %73 = vector.shape_cast %72 : vector<1x16x128xf32> to vector<16x128xf32>
    %c121 = arith.constant 121 : index
    %c0_36 = arith.constant 0 : index
    %74 = vector.load %arg11[%c121, %c0_36] : memref<248x128xf32, #tpu.memory_space<vmem>>, vector<16x128xf32>
    tpu.vector_store %arg11[%c121, %c0_36], %73 {strides = array<i32>} : memref<248x128xf32, #tpu.memory_space<vmem>>, vector<16x128xf32>,
    %75 = vector.extract_strided_slice %73 {offsets = [1, 0], sizes = [1, 128], strides = [1, 1]} : vector<16x128xf32> to vector<1x128xf32>
    %c120 = arith.constant 120 : index
    %c0_37 = arith.constant 0 : index
    %76 = vector.load %arg11[%c120, %c0_37] : memref<248x128xf32, #tpu.memory_space<vmem>>, vector<1x128xf32>
    tpu.vector_store %arg11[%c120, %c0_37], %75 {strides = array<i32>} : memref<248x128xf32, #tpu.memory_space<vmem>>, vector<1x128xf32>,
    %77 = vector.extract_strided_slice %73 {offsets = [14, 0], sizes = [1, 128], strides = [1, 1]} : vector<16x128xf32> to vector<1x128xf32>
    %c137 = arith.constant 137 : index
    %c0_38 = arith.constant 0 : index
    %78 = vector.load %arg11[%c137, %c0_38] : memref<248x128xf32, #tpu.memory_space<vmem>>, vector<1x128xf32>
    tpu.vector_store %arg11[%c137, %c0_38], %77 {strides = array<i32>} : memref<248x128xf32, #tpu.memory_space<vmem>>, vector<1x128xf32>,
    %79 = vector.extract_strided_slice %34 {offsets = [6, 0, 0], sizes = [1, 16, 128], strides = [1, 1, 1]} : vector<10x16x128xf32> to vector<1x16x128xf32>
    %80 = vector.shape_cast %79 : vector<1x16x128xf32> to vector<16x128xf32>
    %c145 = arith.constant 145 : index
    %c0_39 = arith.constant 0 : index
    %81 = vector.load %arg11[%c145, %c0_39] : memref<248x128xf32, #tpu.memory_space<vmem>>, vector<16x128xf32>
    tpu.vector_store %arg11[%c145, %c0_39], %80 {strides = array<i32>} : memref<248x128xf32, #tpu.memory_space<vmem>>, vector<16x128xf32>,
    %82 = vector.extract_strided_slice %80 {offsets = [1, 0], sizes = [1, 128], strides = [1, 1]} : vector<16x128xf32> to vector<1x128xf32>
    %c144 = arith.constant 144 : index
    %c0_40 = arith.constant 0 : index
    %83 = vector.load %arg11[%c144, %c0_40] : memref<248x128xf32, #tpu.memory_space<vmem>>, vector<1x128xf32>
    tpu.vector_store %arg11[%c144, %c0_40], %82 {strides = array<i32>} : memref<248x128xf32, #tpu.memory_space<vmem>>, vector<1x128xf32>,
    %84 = vector.extract_strided_slice %80 {offsets = [14, 0], sizes = [1, 128], strides = [1, 1]} : vector<16x128xf32> to vector<1x128xf32>
    %c161 = arith.constant 161 : index
    %c0_41 = arith.constant 0 : index
    %85 = vector.load %arg11[%c161, %c0_41] : memref<248x128xf32, #tpu.memory_space<vmem>>, vector<1x128xf32>
    tpu.vector_store %arg11[%c161, %c0_41], %84 {strides = array<i32>} : memref<248x128xf32, #tpu.memory_space<vmem>>, vector<1x128xf32>,
    %86 = vector.extract_strided_slice %34 {offsets = [7, 0, 0], sizes = [1, 16, 128], strides = [1, 1, 1]} : vector<10x16x128xf32> to vector<1x16x128xf32>
    %87 = vector.shape_cast %86 : vector<1x16x128xf32> to vector<16x128xf32>
    %c169 = arith.constant 169 : index
    %c0_42 = arith.constant 0 : index
    %88 = vector.load %arg11[%c169, %c0_42] : memref<248x128xf32, #tpu.memory_space<vmem>>, vector<16x128xf32>
    tpu.vector_store %arg11[%c169, %c0_42], %87 {strides = array<i32>} : memref<248x128xf32, #tpu.memory_space<vmem>>, vector<16x128xf32>,
    %89 = vector.extract_strided_slice %87 {offsets = [1, 0], sizes = [1, 128], strides = [1, 1]} : vector<16x128xf32> to vector<1x128xf32>
    %c168 = arith.constant 168 : index
    %c0_43 = arith.constant 0 : index
    %90 = vector.load %arg11[%c168, %c0_43] : memref<248x128xf32, #tpu.memory_space<vmem>>, vector<1x128xf32>
    tpu.vector_store %arg11[%c168, %c0_43], %89 {strides = array<i32>} : memref<248x128xf32, #tpu.memory_space<vmem>>, vector<1x128xf32>,
    %91 = vector.extract_strided_slice %87 {offsets = [14, 0], sizes = [1, 128], strides = [1, 1]} : vector<16x128xf32> to vector<1x128xf32>
    %c185 = arith.constant 185 : index
    %c0_44 = arith.constant 0 : index
    %92 = vector.load %arg11[%c185, %c0_44] : memref<248x128xf32, #tpu.memory_space<vmem>>, vector<1x128xf32>
    tpu.vector_store %arg11[%c185, %c0_44], %91 {strides = array<i32>} : memref<248x128xf32, #tpu.memory_space<vmem>>, vector<1x128xf32>,
    %93 = vector.extract_strided_slice %34 {offsets = [8, 0, 0], sizes = [1, 16, 128], strides = [1, 1, 1]} : vector<10x16x128xf32> to vector<1x16x128xf32>
    %94 = vector.shape_cast %93 : vector<1x16x128xf32> to vector<16x128xf32>
    %c193 = arith.constant 193 : index
    %c0_45 = arith.constant 0 : index
    %95 = vector.load %arg11[%c193, %c0_45] : memref<248x128xf32, #tpu.memory_space<vmem>>, vector<16x128xf32>
    tpu.vector_store %arg11[%c193, %c0_45], %94 {strides = array<i32>} : memref<248x128xf32, #tpu.memory_space<vmem>>, vector<16x128xf32>,
    %96 = vector.extract_strided_slice %94 {offsets = [1, 0], sizes = [1, 128], strides = [1, 1]} : vector<16x128xf32> to vector<1x128xf32>
    %c192 = arith.constant 192 : index
    %c0_46 = arith.constant 0 : index
    %97 = vector.load %arg11[%c192, %c0_46] : memref<248x128xf32, #tpu.memory_space<vmem>>, vector<1x128xf32>
    tpu.vector_store %arg11[%c192, %c0_46], %96 {strides = array<i32>} : memref<248x128xf32, #tpu.memory_space<vmem>>, vector<1x128xf32>,
    %98 = vector.extract_strided_slice %94 {offsets = [14, 0], sizes = [1, 128], strides = [1, 1]} : vector<16x128xf32> to vector<1x128xf32>
    %c209 = arith.constant 209 : index
    %c0_47 = arith.constant 0 : index
    %99 = vector.load %arg11[%c209, %c0_47] : memref<248x128xf32, #tpu.memory_space<vmem>>, vector<1x128xf32>
    tpu.vector_store %arg11[%c209, %c0_47], %98 {strides = array<i32>} : memref<248x128xf32, #tpu.memory_space<vmem>>, vector<1x128xf32>,
    %100 = vector.extract_strided_slice %34 {offsets = [9, 0, 0], sizes = [1, 16, 128], strides = [1, 1, 1]} : vector<10x16x128xf32> to vector<1x16x128xf32>
    %101 = vector.shape_cast %100 : vector<1x16x128xf32> to vector<16x128xf32>
    %c217 = arith.constant 217 : index
    %c0_48 = arith.constant 0 : index
    %102 = vector.load %arg11[%c217, %c0_48] : memref<248x128xf32, #tpu.memory_space<vmem>>, vector<16x128xf32>
    tpu.vector_store %arg11[%c217, %c0_48], %101 {strides = array<i32>} : memref<248x128xf32, #tpu.memory_space<vmem>>, vector<16x128xf32>,
    %103 = vector.extract_strided_slice %101 {offsets = [1, 0], sizes = [1, 128], strides = [1, 1]} : vector<16x128xf32> to vector<1x128xf32>
    %c216 = arith.constant 216 : index
    %c0_49 = arith.constant 0 : index
    %104 = vector.load %arg11[%c216, %c0_49] : memref<248x128xf32, #tpu.memory_space<vmem>>, vector<1x128xf32>
    tpu.vector_store %arg11[%c216, %c0_49], %103 {strides = array<i32>} : memref<248x128xf32, #tpu.memory_space<vmem>>, vector<1x128xf32>,
    %105 = vector.extract_strided_slice %101 {offsets = [14, 0], sizes = [1, 128], strides = [1, 1]} : vector<16x128xf32> to vector<1x128xf32>
    %c233 = arith.constant 233 : index
    %c0_50 = arith.constant 0 : index
    %106 = vector.load %arg11[%c233, %c0_50] : memref<248x128xf32, #tpu.memory_space<vmem>>, vector<1x128xf32>
    tpu.vector_store %arg11[%c233, %c0_50], %105 {strides = array<i32>} : memref<248x128xf32, #tpu.memory_space<vmem>>, vector<1x128xf32>,
    %cst_51 = arith.constant 0.000000e+00 : f32
    %107 = vector.broadcast %cst_51 : f32 to vector<192x128xf32>
    %c0_52 = arith.constant 0 : index
    %c0_53 = arith.constant 0 : index
    %108 = vector.load %arg11[%c0_52, %c0_53] : memref<248x128xf32, #tpu.memory_space<vmem>>, vector<192x128xf32>
    %109 = arith.truncf %108 : vector<192x128xf32> to vector<192x128xbf16>
    %c0_54 = arith.constant 0 : index
    %c0_55 = arith.constant 0 : index
    %c0_56 = arith.constant 0 : index
    %110 = vector.load %arg7[%c0_54, %c0_55, %c0_56] : memref<9x128x128xbf16, #tpu.memory_space<vmem>>, vector<1x128x128xbf16>
    %111 = vector.shape_cast %110 : vector<1x128x128xbf16> to vector<128x128xbf16>
    %cst_57 = arith.constant dense<0.000000e+00> : vector<192x128xf32>
    %112 = tpu.matmul %109, %111, %cst_57 {dimension_numbers = #tpu.dot_dimension_numbers<[1], [0], [0], [1], [0, 0, 1, 1], [], []>} : vector<192x128xbf16>, vector<128x128xbf16>, vector<192x128xf32> -> vector<192x128xf32>
    %113 = arith.addf %107, %112 : vector<192x128xf32>
    %c1_58 = arith.constant 1 : index
    %c0_59 = arith.constant 0 : index
    %114 = vector.load %arg11[%c1_58, %c0_59] : memref<248x128xf32, #tpu.memory_space<vmem>>, vector<192x128xf32>
    %115 = arith.truncf %114 : vector<192x128xf32> to vector<192x128xbf16>
    %c1_60 = arith.constant 1 : index
    %c0_61 = arith.constant 0 : index
    %c0_62 = arith.constant 0 : index
    %116 = vector.load %arg7[%c1_60, %c0_61, %c0_62] : memref<9x128x128xbf16, #tpu.memory_space<vmem>>, vector<1x128x128xbf16>
    %117 = vector.shape_cast %116 : vector<1x128x128xbf16> to vector<128x128xbf16>
    %cst_63 = arith.constant dense<0.000000e+00> : vector<192x128xf32>
    %118 = tpu.matmul %115, %117, %cst_63 {dimension_numbers = #tpu.dot_dimension_numbers<[1], [0], [0], [1], [0, 0, 1, 1], [], []>} : vector<192x128xbf16>, vector<128x128xbf16>, vector<192x128xf32> -> vector<192x128xf32>
    %119 = arith.addf %113, %118 : vector<192x128xf32>
    %c2 = arith.constant 2 : index
    %c0_64 = arith.constant 0 : index
    %120 = vector.load %arg11[%c2, %c0_64] : memref<248x128xf32, #tpu.memory_space<vmem>>, vector<192x128xf32>
    %121 = arith.truncf %120 : vector<192x128xf32> to vector<192x128xbf16>
    %c2_65 = arith.constant 2 : index
    %c0_66 = arith.constant 0 : index
    %c0_67 = arith.constant 0 : index
    %122 = vector.load %arg7[%c2_65, %c0_66, %c0_67] : memref<9x128x128xbf16, #tpu.memory_space<vmem>>, vector<1x128x128xbf16>
    %123 = vector.shape_cast %122 : vector<1x128x128xbf16> to vector<128x128xbf16>
    %cst_68 = arith.constant dense<0.000000e+00> : vector<192x128xf32>
    %124 = tpu.matmul %121, %123, %cst_68 {dimension_numbers = #tpu.dot_dimension_numbers<[1], [0], [0], [1], [0, 0, 1, 1], [], []>} : vector<192x128xbf16>, vector<128x128xbf16>, vector<192x128xf32> -> vector<192x128xf32>
    %125 = arith.addf %119, %124 : vector<192x128xf32>
    %c24_69 = arith.constant 24 : index
    %c0_70 = arith.constant 0 : index
    %126 = vector.load %arg11[%c24_69, %c0_70] : memref<248x128xf32, #tpu.memory_space<vmem>>, vector<192x128xf32>
    %127 = arith.truncf %126 : vector<192x128xf32> to vector<192x128xbf16>
    %c3 = arith.constant 3 : index
    %c0_71 = arith.constant 0 : index
    %c0_72 = arith.constant 0 : index
    %128 = vector.load %arg7[%c3, %c0_71, %c0_72] : memref<9x128x128xbf16, #tpu.memory_space<vmem>>, vector<1x128x128xbf16>
    %129 = vector.shape_cast %128 : vector<1x128x128xbf16> to vector<128x128xbf16>
    %cst_73 = arith.constant dense<0.000000e+00> : vector<192x128xf32>
    %130 = tpu.matmul %127, %129, %cst_73 {dimension_numbers = #tpu.dot_dimension_numbers<[1], [0], [0], [1], [0, 0, 1, 1], [], []>} : vector<192x128xbf16>, vector<128x128xbf16>, vector<192x128xf32> -> vector<192x128xf32>
    %131 = arith.addf %125, %130 : vector<192x128xf32>
    %c25_74 = arith.constant 25 : index
    %c0_75 = arith.constant 0 : index
    %132 = vector.load %arg11[%c25_74, %c0_75] : memref<248x128xf32, #tpu.memory_space<vmem>>, vector<192x128xf32>
    %133 = arith.truncf %132 : vector<192x128xf32> to vector<192x128xbf16>
    %c4 = arith.constant 4 : index
    %c0_76 = arith.constant 0 : index
    %c0_77 = arith.constant 0 : index
    %134 = vector.load %arg7[%c4, %c0_76, %c0_77] : memref<9x128x128xbf16, #tpu.memory_space<vmem>>, vector<1x128x128xbf16>
    %135 = vector.shape_cast %134 : vector<1x128x128xbf16> to vector<128x128xbf16>
    %cst_78 = arith.constant dense<0.000000e+00> : vector<192x128xf32>
    %136 = tpu.matmul %133, %135, %cst_78 {dimension_numbers = #tpu.dot_dimension_numbers<[1], [0], [0], [1], [0, 0, 1, 1], [], []>} : vector<192x128xbf16>, vector<128x128xbf16>, vector<192x128xf32> -> vector<192x128xf32>
    %137 = arith.addf %131, %136 : vector<192x128xf32>
    %c26 = arith.constant 26 : index
    %c0_79 = arith.constant 0 : index
    %138 = vector.load %arg11[%c26, %c0_79] : memref<248x128xf32, #tpu.memory_space<vmem>>, vector<192x128xf32>
    %139 = arith.truncf %138 : vector<192x128xf32> to vector<192x128xbf16>
    %c5 = arith.constant 5 : index
    %c0_80 = arith.constant 0 : index
    %c0_81 = arith.constant 0 : index
    %140 = vector.load %arg7[%c5, %c0_80, %c0_81] : memref<9x128x128xbf16, #tpu.memory_space<vmem>>, vector<1x128x128xbf16>
    %141 = vector.shape_cast %140 : vector<1x128x128xbf16> to vector<128x128xbf16>
    %cst_82 = arith.constant dense<0.000000e+00> : vector<192x128xf32>
    %142 = tpu.matmul %139, %141, %cst_82 {dimension_numbers = #tpu.dot_dimension_numbers<[1], [0], [0], [1], [0, 0, 1, 1], [], []>} : vector<192x128xbf16>, vector<128x128xbf16>, vector<192x128xf32> -> vector<192x128xf32>
    %143 = arith.addf %137, %142 : vector<192x128xf32>
    %c48_83 = arith.constant 48 : index
    %c0_84 = arith.constant 0 : index
    %144 = vector.load %arg11[%c48_83, %c0_84] : memref<248x128xf32, #tpu.memory_space<vmem>>, vector<192x128xf32>
    %145 = arith.truncf %144 : vector<192x128xf32> to vector<192x128xbf16>
    %c6 = arith.constant 6 : index
    %c0_85 = arith.constant 0 : index
    %c0_86 = arith.constant 0 : index
    %146 = vector.load %arg7[%c6, %c0_85, %c0_86] : memref<9x128x128xbf16, #tpu.memory_space<vmem>>, vector<1x128x128xbf16>
    %147 = vector.shape_cast %146 : vector<1x128x128xbf16> to vector<128x128xbf16>
    %cst_87 = arith.constant dense<0.000000e+00> : vector<192x128xf32>
    %148 = tpu.matmul %145, %147, %cst_87 {dimension_numbers = #tpu.dot_dimension_numbers<[1], [0], [0], [1], [0, 0, 1, 1], [], []>} : vector<192x128xbf16>, vector<128x128xbf16>, vector<192x128xf32> -> vector<192x128xf32>
    %149 = arith.addf %143, %148 : vector<192x128xf32>
    %c49_88 = arith.constant 49 : index
    %c0_89 = arith.constant 0 : index
    %150 = vector.load %arg11[%c49_88, %c0_89] : memref<248x128xf32, #tpu.memory_space<vmem>>, vector<192x128xf32>
    %151 = arith.truncf %150 : vector<192x128xf32> to vector<192x128xbf16>
    %c7 = arith.constant 7 : index
    %c0_90 = arith.constant 0 : index
    %c0_91 = arith.constant 0 : index
    %152 = vector.load %arg7[%c7, %c0_90, %c0_91] : memref<9x128x128xbf16, #tpu.memory_space<vmem>>, vector<1x128x128xbf16>
    %153 = vector.shape_cast %152 : vector<1x128x128xbf16> to vector<128x128xbf16>
    %cst_92 = arith.constant dense<0.000000e+00> : vector<192x128xf32>
    %154 = tpu.matmul %151, %153, %cst_92 {dimension_numbers = #tpu.dot_dimension_numbers<[1], [0], [0], [1], [0, 0, 1, 1], [], []>} : vector<192x128xbf16>, vector<128x128xbf16>, vector<192x128xf32> -> vector<192x128xf32>
    %155 = arith.addf %149, %154 : vector<192x128xf32>
    %c50 = arith.constant 50 : index
    %c0_93 = arith.constant 0 : index
    %156 = vector.load %arg11[%c50, %c0_93] : memref<248x128xf32, #tpu.memory_space<vmem>>, vector<192x128xf32>
    %157 = arith.truncf %156 : vector<192x128xf32> to vector<192x128xbf16>
    %c8 = arith.constant 8 : index
    %c0_94 = arith.constant 0 : index
    %c0_95 = arith.constant 0 : index
    %158 = vector.load %arg7[%c8, %c0_94, %c0_95] : memref<9x128x128xbf16, #tpu.memory_space<vmem>>, vector<1x128x128xbf16>
    %159 = vector.shape_cast %158 : vector<1x128x128xbf16> to vector<128x128xbf16>
    %cst_96 = arith.constant dense<0.000000e+00> : vector<192x128xf32>
    %160 = tpu.matmul %157, %159, %cst_96 {dimension_numbers = #tpu.dot_dimension_numbers<[1], [0], [0], [1], [0, 0, 1, 1], [], []>} : vector<192x128xbf16>, vector<128x128xbf16>, vector<192x128xf32> -> vector<192x128xf32>
    %161 = arith.addf %155, %160 : vector<192x128xf32>
    %162 = vector.shape_cast %161 : vector<192x128xf32> to vector<8x24x128xf32>
    %163 = vector.extract_strided_slice %162 {offsets = [0, 0, 0], sizes = [8, 16, 128], strides = [1, 1, 1]} : vector<8x24x128xf32> to vector<8x16x128xf32>
    %c0_97 = arith.constant 0 : index
    %c0_98 = arith.constant 0 : index
    %164 = vector.load %arg8[%c0_97, %c0_98] : memref<1x128xf32, #tpu.memory_space<vmem>>, vector<1x128xf32>
    %165 = vector.shape_cast %164 : vector<1x128xf32> to vector<128xf32>
    %166 = vector.shape_cast %165 : vector<128xf32> to vector<1x1x128xf32>
    %167 = vector.broadcast %166 : vector<1x1x128xf32> to vector<8x16x128xf32>
    %168 = arith.addf %163, %167 : vector<8x16x128xf32>
    %c0_99 = arith.constant 0 : index
    %c0_100 = arith.constant 0 : index
    %c0_101 = arith.constant 0 : index
    %c0_102 = arith.constant 0 : index
    %169 = vector.load %arg9[%c0_99, %c0_100, %c0_101, %c0_102] : memref<1x8x16x128xf32, #tpu.memory_space<vmem>>, vector<1x8x16x128xf32>
    %170 = vector.shape_cast %169 : vector<1x8x16x128xf32> to vector<8x16x128xf32>
    %171 = vector.shape_cast %168 : vector<8x16x128xf32> to vector<1x8x16x128xf32>
    tpu.vector_store %arg9[%c0_99, %c0_100, %c0_101, %c0_102], %171 {strides = array<i32>} : memref<1x8x16x128xf32, #tpu.memory_space<vmem>>, vector<1x8x16x128xf32>,
    %cst_103 = arith.constant dense<0.000000e+00> : vector<128xf32>
    %172 = vector.multi_reduction <add>, %168, %cst_103 [0, 1] : vector<8x16x128xf32> to vector<128xf32>
    %173 = arith.mulf %168, %168 : vector<8x16x128xf32>
    %cst_104 = arith.constant dense<0.000000e+00> : vector<128xf32>
    %174 = vector.multi_reduction <add>, %173, %cst_104 [0, 1] : vector<8x16x128xf32> to vector<128xf32>
    %175 = vector.shape_cast %172 : vector<128xf32> to vector<1x128xf32>
    %c0_105 = arith.constant 0 : index
    %c0_106 = arith.constant 0 : index
    %c0_107 = arith.constant 0 : index
    %c0_108 = arith.constant 0 : index
    %176 = vector.load %arg10[%c0_105, %c0_106, %c0_107, %c0_108] : memref<1x1x2x128xf32, #tpu.memory_space<vmem>>, vector<1x1x1x128xf32>
    %177 = vector.shape_cast %176 : vector<1x1x1x128xf32> to vector<1x128xf32>
    %178 = vector.shape_cast %175 : vector<1x128xf32> to vector<1x1x1x128xf32>
    tpu.vector_store %arg10[%c0_105, %c0_106, %c0_107, %c0_108], %178 {strides = array<i32>} : memref<1x1x2x128xf32, #tpu.memory_space<vmem>>, vector<1x1x1x128xf32>,
    %179 = vector.shape_cast %174 : vector<128xf32> to vector<1x128xf32>
    %c0_109 = arith.constant 0 : index
    %c0_110 = arith.constant 0 : index
    %c1_111 = arith.constant 1 : index
    %c0_112 = arith.constant 0 : index
    %180 = vector.load %arg10[%c0_109, %c0_110, %c1_111, %c0_112] : memref<1x1x2x128xf32, #tpu.memory_space<vmem>>, vector<1x1x1x128xf32>
    %181 = vector.shape_cast %180 : vector<1x1x1x128xf32> to vector<1x128xf32>
    %182 = vector.shape_cast %179 : vector<1x128xf32> to vector<1x1x1x128xf32>
    tpu.vector_store %arg10[%c0_109, %c0_110, %c1_111, %c0_112], %182 {strides = array<i32>} : memref<1x1x2x128xf32, #tpu.memory_space<vmem>>, vector<1x1x1x128xf32>,
    return
  }
  func.func @transform_0(%arg0: i32, %arg1: i32) -> (i32, i32, i32, i32) {
    %c0_i32 = arith.constant 0 : i32
    %c0_i32_0 = arith.constant 0 : i32
    %c0_i32_1 = arith.constant 0 : i32
    return %arg0, %arg1, %c0_i32, %c0_i32_0 : i32, i32, i32, i32
  }
  func.func @transform_1(%arg0: i32, %arg1: i32) -> (i32, i32, i32, i32) {
    %c0_i32 = arith.constant 0 : i32
    %0 = arith.cmpi eq, %arg1, %c0_i32 : i32
    %c8_i32 = arith.constant 8 : i32
    %1 = arith.muli %arg1, %c8_i32 : i32
    %c1_i32 = arith.constant 1 : i32
    %2 = arith.subi %1, %c1_i32 : i32
    %c1_i32_0 = arith.constant 1 : i32
    %3 = arith.select %0, %c1_i32_0, %2 : i32
    %c0_i32_1 = arith.constant 0 : i32
    %c0_i32_2 = arith.constant 0 : i32
    %c0_i32_3 = arith.constant 0 : i32
    return %arg0, %3, %c0_i32_1, %c0_i32_2 : i32, i32, i32, i32
  }
  func.func @transform_2(%arg0: i32, %arg1: i32) -> (i32, i32, i32, i32) {
    %c1_i32 = arith.constant 1 : i32
    %0 = arith.cmpi eq, %arg1, %c1_i32 : i32
    %c1_i32_0 = arith.constant 1 : i32
    %1 = arith.addi %arg1, %c1_i32_0 : i32
    %c8_i32 = arith.constant 8 : i32
    %2 = arith.muli %1, %c8_i32 : i32
    %c14_i32 = arith.constant 14 : i32
    %3 = arith.select %0, %c14_i32, %2 : i32
    %c0_i32 = arith.constant 0 : i32
    %c0_i32_1 = arith.constant 0 : i32
    %c0_i32_2 = arith.constant 0 : i32
    return %arg0, %3, %c0_i32, %c0_i32_1 : i32, i32, i32, i32
  }
  func.func @transform_3(%arg0: i32, %arg1: i32) -> (i32, i32) {
    %c0_i32 = arith.constant 0 : i32
    %c0_i32_0 = arith.constant 0 : i32
    %c0_i32_1 = arith.constant 0 : i32
    return %c0_i32, %c0_i32_0 : i32, i32
  }
  func.func @transform_4(%arg0: i32, %arg1: i32) -> (i32, i32) {
    %c0_i32 = arith.constant 0 : i32
    %c0_i32_0 = arith.constant 0 : i32
    %c0_i32_1 = arith.constant 0 : i32
    return %c0_i32, %c0_i32_0 : i32, i32
  }
  func.func @transform_5(%arg0: i32, %arg1: i32) -> (i32, i32, i32) {
    %c0_i32 = arith.constant 0 : i32
    %c0_i32_0 = arith.constant 0 : i32
    %c0_i32_1 = arith.constant 0 : i32
    %c0_i32_2 = arith.constant 0 : i32
    return %c0_i32, %c0_i32_0, %c0_i32_1 : i32, i32, i32
  }
  func.func @transform_6(%arg0: i32, %arg1: i32) -> (i32, i32) {
    %c0_i32 = arith.constant 0 : i32
    %c0_i32_0 = arith.constant 0 : i32
    %c0_i32_1 = arith.constant 0 : i32
    return %c0_i32, %c0_i32_0 : i32, i32
  }
  func.func @transform_7(%arg0: i32, %arg1: i32) -> (i32, i32, i32, i32) {
    %c0_i32 = arith.constant 0 : i32
    %c0_i32_0 = arith.constant 0 : i32
    %c0_i32_1 = arith.constant 0 : i32
    return %arg0, %arg1, %c0_i32, %c0_i32_0 : i32, i32, i32, i32
  }
  func.func @transform_8(%arg0: i32, %arg1: i32) -> (i32, i32, i32, i32) {
    %c0_i32 = arith.constant 0 : i32
    %c0_i32_0 = arith.constant 0 : i32
    %c0_i32_1 = arith.constant 0 : i32
    return %arg0, %arg1, %c0_i32, %c0_i32_0 : i32, i32, i32, i32
  }
}

</mosaic_0001>

<bundles_post_ra>
// kernel: resblock_v2_forward.2
= control target key start
LH: loop header
LB: loop body
LE: loop exit
PB: predicated region body
PF: predicated region fallthrough
CT: control target
= control target key end

     0   :  { %s4053_s27 = smov 0   ;;  %s4055_s28 = smov 0   ;;  %s5124_s0 = inlined_call_operand.vmem [shape: f32[2,16,16,128], index: 0, kind: input, shape index: {}, may-alias: {0,1,2}]   ;;  %s5125_s1 = inlined_call_operand.vmem [shape: f32[2,16,16,128], index: 1, kind: input, shape index: {}, may-alias: {0,1,2}]   ;;  %s5126_s2 = inlined_call_operand.vmem [shape: f32[2,16,16,128], index: 2, kind: input, shape index: {}, may-alias: {0,1,2}]   ;;  %s5127_s3 = inlined_call_operand.vmem [shape: f32[1,128], index: 3, kind: input, shape index: {}]   ;;  %s5128_s4 = inlined_call_operand.vmem [shape: f32[1,128], index: 4, kind: input, shape index: {}]   ;;  %s5129_s5 = inlined_call_operand.vmem [shape: bf16[9,128,128], index: 5, kind: input, shape index: {}]   ;;  %s5130_s6 = inlined_call_operand.vmem [shape: f32[1,128], index: 6, kind: input, shape index: {}]   ;;  %s5131_s7 = inlined_call_operand.vmem [shape: f32[2,16,16,128], index: 7, kind: output, shape index: {0}]   ;;  %s5132_s8 = inlined_call_operand.vmem [shape: f32[2,2,2,128], index: 8, kind: output, shape index: {1}]  }
   0x1   :  { %s4057_s29 = smov 0   ;;  %s4059_s30 = smov 0  }
   0x2   :  { %s4061_s9 = smov 0  }
   0x3 LB: > { %s28_s10 = sadd.s32 1, %s3997_s29  ;;  %s31_s11 = sadd.s32 1, %s4001_s30  ;;  %s4005_s9 = sphi %s4061_s9, %s19_s9   ;;  %s4001_s30 = sphi %s4059_s30, %s5177_s30   ;;  %s3997_s29 = sphi %s4057_s29, %s5176_s29   ;;  %s3993_s28 = sphi %s4055_s28, %s5175_s28   ;;  %s3989_s27 = sphi %s4053_s27, %s5174_s27  }
   0x4   : > { %p29_p0 = scmp.ge.s32.totalorder %s28_s10, 2  ;;  %p3067_p1 = scmp.ge.s32.totalorder %s4005_s9, 1 }
   0x5   : > { %p353_p2 = scmp.lt.s32.totalorder %s4005_s9, 5 }
   0x6   : > { %s5179_s10 = smov (%p29_p0, %s28_s10), 0  ;;  %s5181_s11 = smov (!%p29_p0, %s31_s11), %s4001_s30 }
   0x7   : > { %p354_p3 = pnand %p3067_p1, %p353_p2  ;;  %p33_p4 = scmp.ge.s32.totalorder %s5181_s11, 2 }
   0x9   : > { %s5183_s11 = smov (%p33_p4, %s5181_s11), 0  ;;  %357 = sbr.rel (%p354_p3) target bundleno = 493 (0x1ed), region = 48 }
   0xe   : > { %v3895_v0 = vld [vmem:[%s5129_s5 + $0x78] sm:$0xff]   ;;  %s4089_s14 = sshll.u32 %s3989_s27, 3  ;;  %p432_p5 = scmp.lt.s32.totalorder %s3993_s28, 1  ;;  %v3897_v2 = vld [vmem:[%s5129_s5 + $0x70] sm:$0xff]   ;;  %v3899_v4 = vld [vmem:[%s5129_s5 + $0x68] sm:$0xff]   ;;  %v4007_v9 = vmov 0.0  }
   0xf   : > { %v3896_v1 = vld [vmem:[%s5129_s5 + $0x38] sm:$0xff]   ;;  %3478 = vmatprep.subr.bf16.mxu0 %v3895_v0  ;;  %p434_p6 = scmp.lt.s32.totalorder %s4089_s14, 15  ;;  %v3898_v3 = vld [vmem:[%s5129_s5 + $0x30] sm:$0xff]   ;;  %v3900_v5 = vld [vmem:[%s5129_s5 + $0x28] sm:$0xff]   ;;  %p442_p7 = scmp.eq.s32.totalorder %s3989_s27, 0  ;;  %590 = vst [vmem:[#allocation2] sm:$0xff] %v4007_v9 }
  0x10   : > { %3518 = vmatprep.subr.bf16.mxu1 %v3896_v1  ;;  %3479 = vmatpush3.bf16.msra.mxu0 %v3895_v0  ;;  %s5185_s28 = smov (!%p432_p5, %s3993_s28), 1  ;;  %v3901_v6 = vld [vmem:[%s5129_s5 + $0x60] sm:$0xff]   ;;  %s3073_s20 = sadd.s32 4294967295, %s4089_s14  ;;  %v3903_v8 = vld [vmem:[%s5129_s5 + $0x58] sm:$0xff]   ;;  %591 = vst [vmem:[#allocation2 + $0x8] sm:$0xff] %v4007_v9  ;;  %592 = vst [vmem:[#allocation2 + $0x10] sm:$0xff] %v4007_v9 }
  0x11   : > { %3519 = vmatpush3.bf16.msra.mxu1 %v3896_v1  ;;  %3480 = vmatprep.subr.bf16.mxu0 %v3897_v2  ;;  %s435_s23 = scalar_select %p434_p6, %s4089_s14, 15  ;;  %v3902_v7 = vld [vmem:[%s5129_s5 + $0x20] sm:$0xff]   ;;  %593 = vst [vmem:[#allocation2 + $0x18] sm:$0xff] %v4007_v9  ;;  %594 = vst [vmem:[#allocation2 + $0x20] sm:$0xff] %v4007_v9  ;;  %v3904_v10 = vld [vmem:[%s5129_s5 + $0x18] sm:$0xff]  }
  0x12   : > { %3520 = vmatprep.subr.bf16.mxu1 %v3898_v3  ;;  %s4111_s26 = sshll.u32 %s5185_s28, 5  ;;  %s5187_s20 = smov (%p442_p7, %s3073_s20), 1  ;;  %595 = vst [vmem:[#allocation2 + $0x28] sm:$0xff] %v4007_v9  ;;  %596 = vst [vmem:[#allocation2 + $0x30] sm:$0xff] %v4007_v9  ;;  %v3905_v11 = vld [vmem:[%s5129_s5 + $0x50] sm:$0xff]   ;;  %v3907_v17 = vld [vmem:[%s5129_s5 + $0x48] sm:$0xff]  }
  0x13   : > { %s3069_s12 = sshll.u32 %s435_s23, 1  ;;  %p448_p8 = scmp.lt.s32.totalorder %s5187_s20, 15  ;;  %597 = vst [vmem:[#allocation2 + $0x38] sm:$0xff] %v4007_v9  ;;  %598 = vst [vmem:[#allocation2 + $0x40] sm:$0xff] %v4007_v9  ;;  %v4150_v12 = vld [vmem:[%s5127_s3] ss:$0 sm:$0xff] }
  0x14   : > { %3481 = vmatpush3.bf16.msra.mxu0 %v3897_v2  ;;  %s4117_s16 = sadd.s32 %s4111_s26, %s3069_s12  ;;  %599 = vst [vmem:[#allocation2 + $0x48] sm:$0xff] %v4007_v9  ;;  %600 = vst [vmem:[#allocation2 + $0x50] sm:$0xff] %v4007_v9  ;;  %v4155_v13 = vld [vmem:[%s5128_s4] ss:$0 sm:$0xff]  ;;  %v3906_v15 = vld [vmem:[%s5129_s5 + $0x10] sm:$0xff]   ;;  %p459_p9 = scmp.eq.s32.totalorder %s3989_s27, 1 }
  0x15   : > { %3521 = vmatpush3.bf16.msra.mxu1 %v3898_v3  ;;  %3482 = vmatprep.subr.bf16.mxu0 %v3899_v4  ;;  %s3071_s19 = sshll.u32 %s4117_s16, 3  ;;  %601 = vst [vmem:[#allocation2 + $0x58] sm:$0xff] %v4007_v9  ;;  %602 = vst [vmem:[#allocation2 + $0x60] sm:$0xff] %v4007_v9  ;;  %s5189_s20 = smov (!%p448_p8, %s5187_s20), 15  ;;  %v3908_v27 = vld [vmem:[%s5129_s5 + $0x8] sm:$0xff]   ;;  %v3909_v38 = vld [vmem:[%s5129_s5 + $0x40] sm:$0xff]  }
  0x16   : > { %3522 = vmatprep.subr.bf16.mxu1 %v3900_v5  ;;  %603 = vst [vmem:[#allocation2 + $0x68] sm:$0xff] %v4007_v9  ;;  %604 = vst [vmem:[#allocation2 + $0x70] sm:$0xff] %v4007_v9  ;;  %s4139_s13 = scalar_lea.vmem %s5124_s0, %s3071_s19  ;;  %s3074_s18 = sshll.u32 %s5189_s20, 1  ;;  %v3910_v43 = vld [vmem:[%s5129_s5] sm:$0xff]   ;;  %v3911_v60 = vld [vmem:[%s5129_s5 + $0xb8] sm:$0xff]  }
  0x17   : > { %605 = vst [vmem:[#allocation2 + $0x78] sm:$0xff] %v4007_v9  ;;  %606 = vst [vmem:[#allocation2 + $0x80] sm:$0xff] %v4007_v9  ;;  %v518_v14 = vld [vmem:[%s4139_s13] sm:$0xff]  ;;  %s452_s15 = sadd.s32 %s3074_s18, %s4111_s26  ;;  %v519_v19 = vld [vmem:[%s4139_s13 + $0x8] sm:$0xff]  ;;  %s3297_s18 = sadd.s32 8, %s4089_s14 }
  0x18   : > { %3483 = vmatpush3.bf16.msra.mxu0 %v3899_v4  ;;  %607 = vst [vmem:[#allocation2 + $0x88] sm:$0xff] %v4007_v9  ;;  %608 = vst [vmem:[#allocation2 + $0x90] sm:$0xff] %v4007_v9  ;;  %v534_v16 = vmul.f32 %v4150_v12, %v518_v14  ;;  %s3076_s21 = sshll.u32 %s452_s15, 3  ;;  %v520_v20 = vld [vmem:[%s4139_s13 + $0x10] sm:$0xff]  ;;  %v521_v21 = vld [vmem:[%s4139_s13 + $0x18] sm:$0xff]  ;;  %v535_v24 = vmul.f32 %v4150_v12, %v519_v19  ;;  %s5191_s18 = smov (%p459_p9, %s3297_s18), 14 }
  0x19   : > { %3523 = vmatpush3.bf16.msra.mxu1 %v3900_v5  ;;  %3484 = vmatprep.subr.bf16.mxu0 %v3901_v6  ;;  %609 = vst [vmem:[#allocation2 + $0x98] sm:$0xff] %v4007_v9  ;;  %610 = vst [vmem:[#allocation2 + $0xa0] sm:$0xff] %v4007_v9  ;;  %s454_s24 = scalar_lea.vmem %s5125_s1, %s3076_s21  ;;  %v536_v25 = vmul.f32 %v4150_v12, %v520_v20  ;;  %v537_v26 = vmul.f32 %v4150_v12, %v521_v21  ;;  %v522_v31 = vld [vmem:[%s4139_s13 + $0x20] sm:$0xff]  ;;  %v523_v36 = vld [vmem:[%s4139_s13 + $0x28] sm:$0xff]  ;;  %p465_p10 = scmp.lt.s32.totalorder %s5191_s18, 15 }
  0x1a   : > { %611 = vst [vmem:[#allocation2 + $0xa8] sm:$0xff] %v4007_v9  ;;  %612 = vst [vmem:[#allocation2 + $0xb0] sm:$0xff] %v4007_v9  ;;  %3524 = vmatprep.subr.bf16.mxu1 %v3902_v7  ;;  %v550_v18 = vadd.f32 %v4155_v13, %v534_v16  ;;  %v498_v22 = vld [vmem:[%s454_s24] sm:$0xff]  ;;  %v499_v23 = vld [vmem:[%s454_s24 + $0x8] sm:$0xff]  ;;  %v551_v32 = vadd.f32 %v4155_v13, %v535_v24  ;;  %v538_v35 = vmul.f32 %v4150_v12, %v522_v31  ;;  %s5023_s17 = scalar_lea.vmem %s5131_s7, %s3071_s19  ;;  %p489_p11 = scmp.lt.s32.totalorder %s3989_s27, 1 }
  0x1b   : > { %613 = vst [vmem:[#allocation2 + $0xb8] sm:$0xff] %v4007_v9  ;;  %614 = vst [vmem:[#allocation2 + $0xc0] sm:$0xff] %v4007_v9  ;;  %v506_v28 = vmul.f32 %v4150_v12, %v498_v22  ;;  %v507_v29 = vmul.f32 %v4150_v12, %v499_v23  ;;  %v552_v33 = vadd.f32 %v4155_v13, %v536_v25  ;;  %v524_v37 = vld [vmem:[%s4139_s13 + $0x30] sm:$0xff]  ;;  %v525_v53 = vld [vmem:[%s4139_s13 + $0x38] sm:$0xff]  ;;  %s5193_s18 = smov (!%p465_p10, %s5191_s18), 15  ;;  %s3085_s16 = sshll.u32 %s5185_s28, 1 }
  0x1c   : > { %615 = vst [vmem:[#allocation2 + $0xc8] sm:$0xff] %v4007_v9  ;;  %616 = vst [vmem:[#allocation2 + $0xd0] sm:$0xff] %v4007_v9  ;;  %3485 = vmatpush3.bf16.msra.mxu0 %v3901_v6  ;;  %v4187_v30 = vmax.f32 %v550_v18, 0.0  ;;  %v553_v34 = vadd.f32 %v4155_v13, %v537_v26  ;;  %v539_v41 = vmul.f32 %v4150_v12, %v523_v36  ;;  %v4209_v44 = vmax.f32 %v551_v32, 0.0  ;;  %v526_v54 = vld [vmem:[%s4139_s13 + $0x40] sm:$0xff]  ;;  %s3078_s23 = sshll.u32 %s5193_s18, 1 }
  0x1d   : > { %617 = vst [vmem:[#allocation2 + $0xd8] sm:$0xff] %v4007_v9  ;;  %618 = vst [vmem:[#allocation2 + $0xe0] sm:$0xff] %v4007_v9  ;;  %3525 = vmatpush3.bf16.msra.mxu1 %v3902_v7  ;;  %3486 = vmatprep.subr.bf16.mxu0 %v3903_v8  ;;  %v514_v39 = vadd.f32 %v4155_v13, %v506_v28  ;;  %v515_v40 = vadd.f32 %v4155_v13, %v507_v29  ;;  %v4211_v45 = vmax.f32 %v552_v33, 0.0  ;;  %v3914_v62 = vld [vmem:[%s5129_s5 + $0xf8] sm:$0xff]   ;;  %s4255_s18 = sadd.s32 %s3078_s23, %s4111_s26  ;;  %v527_v4 = vld [vmem:[%s4139_s13 + $0x48] sm:$0xff]  ;;  %s5195_s27 = smov (!%p489_p11, %s3989_s27), 1 }
  0x1e   : > { %619 = vst [vmem:[#allocation2 + $0xe8] sm:$0xff] %v4007_v9  ;;  %620 = vst [vmem:[#allocation2 + $0xf0] sm:$0xff] %v4007_v9  ;;  %3526 = vmatprep.subr.bf16.mxu1 %v3904_v10  ;;  %v540_v42 = vmul.f32 %v4150_v12, %v524_v37  ;;  %v4213_v46 = vmax.f32 %v553_v34, 0.0  ;;  %v554_v47 = vadd.f32 %v4155_v13, %v538_v35  ;;  %v528_v6 = vld [vmem:[%s4139_s13 + $0x50] sm:$0xff]  ;;  %v3913_v32 = vld [vmem:[%s5129_s5 + $0xa8] sm:$0xff]   ;;  %s492_s19 = sadd.s32 %s3085_s16, %s5195_s27 }
  0x1f   : > { %625 = vst [vmem:[#allocation2 + $0x19] sm:$0xff] %v4187_v30  ;;  %627 = vst [vmem:[#allocation2 + $0x17] sm:$0x2] %v4187_v30  ;;  %v516_v48 = vmax.f32 %v514_v39, 0.0  ;;  %v517_v49 = vmax.f32 %v515_v40, 0.0  ;;  %v555_v50 = vadd.f32 %v4155_v13, %v539_v41  ;;  %v541_v59 = vmul.f32 %v4150_v12, %v525_v53  ;;  %v3912_v24 = vld [vmem:[%s5129_s5 + $0xb0] sm:$0xff]  }
  0x20   : > { %3487 = vmatpush3.bf16.msra.mxu0 %v3903_v8  ;;  %v556_v51 = vadd.f32 %v4155_v13, %v540_v42  ;;  %626 = vst [vmem:[#allocation2 + $0x21] sm:$0xff] %v4209_v44  ;;  %628 = vst [vmem:[#allocation2 + $0x23] sm:$0x40] %v4209_v44  ;;  %v4224_v52 = vmax.f32 %v554_v47, 0.0  ;;  %v542_v61 = vmul.f32 %v4150_v12, %v526_v54  ;;  %v529_v8 = vld [vmem:[%s4139_s13 + $0x58] sm:$0xff]  ;;  %v3916_v33 = vld [vmem:[%s5129_s5 + $0xf0] sm:$0xff]  }
  0x21   : > { %3527 = vmatpush3.bf16.msra.mxu1 %v3904_v10  ;;  %3488 = vmatprep.subr.bf16.mxu0 %v3905_v11  ;;  %631 = vst [vmem:[#allocation2 + $0x2f] sm:$0x2] %v4211_v45  ;;  %629 = vst [vmem:[#allocation2 + $0x31] sm:$0xff] %v4211_v45  ;;  %v737_v56 = vpack.c.bf16 %v517_v49, %v516_v48  ;;  %v4233_v57 = vmax.f32 %v555_v50, 0.0  ;;  %v557_v63 = vadd.f32 %v4155_v13, %v541_v59  ;;  %v530_v53 = vld [vmem:[%s4139_s13 + $0x60] sm:$0xff]  ;;  %v531_v54 = vld [vmem:[%s4139_s13 + $0x68] sm:$0xff] }
  0x22   : > { %3528 = vmatprep.subr.bf16.mxu1 %v3906_v15  ;;  %630 = vst [vmem:[#allocation2 + $0x39] sm:$0xff] %v4213_v46  ;;  %632 = vst [vmem:[#allocation2 + $0x3b] sm:$0x40] %v4213_v46  ;;  %v4235_v58 = vmax.f32 %v556_v51, 0.0  ;;  %v558_v1 = vadd.f32 %v4155_v13, %v542_v61  ;;  %v543_v7 = vmul.f32 %v4150_v12, %v527_v4  ;;  %s3086_s21 = sshll.u32 %s492_s19, 1 }
  0x23   : > { %621 = vst [vmem:[#allocation2 + $0x1] sm:$0xff] %v516_v48  ;;  %622 = vst [vmem:[#allocation2 + $0x9] sm:$0xff] %v517_v49  ;;  %3494 = vmatprep.mubr.bf16.mxu0 %v737_v56  ;;  %v4260_v3 = vmax.f32 %v557_v63, 0.0  ;;  %v544_v14 = vmul.f32 %v4150_v12, %v528_v6  ;;  %v740_v47 = vpack.c.bf16 %v4213_v46, %v4211_v45  ;;  %v3919_v6 = vld [vmem:[%s5129_s5 + $0xe0] sm:$0xff]   ;;  %s494_s23 = scalar_lea.vmem %s5132_s8, %s3086_s21 }
  0x24   : > { %3489 = vmatpush3.bf16.msra.mxu0 %v3905_v11  ;;  %623 = vst [vmem:[#allocation2 - $0x1] sm:$0x2] %v516_v48  ;;  %624 = vst [vmem:[#allocation2 + $0xb] sm:$0x40] %v517_v49  ;;  %v4263_v5 = vmax.f32 %v558_v1, 0.0  ;;  %v559_v20 = vadd.f32 %v4155_v13, %v543_v7  ;;  %v3918_v49 = vld [vmem:[%s5129_s5 + $0xe8] sm:$0xff]   ;;  %v546_v61 = vmul.f32 %v4150_v12, %v530_v53 }
  0x25   : > { %3529 = vmatpush3.bf16.msra.mxu1 %v3906_v15  ;;  %3490 = vmatprep.subr.bf16.mxu0 %v3907_v17  ;;  %633 = vst [vmem:[#allocation2 + $0x49] sm:$0xff] %v4224_v52  ;;  %635 = vst [vmem:[#allocation2 + $0x47] sm:$0x2] %v4224_v52  ;;  %v545_v15 = vmul.f32 %v4150_v12, %v529_v8  ;;  %v560_v25 = vadd.f32 %v4155_v13, %v544_v14  ;;  %v3915_v1 = vld [vmem:[%s5129_s5 + $0xa0] sm:$0xff]   ;;  %v3922_v53 = vld [vmem:[%s5129_s5 + $0x88] sm:$0xff]  }
  0x26   : > { %3530 = vmatprep.subr.bf16.mxu1 %v3908_v27  ;;  %634 = vst [vmem:[#allocation2 + $0x51] sm:$0xff] %v4233_v57  ;;  %636 = vst [vmem:[#allocation2 + $0x53] sm:$0x40] %v4233_v57  ;;  %v4258_v2 = vld [vmem:[#allocation2 + $0x18] sm:$0xff]  ;;  %v4292_v29 = vmax.f32 %v559_v20, 0.0  ;;  %v547_v63 = vmul.f32 %v4150_v12, %v531_v54  ;;  %v562_v7 = vadd.f32 %v4155_v13, %v546_v61 }
  0x27   : > { %639 = vst [vmem:[#allocation2 + $0x5f] sm:$0x2] %v4235_v58  ;;  %637 = vst [vmem:[#allocation2 + $0x61] sm:$0xff] %v4235_v58  ;;  %v4270_v10 = vld [vmem:[#allocation2 + $0x20] sm:$0xff]  ;;  %v4272_v11 = vld [vmem:[#allocation2 + $0x28] sm:$0xff]  ;;  %v561_v26 = vadd.f32 %v4155_v13, %v545_v15  ;;  %v4302_v34 = vmax.f32 %v560_v25, 0.0 }
  0x28   : > { %3491 = vmatpush3.bf16.msra.mxu0 %v3907_v17  ;;  %v4268_v9 = vld [vmem:[#allocation2 + $0x29] sm:$0xff]  ;;  %638 = vst [vmem:[#allocation2 + $0x69] sm:$0xff] %v4260_v3  ;;  %640 = vst [vmem:[#allocation2 + $0x6b] sm:$0x40] %v4260_v3  ;;  %v687_v28 = vpack.c.bf16 %v4272_v11, %v4270_v10  ;;  %v563_v8 = vadd.f32 %v4155_v13, %v547_v63  ;;  %v3917_v15 = vld [vmem:[%s5129_s5 + $0x98] sm:$0xff]   ;;  %v1366_v56 = vpack.c.bf16 %v4270_v10, %v4258_v2 }
  0x29   : > { %3531 = vmatpush3.bf16.msra.mxu1 %v3908_v27  ;;  %3492 = vmatprep.subr.bf16.mxu0 %v3909_v38  ;;  %v739_v19 = vpack.c.bf16 %v4268_v9, %v4209_v44  ;;  %641 = vst [vmem:[#allocation2 + $0x79] sm:$0xff] %v4263_v5  ;;  %643 = vst [vmem:[#allocation2 + $0x77] sm:$0x2] %v4263_v5  ;;  %v4294_v31 = vld [vmem:[#allocation2 + $0x30] sm:$0xff]  ;;  %v4304_v35 = vmax.f32 %v561_v26, 0.0  ;;  %v4306_v36 = vld [vmem:[#allocation2 + $0x38] sm:$0xff] }
  0x2a   : > { %3532 = vmatprep.subr.bf16.mxu1 %v3910_v43  ;;  %v662_v17 = vld [vmem:[#allocation2 + $0x8] sm:$0xff]  ;;  %642 = vst [vmem:[#allocation2 + $0x81] sm:$0xff] %v4292_v29  ;;  %644 = vst [vmem:[#allocation2 + $0x83] sm:$0x40] %v4292_v29  ;;  %v4318_v39 = vld [vmem:[#allocation2 + $0x40] sm:$0xff]  ;;  %v688_v51 = vpack.c.bf16 %v4306_v36, %v4294_v31  ;;  %v4371_v20 = vmax.f32 %v563_v8, 0.0  ;;  %v1367_v10 = vpack.c.bf16 %v4294_v31, %v4272_v11 }
  0x2b   : > { %v661_v16 = vld [vmem:[#allocation2] sm:$0xff]  ;;  %v715_v18 = vld [vmem:[#allocation2 + $0x11] sm:$0xff]  ;;  %647 = vst [vmem:[#allocation2 + $0x8f] sm:$0x2] %v4302_v34  ;;  %645 = vst [vmem:[#allocation2 + $0x91] sm:$0xff] %v4302_v34 }
  0x2c   : > { %3493 = vmatpush3.bf16.msra.mxu0 %v3909_v38  ;;  %v685_v21 = vpack.c.bf16 %v662_v17, %v661_v16  ;;  %v738_v22 = vpack.c.bf16 %v4187_v30, %v715_v18  ;;  %v663_v23 = vld [vmem:[#allocation2 + $0x10] sm:$0xff]  ;;  %v4308_v37 = vld [vmem:[#allocation2 + $0x41] sm:$0xff]  ;;  %646 = vst [vmem:[#allocation2 + $0x99] sm:$0xff] %v4304_v35  ;;  %648 = vst [vmem:[#allocation2 + $0x9b] sm:$0x40] %v4304_v35 }
  0x2d   : > { %3533 = vmatpush3.bf16.msra.mxu1 %v3910_v43  ;;  %3558 = vmatprep.subr.bf16.mxu0 %v3911_v60  ;;  %v686_v27 = vpack.c.bf16 %v4258_v2, %v663_v23  ;;  %v4320_v40 = vld [vmem:[#allocation2 + $0x48] sm:$0xff]  ;;  %v741_v59 = vpack.c.bf16 %v4224_v52, %v4308_v37  ;;  %v4359_v14 = vld [vmem:[#allocation2 + $0x50] sm:$0xff]  ;;  %v4365_v17 = vld [vmem:[#allocation2 + $0x58] sm:$0xff]  ;;  %650 = vst [vmem:[#allocation2 + $0xb1] sm:$0xff] %v4371_v20 }
  0x2e   : > { %3598 = vmatprep.subr.bf16.mxu1 %v3914_v62  ;;  %3534 = vmatprep.mubr.bf16.mxu1 %v685_v21  ;;  %v4312_v38 = vld [vmem:[#allocation2 + $0x59] sm:$0xff]  ;;  %652 = vst [vmem:[#allocation2 + $0xb3] sm:$0x40] %v4371_v20  ;;  %v1104_v8 = vld [vmem:[#allocation2 + $0x2] sm:$0xff]  ;;  %v4538_v41 = vld [vmem:[#allocation2 + $0x4a] sm:$0xff] }
  0x2f   : > { %3495 = vmatmul.mubr.bf16.vlgmr.msra.gmra.mxu0 %v738_v22  ;;  %v4373_v21 = vld [vmem:[#allocation2 + $0x60] sm:$0xff]  ;;  %v4375_v22 = vld [vmem:[#allocation2 + $0x68] sm:$0xff]  ;;  %v742_v25 = vpack.c.bf16 %v4312_v38, %v4233_v57  ;;  %v3921_v26 = vld [vmem:[%s5129_s5 + $0xd8] sm:$0xff]  }
  0x30   : > { %3535 = vmatmul.mubr.bf16.vlgmr.msra.gmra.mxu1 %v686_v27  ;;  %3559 = vmatpush3.bf16.msra.mxu0 %v3911_v60  ;;  %v4330_v48 = vld [vmem:[#allocation2 + $0x71] sm:$0xff]  ;;  %v689_v60 = vpack.c.bf16 %v4320_v40, %v4318_v39  ;;  %v4494_v0 = vld [vmem:[#allocation2 + $0x1a] sm:$0xff]  ;;  %v4536_v11 = vld [vmem:[#allocation2 + $0x42] sm:$0xff] }
  0x31   : > { %3560 = vmatprep.subr.bf16.mxu0 %v3912_v24  ;;  %3498 = vmatprep.mubr.bf16.mxu0 %v739_v19  ;;  %v4369_v19 = vmax.f32 %v562_v7, 0.0  ;;  %v4411_v54 = vld [vmem:[#allocation2 + $0x78] sm:$0xff]  ;;  %v1105_v27 = vld [vmem:[#allocation2 + $0xa] sm:$0xff] }
  0x32   : > { %3538 = vmatprep.mubr.bf16.mxu1 %v687_v28  ;;  %3599 = vmatpush3.bf16.msra.mxu1 %v3914_v62  ;;  %v532_v62 = vld [vmem:[%s4139_s13 + $0x70] sm:$0xff]  ;;  %v690_v28 = vpack.c.bf16 %v4365_v17, %v4359_v14 }
  0x33   : > { %3600 = vmatprep.subr.bf16.mxu1 %v3916_v33  ;;  %v548_v4 = vmul.f32 %v4150_v12, %v532_v62  ;;  %v4367_v18 = vld [vmem:[#allocation2 + $0x89] sm:$0xff]  ;;  %649 = vst [vmem:[#allocation2 + $0xa9] sm:$0xff] %v4369_v19  ;;  %651 = vst [vmem:[#allocation2 + $0xa7] sm:$0x2] %v4369_v19  ;;  %v744_v62 = vpack.c.bf16 %v4263_v5, %v4330_v48 }
  0x34   : > { %3561 = vmatpush3.bf16.msra.mxu0 %v3912_v24  ;;  %v745_v7 = vpack.c.bf16 %v4367_v18, %v4292_v29  ;;  %v533_v24 = vld [vmem:[%s4139_s13 + $0x78] sm:$0xff]  ;;  %s3080_s13 = sshll.u32 %s4255_s18, 3 }
  0x35   : > { %3562 = vmatprep.subr.bf16.mxu0 %v3913_v32  ;;  %v564_v16 = vadd.f32 %v4155_v13, %v548_v4  ;;  %v4475_v4 = vld [vmem:[#allocation2 + $0xb8] sm:$0xff]  ;;  %v549_v50 = vmul.f32 %v4150_v12, %v533_v24  ;;  %s4527_s20 = scalar_lea.vmem %s5126_s2, %s3080_s13 }
  0x36   : > { %3601 = vmatpush3.bf16.msra.mxu1 %v3916_v33  ;;  %v691_v33 = vpack.c.bf16 %v4375_v22, %v4373_v21  ;;  %v1106_v24 = vld [vmem:[#allocation2 + $0x12] sm:$0xff]  ;;  %v582_v55 = vld [vmem:[%s4527_s20] sm:$0xff] }
  0x37   : > { %3499 = vmatmul.mubr.bf16.gmra.mxu0 %v740_v47  ;;  %3602 = vmatprep.subr.bf16.mxu1 %v3918_v49  ;;  %v4377_v23 = vmax.f32 %v564_v16, 0.0  ;;  %v3920_v47 = vld [vmem:[%s5129_s5 + $0x90] sm:$0xff]   ;;  %v3925_v16 = vld [vmem:[%s5129_s5 + $0x80] sm:$0xff]   ;;  %v1129_v2 = vpack.c.bf16 %v4494_v0, %v1106_v24 }
  0x38   : > { %3539 = vmatmul.mubr.bf16.gmra.mxu1 %v688_v51  ;;  %3563 = vmatpush3.bf16.msra.mxu0 %v3913_v32  ;;  %v743_v32 = vpack.c.bf16 %v4260_v3, %v4235_v58  ;;  %v4406_v51 = vld [vmem:[#allocation2 + $0x70] sm:$0xff] }
  0x39   : > { %3502 = vmatprep.mubr.bf16.mxu0 %v741_v59  ;;  %3542 = vmatprep.mubr.bf16.mxu1 %v689_v60  ;;  %655 = vst [vmem:[#allocation2 + $0xbf] sm:$0x2] %v4377_v23  ;;  %653 = vst [vmem:[#allocation2 + $0xc1] sm:$0xff] %v4377_v23  ;;  %v4413_v59 = vld [vmem:[#allocation2 + $0x80] sm:$0xff]  ;;  %v4415_v60 = vld [vmem:[#allocation2 + $0x88] sm:$0xff] }
  0x3a   : > { %3564 = vmatprep.subr.bf16.mxu0 %v3915_v1  ;;  %3603 = vmatpush3.bf16.msra.mxu1 %v3918_v49  ;;  %v3923_v49 = vld [vmem:[%s5129_s5 + $0xd0] sm:$0xff]   ;;  %v4417_v61 = vld [vmem:[#allocation2 + $0xa1] sm:$0xff] }
  0x3b   : > { %3604 = vmatprep.subr.bf16.mxu1 %v3919_v6  ;;  %v3932_v24 = vld [vmem:[%s5129_s5 + $0x170] sm:$0xff]  }
  0x3c   : > { %3565 = vmatpush3.bf16.msra.mxu0 %v3915_v1  ;;  %v3924_v1 = vld [vmem:[%s5129_s5 + $0xc8] sm:$0xff]  }
  0x3d   : > { %3566 = vmatprep.subr.bf16.mxu0 %v3917_v15 }
  0x3e   : > { %3605 = vmatpush3.bf16.msra.mxu1 %v3919_v6  ;;  %v692_v6 = vpack.c.bf16 %v4411_v54, %v4406_v51 }
  0x3f   : > { %3503 = vmatmul.mubr.bf16.gmra.mxu0 %v742_v25  ;;  %3606 = vmatprep.subr.bf16.mxu1 %v3921_v26  ;;  %v4441_v25 = vld [vmem:[#allocation2 + $0x90] sm:$0xff] }
  0x40   : > { %3543 = vmatmul.mubr.bf16.gmra.mxu1 %v690_v28  ;;  %3506 = vmatprep.mubr.bf16.mxu0 %v743_v32  ;;  %v4421_v63 = vld [vmem:[#allocation2 + $0xb9] sm:$0xff] }
  0x41   : > { %3546 = vmatprep.mubr.bf16.mxu1 %v691_v33  ;;  %3567 = vmatpush3.bf16.msra.mxu0 %v3917_v15  ;;  %v4436_v15 = vpack.c.bf16 %v4415_v60, %v4413_v59  ;;  %v3926_v28 = vld [vmem:[%s5129_s5 + $0xc0] sm:$0xff]   ;;  %v3927_v33 = vld [vmem:[%s5129_s5 + $0x138] sm:$0xff]  }
  0x42   : > { %3568 = vmatprep.subr.bf16.mxu0 %v3920_v47  ;;  %3607 = vmatpush3.bf16.msra.mxu1 %v3921_v26  ;;  %v4443_v26 = vld [vmem:[#allocation2 + $0x98] sm:$0xff]  ;;  %v4448_v32 = vld [vmem:[#allocation2 + $0xa0] sm:$0xff] }
  0x43   : > { %3608 = vmatprep.subr.bf16.mxu1 %v3923_v49  ;;  %v4520_v31 = vld [vmem:[#allocation2 + $0xc0] sm:$0xff] }
  0x45   : > { %3569 = vmatpush3.bf16.msra.mxu0 %v3920_v47  ;;  %v4454_v47 = vld [vmem:[#allocation2 + $0xa8] sm:$0xff] }
  0x46   : > { %3570 = vmatprep.subr.bf16.mxu0 %v3922_v53  ;;  %3609 = vmatpush3.bf16.msra.mxu1 %v3923_v49  ;;  %v746_v49 = vpack.c.bf16 %v4304_v35, %v4302_v34 }
  0x47   : > { %3507 = vmatmul.mubr.bf16.gmra.mxu0 %v744_v62  ;;  %3610 = vmatprep.subr.bf16.mxu1 %v3924_v1  ;;  %v3930_v62 = vld [vmem:[%s5129_s5 + $0x178] sm:$0xff]  }
  0x48   : > { %3547 = vmatmul.mubr.bf16.gmra.mxu1 %v692_v6  ;;  %3510 = vmatprep.mubr.bf16.mxu0 %v745_v7  ;;  %v4465_v6 = vpack.c.bf16 %v4369_v19, %v4417_v61  ;;  %v4472_v7 = vld [vmem:[#allocation2 + $0xb0] sm:$0xff] }
  0x49   : > { %3550 = vmatprep.mubr.bf16.mxu1 %v4436_v15  ;;  %3571 = vmatpush3.bf16.msra.mxu0 %v3922_v53  ;;  %v694_v53 = vpack.c.bf16 %v4443_v26, %v4441_v25 }
  0x4a   : > { %3611 = vmatpush3.bf16.msra.mxu1 %v3924_v1  ;;  %3572 = vmatprep.subr.bf16.mxu0 %v3925_v16  ;;  %5142 = vst [vmem:[#allocation3_spill] sm:$0xff] %v4465_v6  ;;  %v4469_v1 = vpack.c.bf16 %v4454_v47, %v4448_v32 }
  0x4b   : > { %3612 = vmatprep.subr.bf16.mxu1 %v3926_v28 }
  0x4d   : > { %3573 = vmatpush3.bf16.msra.mxu0 %v3925_v16  ;;  %v4481_v16 = vpack.c.bf16 %v4421_v63, %v4371_v20 }
  0x4e   : > { %3613 = vmatpush3.bf16.msra.mxu1 %v3926_v28  ;;  %3638 = vmatprep.subr.bf16.mxu0 %v3927_v33  ;;  %v4485_v28 = vpack.c.bf16 %v4475_v4, %v4472_v7 }
  0x4f   : > { %3511 = vmatmul.mubr.bf16.gmra.mxu0 %v746_v49  ;;  %3678 = vmatprep.subr.bf16.mxu1 %v3930_v62  ;;  %5143 = vst [vmem:[#allocation4_spill] sm:$0xff] %v4481_v16  ;;  %v1128_v49 = vpack.c.bf16 %v1105_v27, %v1104_v8  ;;  %v4498_v27 = vld [vmem:[#allocation2 + $0x22] sm:$0xff]  ;;  %v3928_v8 = vld [vmem:[%s5129_s5 + $0x130] sm:$0xff]  }
  0x50   : > { %3551 = vmatmul.mubr.bf16.gmra.mxu1 %v694_v53  ;;  %3514 = vmatprep.mubr.bf16.mxu0 %v4465_v6  ;;  %5144 = vst [vmem:[#allocation5_spill] sm:$0xff] %v4485_v28  ;;  %v565_v53 = vadd.f32 %v4155_v13, %v549_v50  ;;  %v4500_v50 = vld [vmem:[#allocation2 + $0x2a] sm:$0xff] }
  0x51   : > { %3554 = vmatprep.mubr.bf16.mxu1 %v4469_v1  ;;  %v4652_v6 = vld [vmem:[#allocation2 + $0xaa] sm:$0xff] }
  0x52   : > { %v4490_v43 = vmax.f32 %v565_v53, 0.0  ;;  %v4513_v53 = vld [vmem:[#allocation2 + $0x32] sm:$0xff] }
  0x54   : > { %654 = vst [vmem:[#allocation2 + $0xc9] sm:$0xff] %v4490_v43  ;;  %656 = vst [vmem:[#allocation2 + $0xcb] sm:$0x40] %v4490_v43 }
  0x57   : > { %3515 = vmatmul.mubr.bf16.gmra.mxu0 %v4481_v16 }
  0x58   : > { %3555 = vmatmul.mubr.bf16.gmra.mxu1 %v4485_v28  ;;  %3574 = vmatprep.mubr.bf16.mxu0 %v1128_v49  ;;  %v1130_v49 = vpack.c.bf16 %v4500_v50, %v4498_v27  ;;  %v3931_v28 = vld [vmem:[%s5129_s5 + $0x120] sm:$0xff]  }
  0x59   : > { %3614 = vmatprep.mubr.bf16.mxu1 %v1366_v56  ;;  %v1368_v56 = vpack.c.bf16 %v4318_v39, %v4306_v36  ;;  %v4529_v36 = vld [vmem:[#allocation2 + $0x3a] sm:$0xff]  ;;  %v1370_v39 = vpack.c.bf16 %v4373_v21, %v4365_v17  ;;  %v4571_v21 = vld [vmem:[#allocation2 + $0x62] sm:$0xff] }
  0x5a   : > { %v4569_v17 = vld [vmem:[#allocation2 + $0x5a] sm:$0xff] }
  0x5b   : > { %v4522_v42 = vld [vmem:[#allocation2 + $0xc8] sm:$0xff] }
  0x5f   : > { %3575 = vmatmul.mubr.bf16.vlgmr.msra.gmra.mxu0 %v1129_v2  ;;  %v3929_v2 = vld [vmem:[%s5129_s5 + $0x128] sm:$0xff]  }
  0x60   : > { %3615 = vmatmul.mubr.bf16.vlgmr.msra.gmra.mxu1 %v1367_v10  ;;  %3639 = vmatpush3.bf16.msra.mxu0 %v3927_v33  ;;  %v4543_v33 = vpack.c.bf16 %v4529_v36, %v4513_v53  ;;  %v3934_v10 = vld [vmem:[%s5129_s5 + $0x168] sm:$0xff]  }
  0x61   : > { %3640 = vmatprep.subr.bf16.mxu0 %v3928_v8  ;;  %3578 = vmatprep.mubr.bf16.mxu0 %v1130_v49  ;;  %v584_v49 = vmul.f32 %v4150_v12, %v582_v55  ;;  %v4562_v55 = vld [vmem:[#allocation2 + $0x52] sm:$0xff] }
  0x62   : > { %3618 = vmatprep.mubr.bf16.mxu1 %v1368_v56  ;;  %3679 = vmatpush3.bf16.msra.mxu1 %v3930_v62  ;;  %5145 = vst [vmem:[#allocation6_spill] sm:$0xff] %v4543_v33  ;;  %v1369_v56 = vpack.c.bf16 %v4359_v14, %v4320_v40  ;;  %v4553_v62 = vpack.c.bf16 %v4538_v41, %v4536_v11  ;;  %v3935_v40 = vld [vmem:[%s5129_s5 + $0x160] sm:$0xff]  }
  0x63   : > { %3680 = vmatprep.subr.bf16.mxu1 %v3932_v24  ;;  %v586_v16 = vadd.f32 %v4155_v13, %v584_v49 }
  0x64   : > { %3641 = vmatpush3.bf16.msra.mxu0 %v3928_v8  ;;  %5146 = vst [vmem:[#allocation7_spill] sm:$0xff] %v4553_v62  ;;  %v4573_v8 = vld [vmem:[#allocation2 + $0x6a] sm:$0xff] }
  0x65   : > { %3642 = vmatprep.subr.bf16.mxu0 %v3929_v2  ;;  %v4567_v14 = vmax.f32 %v586_v16, 0.0  ;;  %v4583_v16 = vpack.c.bf16 %v4569_v17, %v4562_v55  ;;  %v4592_v49 = vpack.c.bf16 %v4573_v8, %v4571_v21 }
  0x66   : > { %3681 = vmatpush3.bf16.msra.mxu1 %v3932_v24  ;;  %v3933_v24 = vld [vmem:[%s5129_s5 + $0x118] sm:$0xff]  }
  0x67   : > { %3579 = vmatmul.mubr.bf16.gmra.mxu0 %v4543_v33  ;;  %3682 = vmatprep.subr.bf16.mxu1 %v3934_v10  ;;  %5147 = vst [vmem:[#allocation8_spill] sm:$0xff] %v4567_v14  ;;  %659 = vst [vmem:[#allocation2 + $0xd7] sm:$0x2] %v4567_v14  ;;  %v3941_v33 = vld [vmem:[%s5129_s5 + $0x100] sm:$0xff]  }
  0x68   : > { %3619 = vmatmul.mubr.bf16.gmra.mxu1 %v1369_v56  ;;  %3643 = vmatpush3.bf16.msra.mxu0 %v3929_v2  ;;  %657 = vst [vmem:[#allocation2 + $0xd9] sm:$0xff] %v4567_v14  ;;  %5148 = vst [vmem:[#allocation9_spill] sm:$0xff] %v4583_v16  ;;  %v3937_v2 = vld [vmem:[%s5129_s5 + $0x158] sm:$0xff]   ;;  %v3936_v56 = vld [vmem:[%s5129_s5 + $0x110] sm:$0xff]  }
  0x69   : > { %3582 = vmatprep.mubr.bf16.mxu0 %v4553_v62  ;;  %3622 = vmatprep.mubr.bf16.mxu1 %v1370_v39  ;;  %v1371_v39 = vpack.c.bf16 %v4406_v51, %v4375_v22  ;;  %5149 = vst [vmem:[#allocation10_spill] sm:$0xff] %v4592_v49  ;;  %v3939_v22 = vld [vmem:[%s5129_s5 + $0x150] sm:$0xff]   ;;  %v4650_v14 = vld [vmem:[#allocation2 + $0xa2] sm:$0xff] }
  0x6a   : > { %3644 = vmatprep.subr.bf16.mxu0 %v3931_v28  ;;  %3683 = vmatpush3.bf16.msra.mxu1 %v3934_v10  ;;  %v1372_v10 = vpack.c.bf16 %v4413_v59, %v4411_v54  ;;  %v4604_v51 = vld [vmem:[#allocation2 + $0x72] sm:$0xff]  ;;  %v4608_v54 = vld [vmem:[#allocation2 + $0x82] sm:$0xff]  ;;  %v4610_v59 = vld [vmem:[#allocation2 + $0x8a] sm:$0xff] }
  0x6b   : > { %3684 = vmatprep.subr.bf16.mxu1 %v3935_v40  ;;  %v4632_v62 = vld [vmem:[#allocation2 + $0xca] sm:$0xff] }
  0x6c   : > { %3645 = vmatpush3.bf16.msra.mxu0 %v3931_v28  ;;  %v4606_v28 = vld [vmem:[#allocation2 + $0x7a] sm:$0xff] }
  0x6d   : > { %3646 = vmatprep.subr.bf16.mxu0 %v3933_v24 }
  0x6e   : > { %3685 = vmatpush3.bf16.msra.mxu1 %v3935_v40  ;;  %v3938_v40 = vld [vmem:[%s5129_s5 + $0x108] sm:$0xff]  }
  0x6f   : > { %3583 = vmatmul.mubr.bf16.gmra.mxu0 %v4583_v16  ;;  %3686 = vmatprep.subr.bf16.mxu1 %v3937_v2  ;;  %v1374_v16 = vpack.c.bf16 %v4448_v32, %v4443_v26  ;;  %v583_v26 = vld [vmem:[%s4527_s20 + $0x8] sm:$0xff]  ;;  %v4645_v32 = vld [vmem:[#allocation2 + $0x92] sm:$0xff] }
  0x70   : > { %3623 = vmatmul.mubr.bf16.gmra.mxu1 %v1371_v39  ;;  %3586 = vmatprep.mubr.bf16.mxu0 %v4592_v49  ;;  %v4617_v39 = vpack.c.bf16 %v4606_v28, %v4604_v51  ;;  %v3940_v49 = vld [vmem:[%s5129_s5 + $0x148] sm:$0xff]  }
  0x71   : > { %3626 = vmatprep.mubr.bf16.mxu1 %v1372_v10  ;;  %3647 = vmatpush3.bf16.msra.mxu0 %v3933_v24  ;;  %v1373_v24 = vpack.c.bf16 %v4441_v25, %v4415_v60  ;;  %v4628_v10 = vld [vmem:[#allocation2 + $0xc2] sm:$0xff] }
  0x72   : > { %3648 = vmatprep.subr.bf16.mxu0 %v3936_v56  ;;  %3687 = vmatpush3.bf16.msra.mxu1 %v3937_v2  ;;  %v4626_v2 = vpack.c.bf16 %v4610_v59, %v4608_v54  ;;  %v3942_v60 = vld [vmem:[%s5129_s5 + $0x140] sm:$0xff]  }
  0x73   : > { %3688 = vmatprep.subr.bf16.mxu1 %v3939_v22 }
  0x74   : > { %5150 = vst [vmem:[#allocation11_spill] sm:$0xff] %v4626_v2 }
  0x75   : > { %3649 = vmatpush3.bf16.msra.mxu0 %v3936_v56  ;;  %v4647_v56 = vld [vmem:[#allocation2 + $0x9a] sm:$0xff] }
  0x76   : > { %3650 = vmatprep.subr.bf16.mxu0 %v3938_v40  ;;  %3689 = vmatpush3.bf16.msra.mxu1 %v3939_v22  ;;  %v585_v22 = vmul.f32 %v4150_v12, %v583_v26  ;;  %v3946_v12 = vld [vmem:[%s5129_s5 + $0x1f8] sm:$0xff]   ;;  %v5151_v26 = vpack.c.bf16 %v4209_v44, %v4187_v30  ;;  %v3948_v30 = vld [vmem:[%s5129_s5 + $0x1f0] sm:$0xff]   ;;  %v5153_v44 = vpack.c.bf16 %v4308_v37, %v4213_v46  ;;  %v3947_v37 = vld [vmem:[%s5129_s5 + $0x1a0] sm:$0xff]  }
  0x77   : > { %3587 = vmatmul.mubr.bf16.gmra.mxu0 %v4617_v39  ;;  %3690 = vmatprep.subr.bf16.mxu1 %v3940_v49  ;;  %v1846_v46 = vpack.c.bf16 %v4571_v21, %v4569_v17  ;;  %v5157_v17 = vpack.c.bf16 %v4292_v29, %v4263_v5  ;;  %v3954_v21 = vld [vmem:[%s5129_s5 + $0x188] sm:$0xff]   ;;  %v1850_v5 = vpack.c.bf16 %v4650_v14, %v4647_v56  ;;  %v3957_v29 = vld [vmem:[%s5129_s5 + $0x180] sm:$0xff]  }
  0x78   : > { %3627 = vmatmul.mubr.bf16.gmra.mxu1 %v1373_v24  ;;  %3590 = vmatprep.mubr.bf16.mxu0 %v4626_v2  ;;  %v3943_v24 = vld [vmem:[%s5129_s5 + $0x1b8] sm:$0xff]   ;;  %v587_v25 = vadd.f32 %v4155_v13, %v585_v22  ;;  %v4660_v2 = vpack.c.bf16 %v4647_v56, %v4645_v32  ;;  %v1376_v13 = vpack.c.bf16 %v4520_v31, %v4475_v4 }
  0x79   : > { %3630 = vmatprep.mubr.bf16.mxu1 %v1374_v16  ;;  %3651 = vmatpush3.bf16.msra.mxu0 %v3938_v40  ;;  %v1375_v16 = vpack.c.bf16 %v4472_v7, %v4454_v47  ;;  %v4679_v47 = vld [vmem:[#allocation2 + $0xb2] sm:$0xff]  ;;  %v4681_v7 = vld [vmem:[#allocation2 + $0xba] sm:$0xff]  ;;  %v1843_v22 = vpack.c.bf16 %v4513_v53, %v4500_v50  ;;  %v5154_v50 = vpack.c.bf16 %v4233_v57, %v4224_v52 }
  0x7a   : > { %3691 = vmatpush3.bf16.msra.mxu1 %v3940_v49  ;;  %3652 = vmatprep.subr.bf16.mxu0 %v3941_v33  ;;  %v4669_v49 = vpack.c.bf16 %v4652_v6, %v4650_v14  ;;  %v4671_v40 = vmax.f32 %v587_v25, 0.0  ;;  %v4683_v25 = vld [vmem:[#allocation2 + $0xd0] sm:$0xff]  ;;  %v4687_v4 = vpack.c.bf16 %v4681_v7, %v4679_v47  ;;  %v3951_v53 = vld [vmem:[%s5129_s5 + $0x1e0] sm:$0xff]   ;;  %v3953_v52 = vld [vmem:[%s5129_s5 + $0x1d8] sm:$0xff]   ;;  %v1847_v57 = vpack.c.bf16 %v4604_v51, %v4573_v8 }
  0x7b   : > { %3692 = vmatprep.subr.bf16.mxu1 %v3942_v60  ;;  %v5158_v8 = vpack.c.bf16 %v4302_v34, %v4367_v18  ;;  %v3958_v51 = vld [vmem:[%s5129_s5 + $0x1c0] sm:$0xff]   ;;  %v5159_v14 = vpack.c.bf16 %v4417_v61, %v4304_v35  ;;  %v1851_v34 = vpack.c.bf16 %v4679_v47, %v4652_v6  ;;  %v1852_v18 = vpack.c.bf16 %v4628_v10, %v4681_v7  ;;  %v4794_v6 = vld [vmem:[#allocation2 + $0xd2] sm:$0xff]  ;;  %v2059_v7 = vld [vmem:[#allocation2 + $0x48] sm:$0xff] }
  0x7c   : > { %658 = vst [vmem:[#allocation2 + $0xe1] sm:$0xff] %v4671_v40  ;;  %660 = vst [vmem:[#allocation2 + $0xe3] sm:$0x40] %v4671_v40  ;;  %v5160_v35 = vpack.c.bf16 %v4371_v20, %v4369_v19  ;;  %v5161_v61 = vpack.c.bf16 %v4377_v23, %v4421_v63  ;;  %v2294_v56 = vld [vmem:[#allocation2 + $0x31] sm:$0xff]  ;;  %v1853_v19 = vpack.c.bf16 %v4794_v6, %v4632_v62  ;;  %v2058_v63 = vld [vmem:[#allocation2 + $0x40] sm:$0xff] }
  0x7d   : > { %3653 = vmatpush3.bf16.msra.mxu0 %v3941_v33  ;;  %v1377_v33 = vpack.c.bf16 %v4683_v25, %v4522_v42 }
  0x7e   : > { %3693 = vmatpush3.bf16.msra.mxu1 %v3942_v60  ;;  %3718 = vmatprep.subr.bf16.mxu0 %v3943_v24  ;;  %v1842_v60 = vpack.c.bf16 %v4498_v27, %v4494_v0  ;;  %v5152_v0 = vpack.c.bf16 %v4211_v45, %v4268_v9  ;;  %v3945_v27 = vld [vmem:[%s5129_s5 + $0x1a8] sm:$0xff]   ;;  %v1845_v9 = vpack.c.bf16 %v4562_v55, %v4538_v41  ;;  %v3955_v55 = vld [vmem:[%s5129_s5 + $0x1d0] sm:$0xff]  }
  0x7f   : > { %3591 = vmatmul.mubr.bf16.gmra.mxu0 %v4660_v2  ;;  %3758 = vmatprep.subr.bf16.mxu1 %v3946_v12  ;;  %v3950_v45 = vld [vmem:[%s5129_s5 + $0x1e8] sm:$0xff]   ;;  %v5155_v41 = vpack.c.bf16 %v4235_v58, %v4312_v38  ;;  %v1848_v58 = vpack.c.bf16 %v4608_v54, %v4606_v28  ;;  %v3952_v38 = vld [vmem:[%s5129_s5 + $0x190] sm:$0xff]   ;;  %v3959_v28 = vld [vmem:[%s5129_s5 + $0x238] sm:$0xff]  }
  0x80   : > { %3631 = vmatmul.mubr.bf16.gmra.mxu1 %v1375_v16  ;;  %3594 = vmatprep.mubr.bf16.mxu0 %v4669_v49  ;;  %v3944_v16 = vld [vmem:[%s5129_s5 + $0x1b0] sm:$0xff]  }
  0x81   : > { %3634 = vmatprep.mubr.bf16.mxu1 %v1376_v13  ;;  %v1844_v13 = vpack.c.bf16 %v4536_v11, %v4529_v36  ;;  %v3949_v11 = vld [vmem:[%s5129_s5 + $0x198] sm:$0xff]   ;;  %v5156_v36 = vpack.c.bf16 %v4330_v48, %v4260_v3  ;;  %v3956_v3 = vld [vmem:[%s5129_s5 + $0x1c8] sm:$0xff]   ;;  %v1849_v48 = vpack.c.bf16 %v4645_v32, %v4610_v59  ;;  %v2056_v59 = vld [vmem:[#allocation2 + $0x30] sm:$0xff] }
  0x82   : > { %v4792_v54 = vld [vmem:[#allocation2 + $0xd1] sm:$0xff] }
  0x83   : > { %v2057_v32 = vld [vmem:[#allocation2 + $0x38] sm:$0xff] }
  0x84   : > { %v2080_v20 = vpack.c.bf16 %v2057_v32, %v2056_v59  ;;  %v5163_v59 = vld [vmem:[#allocation5_spill] sm:$0xff]  ;;  %v5164_v32 = vld [vmem:[#allocation4_spill] sm:$0xff] }
  0x87   : > { %3595 = vmatmul.mubr.bf16.gmra.mxu0 %v4687_v4 }
  0x88   : > { %3635 = vmatmul.mubr.bf16.gmra.mxu1 %v1377_v33  ;;  %3654 = vmatprep.mubr.bf16.mxu0 %v5151_v26  ;;  %v2296_v33 = vld [vmem:[#allocation2 + $0x41] sm:$0xff]  ;;  %v2060_v26 = vld [vmem:[#allocation2 + $0x50] sm:$0xff] }
  0x89   : > { %3694 = vmatprep.mubr.bf16.mxu1 %v1842_v60  ;;  %v2297_v60 = vld [vmem:[#allocation2 + $0x49] sm:$0xff] }
  0x8f   : > { %3655 = vmatmul.mubr.bf16.vlgmr.msra.gmra.mxu0 %v5152_v0  ;;  %v2299_v0 = vld [vmem:[#allocation2 + $0x59] sm:$0xff] }
  0x90   : > { %3695 = vmatmul.mubr.bf16.vlgmr.msra.gmra.mxu1 %v1843_v22  ;;  %3719 = vmatpush3.bf16.msra.mxu0 %v3943_v24  ;;  %v2295_v24 = vld [vmem:[#allocation2 + $0x39] sm:$0xff] }
  0x91   : > { %3720 = vmatprep.subr.bf16.mxu0 %v3944_v16  ;;  %3658 = vmatprep.mubr.bf16.mxu0 %v5153_v44  ;;  %v2318_v47 = vpack.c.bf16 %v2295_v24, %v2294_v56  ;;  %v2061_v22 = vld [vmem:[#allocation2 + $0x58] sm:$0xff]  ;;  %v3960_v44 = vld [vmem:[%s5129_s5 + $0x230] sm:$0xff]  }
  0x92   : > { %3698 = vmatprep.mubr.bf16.mxu1 %v1844_v13  ;;  %3759 = vmatpush3.bf16.msra.mxu1 %v3946_v12  ;;  %v1615_v12 = vpack.c.bf16 %v4792_v54, %v4490_v43  ;;  %v2298_v13 = vld [vmem:[#allocation2 + $0x51] sm:$0xff] }
  0x93   : > { %3760 = vmatprep.subr.bf16.mxu1 %v3948_v30  ;;  %v2077_v56 = vld [vmem:[#allocation2 + $0xd8] sm:$0xff] }
  0x94   : > { %3721 = vmatpush3.bf16.msra.mxu0 %v3944_v16  ;;  %v2081_v16 = vpack.c.bf16 %v2059_v7, %v2058_v63  ;;  %v2090_v24 = vpack.c.bf16 %v2077_v56, %v4683_v25  ;;  %v2079_v63 = vld [vmem:[#allocation2 + $0xe8] sm:$0xff] }
  0x95   : > { %3722 = vmatprep.subr.bf16.mxu0 %v3945_v27  ;;  %v2317_v7 = vld [vmem:[#allocation2 + $0xe9] sm:$0xff] }
  0x96   : > { %3761 = vmatpush3.bf16.msra.mxu1 %v3948_v30  ;;  %v2319_v30 = vpack.c.bf16 %v2297_v60, %v2296_v33  ;;  %v2329_v25 = vpack.c.bf16 %v2317_v7, %v4671_v40 }
  0x97   : > { %3659 = vmatmul.mubr.bf16.gmra.mxu0 %v5154_v50  ;;  %3762 = vmatprep.subr.bf16.mxu1 %v3950_v45  ;;  %v2301_v50 = vld [vmem:[#allocation2 + $0x69] sm:$0xff] }
  0x98   : > { %3699 = vmatmul.mubr.bf16.gmra.mxu1 %v1845_v9  ;;  %3723 = vmatpush3.bf16.msra.mxu0 %v3945_v27  ;;  %v2082_v27 = vpack.c.bf16 %v2061_v22, %v2060_v26  ;;  %v2062_v9 = vld [vmem:[#allocation2 + $0x60] sm:$0xff] }
  0x99   : > { %3662 = vmatprep.mubr.bf16.mxu0 %v5155_v41  ;;  %3702 = vmatprep.mubr.bf16.mxu1 %v1846_v46  ;;  %v2063_v46 = vld [vmem:[#allocation2 + $0x68] sm:$0xff]  ;;  %v2064_v41 = vld [vmem:[#allocation2 + $0x70] sm:$0xff]  ;;  %v2553_v22 = vld [vmem:[#allocation2 + $0xda] sm:$0xff] }
  0x9a   : > { %3724 = vmatprep.subr.bf16.mxu0 %v3947_v37  ;;  %3763 = vmatpush3.bf16.msra.mxu1 %v3950_v45  ;;  %v2320_v45 = vpack.c.bf16 %v2299_v0, %v2298_v13 }
  0x9b   : > { %3764 = vmatprep.subr.bf16.mxu1 %v3951_v53 }
  0x9c   : > { %3725 = vmatpush3.bf16.msra.mxu0 %v3947_v37  ;;  %v2300_v37 = vld [vmem:[#allocation2 + $0x61] sm:$0xff] }
  0x9d   : > { %3726 = vmatprep.subr.bf16.mxu0 %v3949_v11 }
  0x9e   : > { %3765 = vmatpush3.bf16.msra.mxu1 %v3951_v53  ;;  %v3961_v53 = vld [vmem:[%s5129_s5 + $0x228] sm:$0xff]  }
  0x9f   : > { %3663 = vmatmul.mubr.bf16.gmra.mxu0 %v5156_v36  ;;  %3766 = vmatprep.subr.bf16.mxu1 %v3953_v52 }
  0xa0   : > { %3703 = vmatmul.mubr.bf16.gmra.mxu1 %v1847_v57  ;;  %3666 = vmatprep.mubr.bf16.mxu0 %v5157_v17  ;;  %v2303_v57 = vld [vmem:[#allocation2 + $0x79] sm:$0xff] }
  0xa1   : > { %3706 = vmatprep.mubr.bf16.mxu1 %v1848_v58  ;;  %3727 = vmatpush3.bf16.msra.mxu0 %v3949_v11  ;;  %v2065_v11 = vld [vmem:[#allocation2 + $0x78] sm:$0xff]  ;;  %v2083_v58 = vpack.c.bf16 %v2063_v46, %v2062_v9  ;;  %v3962_v17 = vld [vmem:[%s5129_s5 + $0x220] sm:$0xff]  }
  0xa2   : > { %3728 = vmatprep.subr.bf16.mxu0 %v3952_v38  ;;  %3767 = vmatpush3.bf16.msra.mxu1 %v3953_v52  ;;  %v2302_v52 = vld [vmem:[#allocation2 + $0x71] sm:$0xff]  ;;  %v2084_v36 = vpack.c.bf16 %v2065_v11, %v2064_v41 }
  0xa3   : > { %3768 = vmatprep.subr.bf16.mxu1 %v3955_v55 }
  0xa5   : > { %3729 = vmatpush3.bf16.msra.mxu0 %v3952_v38  ;;  %v2321_v38 = vpack.c.bf16 %v2301_v50, %v2300_v37  ;;  %v2554_v50 = vld [vmem:[#allocation2 + $0xe2] sm:$0xff] }
  0xa6   : > { %3730 = vmatprep.subr.bf16.mxu0 %v3954_v21  ;;  %3769 = vmatpush3.bf16.msra.mxu1 %v3955_v55  ;;  %v2322_v55 = vpack.c.bf16 %v2303_v57, %v2302_v52 }
  0xa7   : > { %3667 = vmatmul.mubr.bf16.gmra.mxu0 %v5158_v8  ;;  %3770 = vmatprep.subr.bf16.mxu1 %v3956_v3  ;;  %v2306_v8 = vld [vmem:[#allocation2 + $0x91] sm:$0xff] }
  0xa8   : > { %3707 = vmatmul.mubr.bf16.gmra.mxu1 %v1849_v48  ;;  %3670 = vmatprep.mubr.bf16.mxu0 %v5159_v14  ;;  %v2068_v48 = vld [vmem:[#allocation2 + $0x90] sm:$0xff] }
  0xa9   : > { %3710 = vmatprep.mubr.bf16.mxu1 %v1850_v5  ;;  %3731 = vmatpush3.bf16.msra.mxu0 %v3954_v21  ;;  %v2304_v21 = vld [vmem:[#allocation2 + $0x81] sm:$0xff]  ;;  %v2069_v5 = vld [vmem:[#allocation2 + $0x98] sm:$0xff] }
  0xaa   : > { %3771 = vmatpush3.bf16.msra.mxu1 %v3956_v3  ;;  %3732 = vmatprep.subr.bf16.mxu0 %v3957_v29  ;;  %v2305_v3 = vld [vmem:[#allocation2 + $0x89] sm:$0xff] }
  0xab   : > { %3772 = vmatprep.subr.bf16.mxu1 %v3958_v51  ;;  %v2323_v14 = vpack.c.bf16 %v2305_v3, %v2304_v21 }
  0xad   : > { %3733 = vmatpush3.bf16.msra.mxu0 %v3957_v29  ;;  %v3963_v29 = vld [vmem:[%s5129_s5 + $0x218] sm:$0xff]  }
  0xae   : > { %3773 = vmatpush3.bf16.msra.mxu1 %v3958_v51  ;;  %3798 = vmatprep.subr.bf16.mxu0 %v3959_v28  ;;  %v2307_v51 = vld [vmem:[#allocation2 + $0x99] sm:$0xff] }
  0xaf   : > { %3671 = vmatmul.mubr.bf16.gmra.mxu0 %v5160_v35  ;;  %3838 = vmatprep.subr.bf16.mxu1 %v3959_v28  ;;  %v3965_v35 = vld [vmem:[%s5129_s5 + $0x208] sm:$0xff]  }
  0xb0   : > { %3711 = vmatmul.mubr.bf16.gmra.mxu1 %v1851_v34  ;;  %3674 = vmatprep.mubr.bf16.mxu0 %v5161_v61  ;;  %v2324_v34 = vpack.c.bf16 %v2307_v51, %v2306_v8  ;;  %v3966_v61 = vld [vmem:[%s5129_s5 + $0x200] sm:$0xff]  }
  0xb1   : > { %3714 = vmatprep.mubr.bf16.mxu1 %v1852_v18  ;;  %v3964_v18 = vld [vmem:[%s5129_s5 + $0x210] sm:$0xff]  }
  0xb7   : > { %3675 = vmatmul.mubr.bf16.gmra.mxu0 %v1615_v12  ;;  %v5165_v12 = vld [vmem:[#allocation8_spill] sm:$0xff] }
  0xb8   : > { %3715 = vmatmul.mubr.bf16.gmra.mxu1 %v1853_v19  ;;  %3734 = vmatprep.mubr.bf16.mxu0 %v2080_v20  ;;  %v2328_v19 = vpack.c.bf16 %v5165_v12, %v4792_v54  ;;  %v5167_v20 = vpack.c.bf16 %v4490_v43, %v4377_v23  ;;  %v5168_v54 = vld [vmem:[#allocation6_spill] sm:$0xff]  ;;  %v5170_v43 = vld [vmem:[#allocation9_spill] sm:$0xff] }
  0xb9   : > { %3774 = vmatprep.mubr.bf16.mxu1 %v2318_v47  ;;  %v2078_v47 = vld [vmem:[#allocation2 + $0xe0] sm:$0xff] }
  0xba   : > { %v2091_v33 = vpack.c.bf16 %v2079_v63, %v2078_v47 }
  0xbf   : > { %3735 = vmatmul.mubr.bf16.vlgmr.msra.gmra.mxu0 %v2081_v16 }
  0xc0   : > { %3775 = vmatmul.mubr.bf16.vlgmr.msra.gmra.mxu1 %v2319_v30  ;;  %3799 = vmatpush3.bf16.msra.mxu0 %v3959_v28  ;;  %v2566_v30 = vpack.c.bf16 %v2553_v22, %v4794_v6 }
  0xc1   : > { %3800 = vmatprep.subr.bf16.mxu0 %v3960_v44  ;;  %3738 = vmatprep.mubr.bf16.mxu0 %v2082_v27 }
  0xc2   : > { %3778 = vmatprep.mubr.bf16.mxu1 %v2320_v45  ;;  %3846 = vmatpush3.bf16.msra.mxu1 %v3959_v28  ;;  %v2086_v28 = vpack.c.bf16 %v2069_v5, %v2068_v48  ;;  %v5171_v45 = vld [vmem:[#allocation10_spill] sm:$0xff] }
  0xc3   : > { %3839 = vmatprep.subr.bf16.mxu1 %v3960_v44 }
  0xc4   : > { %3801 = vmatpush3.bf16.msra.mxu0 %v3960_v44 }
  0xc5   : > { %3802 = vmatprep.subr.bf16.mxu0 %v3961_v53 }
  0xc6   : > { %3847 = vmatpush3.bf16.msra.mxu1 %v3960_v44 }
  0xc7   : > { %3739 = vmatmul.mubr.bf16.gmra.mxu0 %v2083_v58  ;;  %3840 = vmatprep.subr.bf16.mxu1 %v3961_v53 }
  0xc8   : > { %3779 = vmatmul.mubr.bf16.gmra.mxu1 %v2321_v38  ;;  %3803 = vmatpush3.bf16.msra.mxu0 %v3961_v53 }
  0xc9   : > { %3742 = vmatprep.mubr.bf16.mxu0 %v2084_v36  ;;  %3782 = vmatprep.mubr.bf16.mxu1 %v2322_v55 }
  0xca   : > { %3804 = vmatprep.subr.bf16.mxu0 %v3962_v17  ;;  %3848 = vmatpush3.bf16.msra.mxu1 %v3961_v53  ;;  %v2555_v53 = vld [vmem:[#allocation2 + $0xea] sm:$0xff] }
  0xcb   : > { %3841 = vmatprep.subr.bf16.mxu1 %v3962_v17  ;;  %v2567_v57 = vpack.c.bf16 %v2555_v53, %v2554_v50 }
  0xcc   : > { %3805 = vmatpush3.bf16.msra.mxu0 %v3962_v17 }
  0xcd   : > { %3806 = vmatprep.subr.bf16.mxu0 %v3963_v29 }
  0xce   : > { %3849 = vmatpush3.bf16.msra.mxu1 %v3962_v17 }
  0xcf   : > { %3743 = vmatmul.mubr.bf16.gmra.mxu0 %v4436_v15  ;;  %3842 = vmatprep.subr.bf16.mxu1 %v3963_v29  ;;  %v5162_v15 = vld [vmem:[#allocation3_spill] sm:$0xff] }
  0xd0   : > { %3783 = vmatmul.mubr.bf16.gmra.mxu1 %v2323_v14  ;;  %3746 = vmatprep.mubr.bf16.mxu0 %v2086_v28 }
  0xd1   : > { %3786 = vmatprep.mubr.bf16.mxu1 %v2324_v34  ;;  %3807 = vmatpush3.bf16.msra.mxu0 %v3963_v29 }
  0xd2   : > { %3808 = vmatprep.subr.bf16.mxu0 %v3964_v18  ;;  %3850 = vmatpush3.bf16.msra.mxu1 %v3963_v29 }
  0xd3   : > { %3843 = vmatprep.subr.bf16.mxu1 %v3964_v18 }
  0xd5   : > { %3809 = vmatpush3.bf16.msra.mxu0 %v3964_v18 }
  0xd6   : > { %3810 = vmatprep.subr.bf16.mxu0 %v3965_v35  ;;  %3851 = vmatpush3.bf16.msra.mxu1 %v3964_v18 }
  0xd7   : > { %3747 = vmatmul.mubr.bf16.gmra.mxu0 %v4469_v1  ;;  %3844 = vmatprep.subr.bf16.mxu1 %v3965_v35  ;;  %v5166_v1 = vpack.c.bf16 %v4522_v42, %v4520_v31  ;;  %v5169_v31 = vld [vmem:[#allocation7_spill] sm:$0xff] }
  0xd8   : > { %3787 = vmatmul.mubr.bf16.gmra.mxu1 %v5162_v15  ;;  %3750 = vmatprep.mubr.bf16.mxu0 %v5163_v59 }
  0xd9   : > { %3790 = vmatprep.mubr.bf16.mxu1 %v5164_v32  ;;  %3811 = vmatpush3.bf16.msra.mxu0 %v3965_v35 }
  0xda   : > { %3852 = vmatpush3.bf16.msra.mxu1 %v3965_v35  ;;  %3812 = vmatprep.subr.bf16.mxu0 %v3966_v61 }
  0xdb   : > { %3845 = vmatprep.subr.bf16.mxu1 %v3966_v61 }
  0xdd   : > { %3813 = vmatpush3.bf16.msra.mxu0 %v3966_v61 }
  0xde   : > { %3853 = vmatpush3.bf16.msra.mxu1 %v3966_v61 }
  0xdf   : > { %3751 = vmatmul.mubr.bf16.gmra.mxu0 %v5166_v1 }
  0xe0   : > { %3791 = vmatmul.mubr.bf16.gmra.mxu1 %v5167_v20  ;;  %3754 = vmatprep.mubr.bf16.mxu0 %v2090_v24 }
  0xe1   : > { %3794 = vmatprep.mubr.bf16.mxu1 %v2328_v19 }
  0xe7   : > { %3755 = vmatmul.mubr.bf16.gmra.mxu0 %v2091_v33 }
  0xe8   : > { %3795 = vmatmul.mubr.bf16.gmra.mxu1 %v2329_v25  ;;  %3814 = vmatprep.mubr.bf16.mxu0 %v5168_v54 }
  0xe9   : > { %3826 = vmatprep.mubr.bf16.mxu1 %v4660_v2 }
  0xef   : > { %v3496_v42 = vpop.f32.mrf.mxu0  ;;  %3815 = vmatmul.mubr.bf16.vlgmr.msra.gmra.mxu0 %v5169_v31 }
  0xf0   : > { %v3536_v60 = vpop.f32.mrf.mxu1  ;;  %3827 = vmatmul.mubr.bf16.vlgmr.msra.gmra.mxu1 %v4669_v49  ;;  %3818 = vmatprep.mubr.bf16.mxu0 %v5170_v43 }
  0xf1   : > { %v848_v23 = vpop.f32.mrf.mxu0  ;;  %3830 = vmatprep.mubr.bf16.mxu1 %v4687_v4  ;;  %v5172_v4 = vpack.c.bf16 %v4632_v62, %v4628_v10  ;;  %v5173_v10 = vld [vmem:[#allocation11_spill] sm:$0xff] }
  0xf2   : > { %v1017_v26 = vpop.f32.mrf.mxu1 }
  0xf3   : > { %v4842_v40 = vadd.f32 %v1017_v26, %v848_v23  ;;  %v3497_v16 = vpop.f32.mrf.mxu0 }
  0xf4   : > { %v3537_v13 = vpop.f32.mrf.mxu1 }
  0xf5   : > { %v4844_v0 = vadd.f32 %v3537_v13, %v3497_v16  ;;  %v851_v2 = vpop.f32.mrf.mxu0 }
  0xf6   : > { %v1020_v44 = vpop.f32.mrf.mxu1 }
  0xf7   : > { %v4847_v27 = vadd.f32 %v1020_v44, %v851_v2  ;;  %v3500_v49 = vpop.f32.mrf.mxu0  ;;  %3819 = vmatmul.mubr.bf16.gmra.mxu0 %v5171_v45 }
  0xf8   : > { %v3540_v9 = vpop.f32.mrf.mxu1  ;;  %3831 = vmatmul.mubr.bf16.gmra.mxu1 %v5172_v4  ;;  %3822 = vmatprep.mubr.bf16.mxu0 %v4617_v39 }
  0xf9   : > { %v4854_v46 = vadd.f32 %v3540_v9, %v3500_v49  ;;  %v863_v37 = vpop.f32.mrf.mxu0  ;;  %3834 = vmatprep.mubr.bf16.mxu1 %v2566_v30 }
  0xfa   : > { %v1032_v6 = vpop.f32.mrf.mxu1 }
  0xfb   : > { %v4856_v41 = vadd.f32 %v1032_v6, %v863_v37  ;;  %v3501_v11 = vpop.f32.mrf.mxu0 }
  0xfc   : > { %v3541_v52 = vpop.f32.mrf.mxu1 }
  0xfd   : > { %v4858_v58 = vadd.f32 %v3541_v52, %v3501_v11  ;;  %v866_v38 = vpop.f32.mrf.mxu0 }
  0xfe   : > { %v1035_v36 = vpop.f32.mrf.mxu1 }
  0xff   : > { %v3504_v62 = vpop.f32.mrf.mxu0  ;;  %3823 = vmatmul.mubr.bf16.gmra.mxu0 %v5173_v10 }
 0x100   : > { %v3544_v39 = vpop.f32.mrf.mxu1  ;;  %3835 = vmatmul.mubr.bf16.gmra.mxu1 %v2567_v57 }
 0x101   : > { %v4861_v55 = vadd.f32 %v3544_v39, %v3504_v62  ;;  %v878_v17 = vpop.f32.mrf.mxu0 }
 0x102   : > { %v1047_v21 = vpop.f32.mrf.mxu1 }
 0x103   : > { %v3505_v3 = vpop.f32.mrf.mxu0 }
 0x104   : > { %v3545_v48 = vpop.f32.mrf.mxu1 }
 0x105   : > { %v880_v5 = vpop.f32.mrf.mxu0 }
 0x106   : > { %v1049_v29 = vpop.f32.mrf.mxu1 }
 0x107   : > { %v4863_v8 = vadd.f32 %v1049_v29, %v880_v5  ;;  %v3508_v51 = vpop.f32.mrf.mxu0 }
 0x108   : > { %v3548_v14 = vpop.f32.mrf.mxu1 }
 0x109   : > { %v892_v28 = vpop.f32.mrf.mxu0 }
 0x10a   : > { %v1061_v34 = vpop.f32.mrf.mxu1 }
 0x10b   : > { %v4865_v18 = vadd.f32 %v1061_v34, %v892_v28  ;;  %v3509_v35 = vpop.f32.mrf.mxu0 }
 0x10c   : > { %v3549_v61 = vpop.f32.mrf.mxu1 }
 0x10d   : > { %v4867_v15 = vadd.f32 %v3549_v61, %v3509_v35  ;;  %v895_v59 = vpop.f32.mrf.mxu0 }
 0x10e   : > { %v1064_v32 = vpop.f32.mrf.mxu1 }
 0x10f   : > { %v4869_v56 = vadd.f32 %v1064_v32, %v895_v59  ;;  %v3512_v24 = vpop.f32.mrf.mxu0 }
 0x110   : > { %v3552_v12 = vpop.f32.mrf.mxu1 }
 0x111   : > { %v4871_v19 = vadd.f32 %v3552_v12, %v3512_v24  ;;  %v907_v1 = vpop.f32.mrf.mxu0 }
 0x112   : > { %v1076_v20 = vpop.f32.mrf.mxu1 }
 0x113   : > { %v4873_v47 = vadd.f32 %v1076_v20, %v907_v1  ;;  %v3513_v63 = vpop.f32.mrf.mxu0 }
 0x114   : > { %v3553_v7 = vpop.f32.mrf.mxu1 }
 0x115   : > { %v4875_v33 = vadd.f32 %v3553_v7, %v3513_v63  ;;  %v910_v25 = vpop.f32.mrf.mxu0 }
 0x116   : > { %v1079_v54 = vpop.f32.mrf.mxu1 }
 0x117   : > { %v3516_v42 = vpop.f32.mrf.mxu0 }
 0x118   : > { %v3556_v31 = vpop.f32.mrf.mxu1 }
 0x119   : > { %v4877_v60 = vadd.f32 %v3556_v31, %v3516_v42  ;;  %v922_v43 = vpop.f32.mrf.mxu0 }
 0x11a   : > { %v1091_v23 = vpop.f32.mrf.mxu1 }
 0x11b   : > { %v3517_v26 = vpop.f32.mrf.mxu0 }
 0x11c   : > { %v3557_v22 = vpop.f32.mrf.mxu1 }
 0x11d   : > { %v924_v16 = vpop.f32.mrf.mxu0 }
 0x11e   : > { %v1093_v13 = vpop.f32.mrf.mxu1 }
 0x11f   : > { %v4879_v2 = vadd.f32 %v1093_v13, %v924_v16  ;;  %v3576_v30 = vpop.f32.mrf.mxu0 }
 0x120   : > { %v3616_v44 = vpop.f32.mrf.mxu1 }
 0x121   : > { %v1239_v49 = vpop.f32.mrf.mxu0 }
 0x122   : > { %v1326_v45 = vadd.f32 %v1239_v49, %v4842_v40  ;;  %v1477_v9 = vpop.f32.mrf.mxu1 }
 0x123   : > { %v3577_v4 = vpop.f32.mrf.mxu0 }
 0x124   : > { %v4882_v37 = vadd.f32 %v1477_v9, %v1326_v45  ;;  %v1328_v50 = vadd.f32 %v3577_v4, %v4844_v0  ;;  %v3617_v53 = vpop.f32.mrf.mxu1 }
 0x125   : > { %v1242_v6 = vpop.f32.mrf.mxu0 }
 0x126   : > { %v4885_v11 = vadd.f32 %v3617_v53, %v1328_v50  ;;  %v1327_v52 = vadd.f32 %v1242_v6, %v4847_v27  ;;  %v1480_v57 = vpop.f32.mrf.mxu1 }
 0x127   : > { %v3580_v38 = vpop.f32.mrf.mxu0 }
 0x128   : > { %v4888_v36 = vadd.f32 %v1480_v57, %v1327_v52  ;;  %v1330_v62 = vadd.f32 %v3580_v38, %v4854_v46  ;;  %v3620_v10 = vpop.f32.mrf.mxu1 }
 0x129   : > { %v1254_v40 = vpop.f32.mrf.mxu0 }
 0x12a   : > { %v4891_v39 = vadd.f32 %v3620_v10, %v1330_v62  ;;  %v1329_v17 = vadd.f32 %v1254_v40, %v4856_v41  ;;  %v1492_v21 = vpop.f32.mrf.mxu1 }
 0x12b   : > { %v3581_v0 = vpop.f32.mrf.mxu0 }
 0x12c   : > { %v4894_v3 = vadd.f32 %v1492_v21, %v1329_v17  ;;  %v1331_v48 = vadd.f32 %v3581_v0, %v4858_v58  ;;  %v3621_v5 = vpop.f32.mrf.mxu1 }
 0x12d   : > { %v1257_v27 = vpop.f32.mrf.mxu0 }
 0x12e   : > { %v4897_v29 = vadd.f32 %v3621_v5, %v1331_v48  ;;  %v1495_v51 = vpop.f32.mrf.mxu1 }
 0x12f   : > { %v3584_v14 = vpop.f32.mrf.mxu0 }
 0x130   : > { %v1333_v46 = vadd.f32 %v3584_v14, %v4861_v55  ;;  %v3624_v28 = vpop.f32.mrf.mxu1 }
 0x131   : > { %v1269_v34 = vpop.f32.mrf.mxu0 }
 0x132   : > { %v4900_v35 = vadd.f32 %v3624_v28, %v1333_v46  ;;  %v1507_v61 = vpop.f32.mrf.mxu1 }
 0x133   : > { %v3585_v41 = vpop.f32.mrf.mxu0 }
 0x134   : > { %v3625_v59 = vpop.f32.mrf.mxu1 }
 0x135   : > { %v1271_v32 = vpop.f32.mrf.mxu0 }
 0x136   : > { %v1332_v24 = vadd.f32 %v1271_v32, %v4863_v8  ;;  %v1509_v12 = vpop.f32.mrf.mxu1 }
 0x137   : > { %v3588_v58 = vpop.f32.mrf.mxu0 }
 0x138   : > { %v4903_v1 = vadd.f32 %v1509_v12, %v1332_v24  ;;  %v3628_v20 = vpop.f32.mrf.mxu1 }
 0x139   : > { %v1283_v63 = vpop.f32.mrf.mxu0 }
 0x13a   : > { %v1334_v7 = vadd.f32 %v1283_v63, %v4865_v18  ;;  %v1521_v25 = vpop.f32.mrf.mxu1 }
 0x13b   : > { %v3589_v55 = vpop.f32.mrf.mxu0 }
 0x13c   : > { %v4906_v54 = vadd.f32 %v1521_v25, %v1334_v7  ;;  %v1336_v42 = vadd.f32 %v3589_v55, %v4867_v15  ;;  %v3629_v31 = vpop.f32.mrf.mxu1 }
 0x13d   : > { %v1286_v43 = vpop.f32.mrf.mxu0 }
 0x13e   : > { %v4909_v23 = vadd.f32 %v3629_v31, %v1336_v42  ;;  %v1335_v8 = vadd.f32 %v1286_v43, %v4869_v56  ;;  %v1524_v26 = vpop.f32.mrf.mxu1 }
 0x13f   : > { %v3592_v22 = vpop.f32.mrf.mxu0 }
 0x140   : > { %v4912_v16 = vadd.f32 %v1524_v26, %v1335_v8  ;;  %v1338_v13 = vadd.f32 %v3592_v22, %v4871_v19  ;;  %v3632_v30 = vpop.f32.mrf.mxu1 }
 0x141   : > { %v1298_v18 = vpop.f32.mrf.mxu0 }
 0x142   : > { %v4915_v44 = vadd.f32 %v3632_v30, %v1338_v13  ;;  %v1337_v49 = vadd.f32 %v1298_v18, %v4873_v47  ;;  %v1536_v45 = vpop.f32.mrf.mxu1 }
 0x143   : > { %v3593_v15 = vpop.f32.mrf.mxu0 }
 0x144   : > { %v4918_v9 = vadd.f32 %v1536_v45, %v1337_v49  ;;  %v1339_v4 = vadd.f32 %v3593_v15, %v4875_v33  ;;  %v3633_v50 = vpop.f32.mrf.mxu1 }
 0x145   : > { %v1301_v56 = vpop.f32.mrf.mxu0 }
 0x146   : > { %v4921_v53 = vadd.f32 %v3633_v50, %v1339_v4  ;;  %v1539_v6 = vpop.f32.mrf.mxu1 }
 0x147   : > { %v3596_v52 = vpop.f32.mrf.mxu0 }
 0x148   : > { %v1341_v19 = vadd.f32 %v3596_v52, %v4877_v60  ;;  %v3636_v57 = vpop.f32.mrf.mxu1 }
 0x149   : > { %v1313_v38 = vpop.f32.mrf.mxu0 }
 0x14a   : > { %v4924_v62 = vadd.f32 %v3636_v57, %v1341_v19  ;;  %v1551_v10 = vpop.f32.mrf.mxu1 }
 0x14b   : > { %v3597_v47 = vpop.f32.mrf.mxu0 }
 0x14c   : > { %v3637_v40 = vpop.f32.mrf.mxu1 }
 0x14d   : > { %v1315_v17 = vpop.f32.mrf.mxu0 }
 0x14e   : > { %v1340_v21 = vadd.f32 %v1315_v17, %v4879_v2  ;;  %v1553_v0 = vpop.f32.mrf.mxu1 }
 0x14f   : > { %v3656_v33 = vpop.f32.mrf.mxu0 }
 0x150   : > { %v4927_v48 = vadd.f32 %v1553_v0, %v1340_v21  ;;  %v3696_v5 = vpop.f32.mrf.mxu1 }
 0x151   : > { %v1715_v27 = vpop.f32.mrf.mxu0 }
 0x152   : > { %v1802_v51 = vadd.f32 %v1715_v27, %v4882_v37  ;;  %v1953_v14 = vpop.f32.mrf.mxu1 }
 0x153   : > { %v3657_v60 = vpop.f32.mrf.mxu0 }
 0x154   : > { %v4930_v46 = vadd.f32 %v1953_v14, %v1802_v51  ;;  %v1804_v28 = vadd.f32 %v3657_v60, %v4885_v11  ;;  %v3697_v34 = vpop.f32.mrf.mxu1 }
 0x155   : > { %v1718_v61 = vpop.f32.mrf.mxu0 }
 0x156   : > { %v4933_v41 = vadd.f32 %v3697_v34, %v1804_v28  ;;  %v1803_v2 = vadd.f32 %v1718_v61, %v4888_v36  ;;  %v1956_v59 = vpop.f32.mrf.mxu1 }
 0x157   : > { %v3660_v32 = vpop.f32.mrf.mxu0 }
 0x158   : > { %v4936_v24 = vadd.f32 %v1956_v59, %v1803_v2  ;;  %v1806_v12 = vadd.f32 %v3660_v32, %v4891_v39  ;;  %v3700_v58 = vpop.f32.mrf.mxu1 }
 0x159   : > { %v1730_v37 = vpop.f32.mrf.mxu0 }
 0x15a   : > { %v4939_v20 = vadd.f32 %v3700_v58, %v1806_v12  ;;  %v1805_v63 = vadd.f32 %v1730_v37, %v4894_v3  ;;  %v1968_v7 = vpop.f32.mrf.mxu1 }
 0x15b   : > { %v3661_v11 = vpop.f32.mrf.mxu0 }
 0x15c   : > { %v4942_v25 = vadd.f32 %v1968_v7, %v1805_v63  ;;  %v1807_v55 = vadd.f32 %v3661_v11, %v4897_v29  ;;  %v3701_v42 = vpop.f32.mrf.mxu1 }
 0x15d   : > { %v1733_v36 = vpop.f32.mrf.mxu0 }
 0x15e   : > { %v4945_v31 = vadd.f32 %v3701_v42, %v1807_v55  ;;  %v1971_v43 = vpop.f32.mrf.mxu1 }
 0x15f   : > { %v3664_v8 = vpop.f32.mrf.mxu0 }
 0x160   : > { %v1809_v39 = vadd.f32 %v3664_v8, %v4900_v35  ;;  %v3704_v26 = vpop.f32.mrf.mxu1 }
 0x161   : > { %v1745_v22 = vpop.f32.mrf.mxu0 }
 0x162   : > { %v4948_v13 = vadd.f32 %v3704_v26, %v1809_v39  ;;  %v1983_v30 = vpop.f32.mrf.mxu1 }
 0x163   : > { %v3665_v3 = vpop.f32.mrf.mxu0 }
 0x164   : > { %v3705_v18 = vpop.f32.mrf.mxu1 }
 0x165   : > { %v1747_v49 = vpop.f32.mrf.mxu0 }
 0x166   : > { %v1808_v45 = vadd.f32 %v1747_v49, %v4903_v1  ;;  %v1985_v15 = vpop.f32.mrf.mxu1 }
 0x167   : > { %v3668_v29 = vpop.f32.mrf.mxu0 }
 0x168   : > { %v4951_v4 = vadd.f32 %v1985_v15, %v1808_v45  ;;  %v3708_v50 = vpop.f32.mrf.mxu1 }
 0x169   : > { %v1759_v56 = vpop.f32.mrf.mxu0 }
 0x16a   : > { %v1810_v6 = vadd.f32 %v1759_v56, %v4906_v54  ;;  %v1997_v52 = vpop.f32.mrf.mxu1 }
 0x16b   : > { %v3669_v35 = vpop.f32.mrf.mxu0 }
 0x16c   : > { %v4954_v19 = vadd.f32 %v1997_v52, %v1810_v6  ;;  %v1812_v57 = vadd.f32 %v3669_v35, %v4909_v23  ;;  %v3709_v38 = vpop.f32.mrf.mxu1 }
 0x16d   : > { %v1762_v10 = vpop.f32.mrf.mxu0 }
 0x16e   : > { %v4957_v47 = vadd.f32 %v3709_v38, %v1812_v57  ;;  %v1811_v1 = vadd.f32 %v1762_v10, %v4912_v16  ;;  %v2000_v40 = vpop.f32.mrf.mxu1 }
 0x16f   : > { %v3672_v17 = vpop.f32.mrf.mxu0 }
 0x170   : > { %v4960_v21 = vadd.f32 %v2000_v40, %v1811_v1  ;;  %v1814_v0 = vadd.f32 %v3672_v17, %v4915_v44  ;;  %v3712_v33 = vpop.f32.mrf.mxu1 }
 0x171   : > { %v1774_v54 = vpop.f32.mrf.mxu0 }
 0x172   : > { %v4963_v5 = vadd.f32 %v3712_v33, %v1814_v0  ;;  %v1813_v27 = vadd.f32 %v1774_v54, %v4918_v9  ;;  %v2012_v51 = vpop.f32.mrf.mxu1 }
 0x173   : > { %v3673_v23 = vpop.f32.mrf.mxu0 }
 0x174   : > { %v4966_v14 = vadd.f32 %v2012_v51, %v1813_v27  ;;  %v1815_v60 = vadd.f32 %v3673_v23, %v4921_v53  ;;  %v3713_v28 = vpop.f32.mrf.mxu1 }
 0x175   : > { %v1777_v16 = vpop.f32.mrf.mxu0 }
 0x176   : > { %v4969_v34 = vadd.f32 %v3713_v28, %v1815_v60  ;;  %v2015_v61 = vpop.f32.mrf.mxu1 }
 0x177   : > { %v3676_v2 = vpop.f32.mrf.mxu0 }
 0x178   : > { %v1817_v44 = vadd.f32 %v3676_v2, %v4924_v62  ;;  %v3716_v59 = vpop.f32.mrf.mxu1 }
 0x179   : > { %v1789_v32 = vpop.f32.mrf.mxu0 }
 0x17a   : > { %v4972_v12 = vadd.f32 %v3716_v59, %v1817_v44  ;;  %v2027_v58 = vpop.f32.mrf.mxu1 }
 0x17b   : > { %v3677_v9 = vpop.f32.mrf.mxu0 }
 0x17c   : > { %v3717_v37 = vpop.f32.mrf.mxu1 }
 0x17d   : > { %v1791_v63 = vpop.f32.mrf.mxu0 }
 0x17e   : > { %v1816_v7 = vadd.f32 %v1791_v63, %v4927_v48  ;;  %v2029_v11 = vpop.f32.mrf.mxu1 }
 0x17f   : > { %v3736_v53 = vpop.f32.mrf.mxu0 }
 0x180   : > { %v4975_v55 = vadd.f32 %v2029_v11, %v1816_v7  ;;  %v3776_v42 = vpop.f32.mrf.mxu1 }
 0x181   : > { %v2191_v36 = vpop.f32.mrf.mxu0 }
 0x182   : > { %v2429_v43 = vpop.f32.mrf.mxu1  ;;  %v2278_v63 = vadd.f32 %v2191_v36, %v4930_v46 }
 0x183   : > { %v3737_v8 = vpop.f32.mrf.mxu0 }
 0x184   : > { %v3777_v39 = vpop.f32.mrf.mxu1  ;;  %v2280_v42 = vadd.f32 %v3737_v8, %v4933_v41 }
 0x185   : > { %v2194_v62 = vpop.f32.mrf.mxu0 }
 0x186   : > { %v4977_v26 = vpop.f32.mrf.mxu1  ;;  %v2518_v41 = vadd.f32 %v3777_v39, %v2280_v42 }
 0x187   : > { %v3740_v22 = vpop.f32.mrf.mxu0 }
 0x188   : > { %v4979_v30 = vpop.f32.mrf.mxu1  ;;  %v2282_v8 = vadd.f32 %v3740_v22, %v4939_v20 }
 0x189   : > { %v2206_v3 = vpop.f32.mrf.mxu0 }
 0x18a   : > { %v4981_v18 = vpop.f32.mrf.mxu1 }
 0x18b   : > { %v3741_v49 = vpop.f32.mrf.mxu0 }
 0x18c   : > { %v4983_v48 = vpop.f32.mrf.mxu1  ;;  %v2283_v20 = vadd.f32 %v3741_v49, %v4945_v31 }
 0x18d   : > { %v2209_v45 = vpop.f32.mrf.mxu0 }
 0x18e   : > { %v2447_v15 = vpop.f32.mrf.mxu1 }
 0x18f   : > { %v4985_v29 = vpop.f32.mrf.mxu0 }
 0x190   : > { %v4987_v50 = vpop.f32.mrf.mxu1 }
 0x191   : > { %v2221_v56 = vpop.f32.mrf.mxu0 }
 0x192   : > { %v2459_v6 = vpop.f32.mrf.mxu1 }
 0x193   : > { %v3745_v52 = vpop.f32.mrf.mxu0  ;;  %v2516_v6 = vadd.f32 %v2429_v43, %v2278_v63 }
 0x194   : > { %v3785_v35 = vpop.f32.mrf.mxu1  ;;  %v2279_v52 = vadd.f32 %v2194_v62, %v4936_v24 }
 0x195   : > { %v4989_v57 = vpop.f32.mrf.mxu0 }
 0x196   : > { %v4991_v38 = vpop.f32.mrf.mxu1  ;;  %v2517_v39 = vadd.f32 %v4977_v26, %v2279_v52 }
 0x197   : > { %v3748_v10 = vpop.f32.mrf.mxu0 }
 0x198   : > { %v3788_v1 = vpop.f32.mrf.mxu1 }
 0x199   : > { %v2235_v40 = vpop.f32.mrf.mxu0  ;;  %v2281_v1 = vadd.f32 %v2206_v3, %v4942_v25 }
 0x19a   : > { %v2473_v17 = vpop.f32.mrf.mxu1  ;;  %v2286_v11 = vadd.f32 %v2235_v40, %v4954_v19  ;;  %v5014_v19 = vld [vmem:[%s5130_s6] ss:$0 sm:$0xff] }
 0x19b   : > { %v3749_v0 = vpop.f32.mrf.mxu0  ;;  %v2519_v26 = vadd.f32 %v4981_v18, %v2281_v1  ;;  %v2285_v18 = vadd.f32 %v4985_v29, %v4948_v13 }
 0x19c   : > { %v3789_v33 = vpop.f32.mrf.mxu1  ;;  %v2288_v15 = vadd.f32 %v3749_v0, %v4957_v47  ;;  %v2524_v10 = vadd.f32 %v2473_v17, %v2286_v11 }
 0x19d   : > { %v2238_v54 = vpop.f32.mrf.mxu0 }
 0x19e   : > { %v2476_v27 = vpop.f32.mrf.mxu1  ;;  %v2287_v46 = vadd.f32 %v2238_v54, %v4960_v21  ;;  %v2526_v24 = vadd.f32 %v3789_v33, %v2288_v15 }
 0x19f   : > { %v3752_v51 = vpop.f32.mrf.mxu0 }
 0x1a0   : > { %v3792_v23 = vpop.f32.mrf.mxu1  ;;  %v2290_v21 = vadd.f32 %v3752_v51, %v4963_v5  ;;  %v2525_v17 = vadd.f32 %v2476_v27, %v2287_v46  ;;  %v2520_v51 = vadd.f32 %v4979_v30, %v2282_v8  ;;  %v2521_v30 = vadd.f32 %v4983_v48, %v2283_v20 }
 0x1a1   : > { %v2250_v60 = vpop.f32.mrf.mxu0 }
 0x1a2   : > { %v4993_v28 = vpop.f32.mrf.mxu1  ;;  %v2289_v0 = vadd.f32 %v2250_v60, %v4966_v14 }
 0x1a3   : > { %v3753_v16 = vpop.f32.mrf.mxu0 }
 0x1a4   : > { %v4995_v61 = vpop.f32.mrf.mxu1  ;;  %v2291_v27 = vadd.f32 %v3753_v16, %v4969_v34  ;;  %v2527_v34 = vadd.f32 %v4993_v28, %v2289_v0 }
 0x1a5   : > { %v2253_v2 = vpop.f32.mrf.mxu0 }
 0x1a6   : > { %v2491_v44 = vpop.f32.mrf.mxu1 }
 0x1a7   : > { %v4997_v59 = vpop.f32.mrf.mxu0  ;;  %v2528_v44 = vadd.f32 %v3792_v23, %v2290_v21 }
 0x1a8   : > { %v4999_v32 = vpop.f32.mrf.mxu1  ;;  %v2293_v28 = vadd.f32 %v4997_v59, %v4972_v12 }
 0x1a9   : > { %v2265_v58 = vpop.f32.mrf.mxu0 }
 0x1aa   : > { %v2503_v9 = vpop.f32.mrf.mxu1 }
 0x1ab   : > { %v3757_v37 = vpop.f32.mrf.mxu0 }
 0x1ac   : > { %v3797_v7 = vpop.f32.mrf.mxu1 }
 0x1ad   : > { %v5003_v53 = vpop.f32.mrf.mxu0 }
 0x1ae   : > { %v5006_v45 = vpop.f32.mrf.mxu1 }
 0x1af   : > { %v3816_v56 = vpop.f32.mrf.mxu0 }
 0x1b0   : > { %v3828_v35 = vpop.f32.mrf.mxu1  ;;  %v2529_v56 = vadd.f32 %v4995_v61, %v2291_v27 }
 0x1b1   : > { %v2667_v36 = vpop.f32.mrf.mxu0 }
 0x1b2   : > { %v2754_v47 = vadd.f32 %v2667_v36, %v2516_v6  ;;  %v2711_v40 = vpop.f32.mrf.mxu1 }
 0x1b3   : > { %v2762_v43 = vadd.f32 %v2711_v40, %v2524_v10  ;;  %v3817_v62 = vpop.f32.mrf.mxu0 }
 0x1b4   : > { %v2777_v25 = vadd.f32 %v5014_v19, %v2754_v47  ;;  %v2756_v22 = vadd.f32 %v3817_v62, %v2518_v41  ;;  %v3829_v3 = vpop.f32.mrf.mxu1  ;;  %v2523_v47 = vadd.f32 %v4987_v50, %v2285_v18  ;;  %v2284_v62 = vadd.f32 %v4989_v57, %v4951_v4 }
 0x1b5   : > { %v5031_v54 = vadd.f32 %v5014_v19, %v2762_v43  ;;  %v2764_v33 = vadd.f32 %v3829_v3, %v2526_v24  ;;  %v2670_v5 = vpop.f32.mrf.mxu0 }
 0x1b6   : > { %2793 = vst [vmem:[%s5023_s17] sm:$0xff] %v2777_v25  ;;  %v2779_v31 = vadd.f32 %v5014_v19, %v2756_v22  ;;  %v2755_v49 = vadd.f32 %v2670_v5, %v2517_v39  ;;  %v2714_v2 = vpop.f32.mrf.mxu1  ;;  %v2830_v16 = vmul.f32 %v2777_v25, %v2777_v25  ;;  %v2531_v39 = vadd.f32 %v4999_v32, %v2293_v28 }
 0x1b7   : > { %2801 = vst [vmem:[%s5023_s17 + $0x40] sm:$0xff] %v5031_v54  ;;  %v5041_v14 = vadd.f32 %v5014_v19, %v2764_v33  ;;  %v2763_v60 = vadd.f32 %v2714_v2, %v2525_v17  ;;  %v3820_v58 = vpop.f32.mrf.mxu0  ;;  %v2292_v5 = vadd.f32 %v5003_v53, %v4975_v55  ;;  %v2522_v27 = vadd.f32 %v4991_v38, %v2284_v62 }
 0x1b8   : > { %2795 = vst [vmem:[%s5023_s17 + $0x10] sm:$0xff] %v2779_v31  ;;  %v2778_v9 = vadd.f32 %v5014_v19, %v2755_v49  ;;  %v2758_v37 = vadd.f32 %v3820_v58, %v2520_v51  ;;  %v3832_v23 = vpop.f32.mrf.mxu1  ;;  %v2832_v10 = vmul.f32 %v2779_v31, %v2779_v31 }
 0x1b9   : > { %2803 = vst [vmem:[%s5023_s17 + $0x50] sm:$0xff] %v5041_v14  ;;  %v5052_v63 = vadd.f32 %v5014_v19, %v2763_v60  ;;  %v2766_v7 = vadd.f32 %v3832_v23, %v2528_v44  ;;  %v2682_v48 = vpop.f32.mrf.mxu0  ;;  %v2530_v53 = vadd.f32 %v5006_v45, %v2292_v5 }
 0x1ba   : > { %2794 = vst [vmem:[%s5023_s17 + $0x8] sm:$0xff] %v2778_v9  ;;  %v2809_v11 = vadd.f32 %v2778_v9, %v2777_v25  ;;  %v2831_v13 = vmul.f32 %v2778_v9, %v2778_v9  ;;  %v2781_v29 = vadd.f32 %v5014_v19, %v2758_v37  ;;  %v2757_v42 = vadd.f32 %v2682_v48, %v2519_v26  ;;  %v2726_v15 = vpop.f32.mrf.mxu1 }
 0x1bb   : > { %2802 = vst [vmem:[%s5023_s17 + $0x48] sm:$0xff] %v5052_v63  ;;  %v5062_v6 = vadd.f32 %v5014_v19, %v2766_v7  ;;  %v2765_v52 = vadd.f32 %v2726_v15, %v2527_v34  ;;  %v3821_v35 = vpop.f32.mrf.mxu0  ;;  %v2840_v15 = vmul.f32 %v5041_v14, %v5041_v14 }
 0x1bc   : > { %v2846_v46 = vadd.f32 %v2831_v13, %v2830_v16  ;;  %2797 = vst [vmem:[%s5023_s17 + $0x20] sm:$0xff] %v2781_v29  ;;  %v2780_v36 = vadd.f32 %v5014_v19, %v2757_v42  ;;  %v2810_v41 = vadd.f32 %v2809_v11, %v2779_v31  ;;  %v3833_v8 = vpop.f32.mrf.mxu1  ;;  %v2759_v61 = vadd.f32 %v3821_v35, %v2521_v30 }
 0x1bd   : > { %2805 = vst [vmem:[%s5023_s17 + $0x60] sm:$0xff] %v5062_v6  ;;  %v2788_v12 = vadd.f32 %v5014_v19, %v2765_v52  ;;  %v2767_v59 = vadd.f32 %v3833_v8, %v2529_v56  ;;  %v2685_v1 = vpop.f32.mrf.mxu0  ;;  %v2834_v3 = vmul.f32 %v2781_v29, %v2781_v29  ;;  %v2838_v11 = vmul.f32 %v5031_v54, %v5031_v54 }
 0x1be   : > { %2796 = vst [vmem:[%s5023_s17 + $0x18] sm:$0xff] %v2780_v36  ;;  %v2811_v40 = vadd.f32 %v2810_v41, %v2780_v36  ;;  %v2833_v24 = vmul.f32 %v2780_v36, %v2780_v36  ;;  %v2847_v21 = vadd.f32 %v2846_v46, %v2832_v10  ;;  %v2729_v43 = vpop.f32.mrf.mxu1  ;;  %v2782_v20 = vadd.f32 %v5014_v19, %v2759_v61 }
 0x1bf   : > { %2804 = vst [vmem:[%s5023_s17 + $0x58] sm:$0xff] %v2788_v12  ;;  %v2790_v25 = vadd.f32 %v5014_v19, %v2767_v59  ;;  %v3824_v22 = vpop.f32.mrf.mxu0  ;;  %v2841_v52 = vmul.f32 %v2788_v12, %v2788_v12 }
 0x1c0   : > { %v2848_v50 = vadd.f32 %v2847_v21, %v2833_v24  ;;  %v2812_v17 = vadd.f32 %v2811_v40, %v2781_v29  ;;  %v2761_v0 = vadd.f32 %v3824_v22, %v2523_v47  ;;  %v3836_v33 = vpop.f32.mrf.mxu1  ;;  %2798 = vst [vmem:[%s5023_s17 + $0x28] sm:$0xff] %v2782_v20  ;;  %v2835_v51 = vmul.f32 %v2782_v20, %v2782_v20 }
 0x1c1   : > { %2806 = vst [vmem:[%s5023_s17 + $0x68] sm:$0xff] %v2790_v25  ;;  %v2769_v4 = vadd.f32 %v3836_v33, %v2531_v39  ;;  %v2697_v57 = vpop.f32.mrf.mxu0  ;;  %v2839_v29 = vmul.f32 %v5052_v63, %v5052_v63  ;;  %v2843_v41 = vmul.f32 %v2790_v25, %v2790_v25 }
 0x1c2   : > { %v2813_v32 = vadd.f32 %v2812_v17, %v2782_v20  ;;  %v2849_v26 = vadd.f32 %v2848_v50, %v2834_v3  ;;  %v2784_v31 = vadd.f32 %v5014_v19, %v2761_v0  ;;  %v2741_v49 = vpop.f32.mrf.mxu1 }
 0x1c3   : > { %v2792_v2 = vadd.f32 %v5014_v19, %v2769_v4  ;;  %v3825_v44 = vpop.f32.mrf.mxu0 }
 0x1c4   : > { %v2850_v60 = vadd.f32 %v2849_v26, %v2835_v51  ;;  %2800 = vst [vmem:[%s5023_s17 + $0x38] sm:$0xff] %v2784_v31  ;;  %v3837_v55 = vpop.f32.mrf.mxu1  ;;  %v2837_v7 = vmul.f32 %v2784_v31, %v2784_v31 }
 0x1c5   : > { %2808 = vst [vmem:[%s5023_s17 + $0x78] sm:$0xff] %v2792_v2  ;;  %v2699_v58 = vpop.f32.mrf.mxu0  ;;  %v2845_v47 = vmul.f32 %v2792_v2, %v2792_v2 }
 0x1c6   : > { %v2760_v30 = vadd.f32 %v2699_v58, %v2522_v27  ;;  %v2743_v18 = vpop.f32.mrf.mxu1 }
 0x1c7   : > { %v2768_v9 = vadd.f32 %v2743_v18, %v2530_v53 }
 0x1c8   : > { %v2783_v37 = vadd.f32 %v5014_v19, %v2760_v30 }
 0x1c9   : > { %v2791_v23 = vadd.f32 %v5014_v19, %v2768_v9 }
 0x1ca   : > { %2799 = vst [vmem:[%s5023_s17 + $0x30] sm:$0xff] %v2783_v37  ;;  %v2814_v34 = vadd.f32 %v2813_v32, %v2783_v37  ;;  %v2836_v16 = vmul.f32 %v2783_v37, %v2783_v37 }
 0x1cb   : > { %2807 = vst [vmem:[%s5023_s17 + $0x70] sm:$0xff] %v2791_v23  ;;  %v2844_v59 = vmul.f32 %v2791_v23, %v2791_v23 }
 0x1cc   : > { %v2815_v38 = vadd.f32 %v2814_v34, %v2784_v31  ;;  %v2851_v48 = vadd.f32 %v2850_v60, %v2836_v16 }
 0x1ce   : > { %v2816_v45 = vadd.f32 %v2815_v38, %v5031_v54  ;;  %v2852_v13 = vadd.f32 %v2851_v48, %v2837_v7  ;;  %v2842_v54 = vmul.f32 %v5062_v6, %v5062_v6 }
 0x1d0   : > { %v2817_v42 = vadd.f32 %v2816_v45, %v5052_v63  ;;  %v2853_v19 = vadd.f32 %v2852_v13, %v2838_v11 }
 0x1d2   : > { %v2854_v56 = vadd.f32 %v2853_v19, %v2839_v29  ;;  %v2818_v28 = vadd.f32 %v2817_v42, %v5041_v14 }
 0x1d4   : > { %v2819_v35 = vadd.f32 %v2818_v28, %v2788_v12  ;;  %v2855_v10 = vadd.f32 %v2854_v56, %v2840_v15 }
 0x1d6   : > { %v2820_v46 = vadd.f32 %v2819_v35, %v5062_v6  ;;  %v2856_v36 = vadd.f32 %v2855_v10, %v2841_v52 }
 0x1d8   : > { %v2821_v63 = vadd.f32 %v2820_v46, %v2790_v25  ;;  %v2857_v8 = vadd.f32 %v2856_v36, %v2842_v54 }
 0x1da   : > { %v2822_v61 = vadd.f32 %v2821_v63, %v2791_v23  ;;  %v2858_v1 = vadd.f32 %v2857_v8, %v2843_v41 }
 0x1dc   : > { %v2823_v14 = vadd.f32 %v2822_v61, %v2792_v2  ;;  %v2859_v40 = vadd.f32 %v2858_v1, %v2844_v59 }
 0x1de   : > { %v2824_v12 = vrot.slane %v2823_v14, 4  ;;  %v2860_v24 = vadd.f32 %v2859_v40, %v2845_v47 }
 0x1e0   : > { %v2825_v21 = vadd.f32 %v2824_v12, %v2823_v14  ;;  %v2861_v43 = vrot.slane %v2860_v24, 4 }
 0x1e2   : > { %v2826_v62 = vrot.slane %v2825_v21, 2  ;;  %v2862_v6 = vadd.f32 %v2861_v43, %v2860_v24 }
 0x1e4   : > { %v2827_v39 = vadd.f32 %v2826_v62, %v2825_v21  ;;  %v2863_v20 = vrot.slane %v2862_v6, 2 }
 0x1e6   : > { %v2828_v25 = vrot.slane %v2827_v39, 1  ;;  %v2864_v22 = vadd.f32 %v2863_v20, %v2862_v6 }
 0x1e8   : > { %v2829_v3 = vadd.f32 %v2828_v25, %v2827_v39  ;;  %v2865_v50 = vrot.slane %v2864_v22, 1 }
 0x1ea   : > { %v2866_v17 = vadd.f32 %v2865_v50, %v2864_v22  ;;  %2867 = vst [vmem:[%s494_s23] sm:$0x1] %v2829_v3 }
 0x1ec   : > { %2868 = vst [vmem:[%s494_s23 + $0x1] sm:$0x1] %v2866_v17 }
 0x1ed PF: > { %s19_s9 = sadd.s32 1, %s4005_s9   ;;  %s5174_s27 = smov %s3997_s29 }
 0x1ee   : > { %p16_p12 = scmp.ge.s32.totalorder %s19_s9, 6   ;;  %s5175_s28 = smov %s4001_s30 }
 0x1ef   : > { %s5176_s29 = smov %s5179_s10  ;;  %s5177_s30 = smov %s5183_s11 }
 0x1f0   :  { %18 = sbr.rel (!%p16_p12) target bundleno = 3 (0x3), region = 104 }

// kernel: resblock_v2_forward.3
= control target key start
LH: loop header
LB: loop body
LE: loop exit
PB: predicated region body
PF: predicated region fallthrough
CT: control target
= control target key end

     0   :  { %s4019_s27 = smov 0   ;;  %s4021_s28 = smov 0   ;;  %s5075_s0 = inlined_call_operand.vmem [shape: f32[2,16,16,128], index: 0, kind: input, shape index: {}, may-alias: {0,1,2}]   ;;  %s5076_s1 = inlined_call_operand.vmem [shape: f32[2,16,16,128], index: 1, kind: input, shape index: {}, may-alias: {0,1,2}]   ;;  %s5077_s2 = inlined_call_operand.vmem [shape: f32[2,16,16,128], index: 2, kind: input, shape index: {}, may-alias: {0,1,2}]   ;;  %s5078_s3 = inlined_call_operand.vmem [shape: f32[2,16,16,128], index: 3, kind: input, shape index: {}]   ;;  %s5079_s4 = inlined_call_operand.vmem [shape: f32[1,128], index: 4, kind: input, shape index: {}]   ;;  %s5080_s5 = inlined_call_operand.vmem [shape: f32[1,128], index: 5, kind: input, shape index: {}]   ;;  %s5081_s6 = inlined_call_operand.vmem [shape: bf16[9,128,128], index: 6, kind: input, shape index: {}]   ;;  %s5082_s7 = inlined_call_operand.vmem [shape: f32[1,128], index: 7, kind: input, shape index: {}]   ;;  %s5083_s8 = inlined_call_operand.vmem [shape: f32[2,16,16,128], index: 8, kind: output, shape index: {}]  }
   0x1   :  { %s4023_s29 = smov 0   ;;  %s4025_s30 = smov 0  }
   0x2   :  { %s4027_s9 = smov 0  }
   0x3 LB: > { %s27_s10 = sadd.s32 1, %s3963_s29  ;;  %s30_s11 = sadd.s32 1, %s3967_s30  ;;  %s3971_s9 = sphi %s4027_s9, %s18_s9   ;;  %s3967_s30 = sphi %s4025_s30, %s5131_s30   ;;  %s3963_s29 = sphi %s4023_s29, %s5130_s29   ;;  %s3959_s28 = sphi %s4021_s28, %s5129_s28   ;;  %s3955_s27 = sphi %s4019_s27, %s5128_s27  }
   0x4   : > { %p28_p0 = scmp.ge.s32.totalorder %s27_s10, 2  ;;  %p3031_p1 = scmp.ge.s32.totalorder %s3971_s9, 1 }
   0x5   : > { %p366_p2 = scmp.lt.s32.totalorder %s3971_s9, 5 }
   0x6   : > { %s5133_s10 = smov (%p28_p0, %s27_s10), 0  ;;  %s5135_s11 = smov (!%p28_p0, %s30_s11), %s3967_s30 }
   0x7   : > { %p367_p3 = pnand %p3031_p1, %p366_p2  ;;  %p32_p4 = scmp.ge.s32.totalorder %s5135_s11, 2 }
   0x9   : > { %s5137_s11 = smov (%p32_p4, %s5135_s11), 0  ;;  %370 = sbr.rel (%p367_p3) target bundleno = 462 (0x1ce), region = 52 }
   0xe   : > { %v3861_v0 = vld [vmem:[%s5081_s6 + $0x78] sm:$0xff]   ;;  %s4055_s14 = sshll.u32 %s3955_s27, 3  ;;  %p447_p5 = scmp.lt.s32.totalorder %s3959_s28, 1  ;;  %v3863_v2 = vld [vmem:[%s5081_s6 + $0x70] sm:$0xff]   ;;  %v3865_v4 = vld [vmem:[%s5081_s6 + $0x68] sm:$0xff]   ;;  %v3973_v9 = vmov 0.0  }
   0xf   : > { %v3862_v1 = vld [vmem:[%s5081_s6 + $0x38] sm:$0xff]   ;;  %3444 = vmatprep.subr.bf16.mxu0 %v3861_v0  ;;  %p449_p6 = scmp.lt.s32.totalorder %s4055_s14, 15  ;;  %v3864_v3 = vld [vmem:[%s5081_s6 + $0x30] sm:$0xff]   ;;  %v3866_v5 = vld [vmem:[%s5081_s6 + $0x28] sm:$0xff]   ;;  %p457_p7 = scmp.eq.s32.totalorder %s3955_s27, 0  ;;  %608 = vst [vmem:[#allocation2] sm:$0xff] %v3973_v9 }
  0x10   : > { %3484 = vmatprep.subr.bf16.mxu1 %v3862_v1  ;;  %3445 = vmatpush3.bf16.msra.mxu0 %v3861_v0  ;;  %s5139_s28 = smov (!%p447_p5, %s3959_s28), 1  ;;  %v3867_v6 = vld [vmem:[%s5081_s6 + $0x60] sm:$0xff]   ;;  %v3869_v8 = vld [vmem:[%s5081_s6 + $0x58] sm:$0xff]   ;;  %609 = vst [vmem:[#allocation2 + $0x8] sm:$0xff] %v3973_v9  ;;  %610 = vst [vmem:[#allocation2 + $0x10] sm:$0xff] %v3973_v9  ;;  %p474_p9 = scmp.eq.s32.totalorder %s3955_s27, 1 }
  0x11   : > { %3485 = vmatpush3.bf16.msra.mxu1 %v3862_v1  ;;  %3446 = vmatprep.subr.bf16.mxu0 %v3863_v2  ;;  %s450_s23 = scalar_select %p449_p6, %s4055_s14, 15  ;;  %v3868_v7 = vld [vmem:[%s5081_s6 + $0x20] sm:$0xff]   ;;  %611 = vst [vmem:[#allocation2 + $0x18] sm:$0xff] %v3973_v9  ;;  %612 = vst [vmem:[#allocation2 + $0x20] sm:$0xff] %v3973_v9  ;;  %v3870_v10 = vld [vmem:[%s5081_s6 + $0x18] sm:$0xff]  }
  0x12   : > { %3486 = vmatprep.subr.bf16.mxu1 %v3864_v3  ;;  %s4074_s26 = sshll.u32 %s5139_s28, 5  ;;  %s3037_s28 = sadd.s32 4294967295, %s4055_s14  ;;  %613 = vst [vmem:[#allocation2 + $0x28] sm:$0xff] %v3973_v9  ;;  %614 = vst [vmem:[#allocation2 + $0x30] sm:$0xff] %v3973_v9  ;;  %v3871_v11 = vld [vmem:[%s5081_s6 + $0x50] sm:$0xff]   ;;  %v3873_v17 = vld [vmem:[%s5081_s6 + $0x48] sm:$0xff]  }
  0x13   : > { %s3033_s12 = sshll.u32 %s450_s23, 1  ;;  %s5141_s28 = smov (%p457_p7, %s3037_s28), 1  ;;  %615 = vst [vmem:[#allocation2 + $0x38] sm:$0xff] %v3973_v9  ;;  %616 = vst [vmem:[#allocation2 + $0x40] sm:$0xff] %v3973_v9  ;;  %v4111_v12 = vld [vmem:[%s5079_s4] ss:$0 sm:$0xff] }
  0x14   : > { %3447 = vmatpush3.bf16.msra.mxu0 %v3863_v2  ;;  %s453_s16 = sadd.s32 %s4074_s26, %s3033_s12  ;;  %p463_p8 = scmp.lt.s32.totalorder %s5141_s28, 15  ;;  %617 = vst [vmem:[#allocation2 + $0x48] sm:$0xff] %v3973_v9  ;;  %618 = vst [vmem:[#allocation2 + $0x50] sm:$0xff] %v3973_v9  ;;  %v4116_v13 = vld [vmem:[%s5080_s5] ss:$0 sm:$0xff]  ;;  %v3872_v15 = vld [vmem:[%s5081_s6 + $0x10] sm:$0xff]  }
  0x15   : > { %3487 = vmatpush3.bf16.msra.mxu1 %v3864_v3  ;;  %3448 = vmatprep.subr.bf16.mxu0 %v3865_v4  ;;  %s4084_s19 = sshll.u32 %s453_s16, 3  ;;  %619 = vst [vmem:[#allocation2 + $0x58] sm:$0xff] %v3973_v9  ;;  %620 = vst [vmem:[#allocation2 + $0x60] sm:$0xff] %v3973_v9  ;;  %s3263_s20 = sadd.s32 8, %s4055_s14  ;;  %v3874_v21 = vld [vmem:[%s5081_s6 + $0x8] sm:$0xff]   ;;  %v3875_v29 = vld [vmem:[%s5081_s6 + $0x40] sm:$0xff]  }
  0x16   : > { %3488 = vmatprep.subr.bf16.mxu1 %v3866_v5  ;;  %621 = vst [vmem:[#allocation2 + $0x68] sm:$0xff] %v3973_v9  ;;  %622 = vst [vmem:[#allocation2 + $0x70] sm:$0xff] %v3973_v9  ;;  %s4100_s12 = scalar_lea.vmem %s5075_s0, %s4084_s19  ;;  %s5143_s28 = smov (!%p463_p8, %s5141_s28), 15  ;;  %v3876_v34 = vld [vmem:[%s5081_s6] sm:$0xff]   ;;  %v4173_v48 = vld [vmem:[%s5081_s6 + $0xb8] sm:$0xff]  }
  0x17   : > { %623 = vst [vmem:[#allocation2 + $0x78] sm:$0xff] %v3973_v9  ;;  %624 = vst [vmem:[#allocation2 + $0x80] sm:$0xff] %v3973_v9  ;;  %s3038_s16 = sshll.u32 %s5143_s28, 1  ;;  %v536_v14 = vld [vmem:[%s4100_s12] sm:$0xff]  ;;  %s5145_s20 = smov (%p474_p9, %s3263_s20), 14  ;;  %v537_v25 = vld [vmem:[%s4100_s12 + $0x8] sm:$0xff] }
  0x18   : > { %3449 = vmatpush3.bf16.msra.mxu0 %v3865_v4  ;;  %625 = vst [vmem:[#allocation2 + $0x88] sm:$0xff] %v3973_v9  ;;  %626 = vst [vmem:[#allocation2 + $0x90] sm:$0xff] %v3973_v9  ;;  %s467_s24 = sadd.s32 %s3038_s16, %s4074_s26  ;;  %v552_v16 = vmul.f32 %v4111_v12, %v536_v14  ;;  %v538_v26 = vld [vmem:[%s4100_s12 + $0x10] sm:$0xff]  ;;  %v553_v27 = vmul.f32 %v4111_v12, %v537_v25  ;;  %v539_v28 = vld [vmem:[%s4100_s12 + $0x18] sm:$0xff]  ;;  %p480_p10 = scmp.lt.s32.totalorder %s5145_s20, 15 }
  0x19   : > { %3489 = vmatpush3.bf16.msra.mxu1 %v3866_v5  ;;  %3450 = vmatprep.subr.bf16.mxu0 %v3867_v6  ;;  %627 = vst [vmem:[#allocation2 + $0x98] sm:$0xff] %v3973_v9  ;;  %628 = vst [vmem:[#allocation2 + $0xa0] sm:$0xff] %v3973_v9  ;;  %s3040_s28 = sshll.u32 %s467_s24, 3  ;;  %v554_v32 = vmul.f32 %v4111_v12, %v538_v26  ;;  %v555_v33 = vmul.f32 %v4111_v12, %v539_v28  ;;  %v540_v36 = vld [vmem:[%s4100_s12 + $0x20] sm:$0xff]  ;;  %v541_v41 = vld [vmem:[%s4100_s12 + $0x28] sm:$0xff]  ;;  %s4978_s14 = scalar_lea.vmem %s5078_s3, %s4084_s19 }
  0x1a   : > { %629 = vst [vmem:[#allocation2 + $0xa8] sm:$0xff] %v3973_v9  ;;  %630 = vst [vmem:[#allocation2 + $0xb0] sm:$0xff] %v3973_v9  ;;  %3490 = vmatprep.subr.bf16.mxu1 %v3868_v7  ;;  %s469_s18 = scalar_lea.vmem %s5076_s1, %s3040_s28  ;;  %v568_v18 = vadd.f32 %v4116_v13, %v552_v16  ;;  %v569_v35 = vadd.f32 %v4116_v13, %v553_v27  ;;  %s5147_s20 = smov (!%p480_p10, %s5145_s20), 15  ;;  %v542_v42 = vld [vmem:[%s4100_s12 + $0x30] sm:$0xff]  ;;  %v556_v44 = vmul.f32 %v4111_v12, %v540_v36  ;;  %v543_v51 = vld [vmem:[%s4100_s12 + $0x38] sm:$0xff] }
  0x1b   : > { %631 = vst [vmem:[#allocation2 + $0xb8] sm:$0xff] %v3973_v9  ;;  %632 = vst [vmem:[#allocation2 + $0xc0] sm:$0xff] %v3973_v9  ;;  %v516_v19 = vld [vmem:[%s469_s18] sm:$0xff]  ;;  %v517_v20 = vld [vmem:[%s469_s18 + $0x8] sm:$0xff]  ;;  %v570_v39 = vadd.f32 %v4116_v13, %v554_v32  ;;  %v571_v40 = vadd.f32 %v4116_v13, %v555_v33  ;;  %v557_v45 = vmul.f32 %v4111_v12, %v541_v41  ;;  %s3042_s25 = sshll.u32 %s5147_s20, 1  ;;  %s4997_s24 = scalar_lea.vmem %s5083_s8, %s4084_s19 }
  0x1c   : > { %633 = vst [vmem:[#allocation2 + $0xc8] sm:$0xff] %v3973_v9  ;;  %634 = vst [vmem:[#allocation2 + $0xd0] sm:$0xff] %v3973_v9  ;;  %3451 = vmatpush3.bf16.msra.mxu0 %v3867_v6  ;;  %v524_v22 = vmul.f32 %v4111_v12, %v516_v19  ;;  %v525_v23 = vmul.f32 %v4111_v12, %v517_v20  ;;  %v4138_v24 = vmax.f32 %v568_v18, 0.0  ;;  %v4165_v43 = vmax.f32 %v569_v35, 0.0  ;;  %v544_v55 = vld [vmem:[%s4100_s12 + $0x40] sm:$0xff]  ;;  %v4190_v56 = vld [vmem:[%s5081_s6 + $0xf8] sm:$0xff]   ;;  %s4199_s17 = sadd.s32 %s3042_s25, %s4074_s26 }
  0x1d   : > { %635 = vst [vmem:[#allocation2 + $0xd8] sm:$0xff] %v3973_v9  ;;  %636 = vst [vmem:[#allocation2 + $0xe0] sm:$0xff] %v3973_v9  ;;  %3491 = vmatpush3.bf16.msra.mxu1 %v3868_v7  ;;  %3452 = vmatprep.subr.bf16.mxu0 %v3869_v8  ;;  %v558_v46 = vmul.f32 %v4111_v12, %v542_v42  ;;  %v4175_v49 = vmax.f32 %v570_v39, 0.0  ;;  %v4177_v50 = vmax.f32 %v571_v40, 0.0  ;;  %v545_v2 = vld [vmem:[%s4100_s12 + $0x48] sm:$0xff]  ;;  %v3879_v4 = vld [vmem:[%s5081_s6 + $0xb0] sm:$0xff]  }
  0x1e   : > { %637 = vst [vmem:[#allocation2 + $0xe8] sm:$0xff] %v3973_v9  ;;  %638 = vst [vmem:[#allocation2 + $0xf0] sm:$0xff] %v3973_v9  ;;  %3492 = vmatprep.subr.bf16.mxu1 %v3870_v10  ;;  %v532_v30 = vadd.f32 %v4116_v13, %v524_v22  ;;  %v533_v31 = vadd.f32 %v4116_v13, %v525_v23  ;;  %v572_v52 = vadd.f32 %v4116_v13, %v556_v44  ;;  %v546_v7 = vld [vmem:[%s4100_s12 + $0x50] sm:$0xff]  ;;  %v547_v9 = vld [vmem:[%s4100_s12 + $0x58] sm:$0xff]  ;;  %s3044_s22 = sshll.u32 %s4199_s17, 3 }
  0x1f   : > { %643 = vst [vmem:[#allocation2 + $0x19] sm:$0xff] %v4138_v24  ;;  %645 = vst [vmem:[#allocation2 + $0x17] sm:$0x2] %v4138_v24  ;;  %v573_v53 = vadd.f32 %v4116_v13, %v557_v45  ;;  %v574_v54 = vadd.f32 %v4116_v13, %v558_v46  ;;  %v559_v57 = vmul.f32 %v4111_v12, %v543_v51  ;;  %v3880_v25 = vld [vmem:[%s5081_s6 + $0xf0] sm:$0xff]   ;;  %v3881_v36 = vld [vmem:[%s5081_s6 + $0xa8] sm:$0xff]   ;;  %s4500_s25 = scalar_lea.vmem %s5077_s2, %s3044_s22 }
  0x20   : > { %3453 = vmatpush3.bf16.msra.mxu0 %v3869_v8  ;;  %v534_v37 = vmax.f32 %v532_v30, 0.0  ;;  %v535_v38 = vmax.f32 %v533_v31, 0.0  ;;  %644 = vst [vmem:[#allocation2 + $0x21] sm:$0xff] %v4165_v43  ;;  %646 = vst [vmem:[#allocation2 + $0x23] sm:$0x40] %v4165_v43  ;;  %v560_v58 = vmul.f32 %v4111_v12, %v544_v55  ;;  %v4201_v59 = vmax.f32 %v572_v52, 0.0 }
  0x21   : > { %3493 = vmatpush3.bf16.msra.mxu1 %v3870_v10  ;;  %3454 = vmatprep.subr.bf16.mxu0 %v3871_v11  ;;  %649 = vst [vmem:[#allocation2 + $0x2f] sm:$0x2] %v4175_v49  ;;  %647 = vst [vmem:[#allocation2 + $0x31] sm:$0xff] %v4175_v49  ;;  %v4203_v60 = vmax.f32 %v573_v53, 0.0  ;;  %v4205_v61 = vmax.f32 %v574_v54, 0.0  ;;  %v575_v63 = vadd.f32 %v4116_v13, %v559_v57  ;;  %v550_v57 = vld [vmem:[%s4100_s12 + $0x70] sm:$0xff] }
  0x22   : > { %3494 = vmatprep.subr.bf16.mxu1 %v3872_v15  ;;  %639 = vst [vmem:[#allocation2 + $0x1] sm:$0xff] %v534_v37  ;;  %640 = vst [vmem:[#allocation2 + $0x9] sm:$0xff] %v535_v38  ;;  %v755_v47 = vpack.c.bf16 %v535_v38, %v534_v37  ;;  %v576_v0 = vadd.f32 %v4116_v13, %v560_v58  ;;  %v561_v8 = vmul.f32 %v4111_v12, %v545_v2 }
  0x23   : > { %641 = vst [vmem:[#allocation2 - $0x1] sm:$0x2] %v534_v37  ;;  %642 = vst [vmem:[#allocation2 + $0xb] sm:$0x40] %v535_v38  ;;  %v4227_v5 = vmax.f32 %v575_v63, 0.0  ;;  %v563_v16 = vmul.f32 %v4111_v12, %v547_v9  ;;  %v3882_v37 = vld [vmem:[%s5081_s6 + $0xe8] sm:$0xff]   ;;  %v758_v44 = vpack.c.bf16 %v4177_v50, %v4175_v49  ;;  %v566_v2 = vmul.f32 %v4111_v12, %v550_v57 }
  0x24   : > { %3455 = vmatpush3.bf16.msra.mxu0 %v3871_v11  ;;  %3460 = vmatprep.mubr.bf16.mxu0 %v755_v47  ;;  %648 = vst [vmem:[#allocation2 + $0x39] sm:$0xff] %v4177_v50  ;;  %650 = vst [vmem:[#allocation2 + $0x3b] sm:$0x40] %v4177_v50  ;;  %v4229_v6 = vmax.f32 %v576_v0, 0.0  ;;  %v577_v22 = vadd.f32 %v4116_v13, %v561_v8  ;;  %v548_v47 = vld [vmem:[%s4100_s12 + $0x60] sm:$0xff]  ;;  %v3885_v9 = vld [vmem:[%s5081_s6 + $0x98] sm:$0xff]  }
  0x25   : > { %3495 = vmatpush3.bf16.msra.mxu1 %v3872_v15  ;;  %3456 = vmatprep.subr.bf16.mxu0 %v3873_v17  ;;  %651 = vst [vmem:[#allocation2 + $0x49] sm:$0xff] %v4201_v59  ;;  %653 = vst [vmem:[#allocation2 + $0x47] sm:$0x2] %v4201_v59  ;;  %v562_v15 = vmul.f32 %v4111_v12, %v546_v7  ;;  %v579_v28 = vadd.f32 %v4116_v13, %v563_v16  ;;  %v3884_v7 = vld [vmem:[%s5081_s6 + $0xe0] sm:$0xff]   ;;  %v3890_v57 = vld [vmem:[%s5081_s6 + $0xc8] sm:$0xff]  }
  0x26   : > { %3496 = vmatprep.subr.bf16.mxu1 %v3874_v21  ;;  %v4211_v1 = vld [vmem:[#allocation2 + $0x18] sm:$0xff]  ;;  %652 = vst [vmem:[#allocation2 + $0x51] sm:$0xff] %v4203_v60  ;;  %654 = vst [vmem:[#allocation2 + $0x53] sm:$0x40] %v4203_v60  ;;  %v4262_v33 = vmax.f32 %v577_v22, 0.0  ;;  %v564_v51 = vmul.f32 %v4111_v12, %v548_v47  ;;  %v600_v38 = vld [vmem:[%s4500_s25] sm:$0xff] }
  0x27   : > { %657 = vst [vmem:[#allocation2 + $0x5f] sm:$0x2] %v4205_v61  ;;  %655 = vst [vmem:[#allocation2 + $0x61] sm:$0xff] %v4205_v61  ;;  %v4237_v20 = vld [vmem:[#allocation2 + $0x20] sm:$0xff]  ;;  %v578_v27 = vadd.f32 %v4116_v13, %v562_v15  ;;  %v4267_v35 = vmax.f32 %v579_v28, 0.0 }
  0x28   : > { %3457 = vmatpush3.bf16.msra.mxu0 %v3873_v17  ;;  %656 = vst [vmem:[#allocation2 + $0x69] sm:$0xff] %v4227_v5  ;;  %658 = vst [vmem:[#allocation2 + $0x6b] sm:$0x40] %v4227_v5  ;;  %v4250_v26 = vld [vmem:[#allocation2 + $0x29] sm:$0xff]  ;;  %v580_v0 = vadd.f32 %v4116_v13, %v564_v51  ;;  %v1384_v54 = vpack.c.bf16 %v4237_v20, %v4211_v1  ;;  %v4462_v53 = vld [vmem:[#allocation2 + $0x1a] sm:$0xff] }
  0x29   : > { %3497 = vmatpush3.bf16.msra.mxu1 %v3874_v21  ;;  %3458 = vmatprep.subr.bf16.mxu0 %v3875_v29  ;;  %v680_v11 = vld [vmem:[#allocation2 + $0x8] sm:$0xff]  ;;  %659 = vst [vmem:[#allocation2 + $0x79] sm:$0xff] %v4229_v6  ;;  %661 = vst [vmem:[#allocation2 + $0x77] sm:$0x2] %v4229_v6  ;;  %v4258_v31 = vld [vmem:[#allocation2 + $0x30] sm:$0xff] }
  0x2a   : > { %3498 = vmatprep.subr.bf16.mxu1 %v3876_v34  ;;  %v679_v10 = vld [vmem:[#allocation2] sm:$0xff]  ;;  %v733_v14 = vld [vmem:[#allocation2 + $0x11] sm:$0xff]  ;;  %v4239_v21 = vld [vmem:[#allocation2 + $0x28] sm:$0xff]  ;;  %660 = vst [vmem:[#allocation2 + $0x81] sm:$0xff] %v4262_v33 }
  0x2b   : > { %v703_v17 = vpack.c.bf16 %v680_v11, %v679_v10  ;;  %v756_v18 = vpack.c.bf16 %v4138_v24, %v733_v14  ;;  %v681_v19 = vld [vmem:[#allocation2 + $0x10] sm:$0xff]  ;;  %v705_v30 = vpack.c.bf16 %v4239_v21, %v4237_v20  ;;  %v4260_v32 = vld [vmem:[#allocation2 + $0x38] sm:$0xff]  ;;  %662 = vst [vmem:[#allocation2 + $0x83] sm:$0x40] %v4262_v33  ;;  %v4284_v41 = vld [vmem:[#allocation2 + $0x40] sm:$0xff]  ;;  %v4327_v10 = vmax.f32 %v580_v0, 0.0 }
  0x2c   : > { %3459 = vmatpush3.bf16.msra.mxu0 %v3875_v29  ;;  %v704_v23 = vpack.c.bf16 %v4211_v1, %v681_v19  ;;  %v757_v29 = vpack.c.bf16 %v4250_v26, %v4165_v43  ;;  %v4282_v40 = vld [vmem:[#allocation2 + $0x41] sm:$0xff]  ;;  %664 = vst [vmem:[#allocation2 + $0x99] sm:$0xff] %v4267_v35  ;;  %666 = vst [vmem:[#allocation2 + $0x9b] sm:$0x40] %v4267_v35  ;;  %v706_v45 = vpack.c.bf16 %v4260_v32, %v4258_v31  ;;  %v4469_v20 = vld [vmem:[#allocation2 + $0x2a] sm:$0xff] }
  0x2d   : > { %3499 = vmatpush3.bf16.msra.mxu1 %v3876_v34  ;;  %3524 = vmatprep.subr.bf16.mxu0 %v4173_v48  ;;  %v4265_v34 = vmax.f32 %v578_v27, 0.0  ;;  %v4286_v42 = vld [vmem:[#allocation2 + $0x48] sm:$0xff]  ;;  %v759_v55 = vpack.c.bf16 %v4201_v59, %v4282_v40  ;;  %v582_v11 = vadd.f32 %v4116_v13, %v566_v2  ;;  %v4332_v15 = vld [vmem:[#allocation2 + $0x50] sm:$0xff]  ;;  %v4334_v16 = vld [vmem:[#allocation2 + $0x58] sm:$0xff]  ;;  %667 = vst [vmem:[#allocation2 + $0xa9] sm:$0xff] %v4327_v10 }
  0x2e   : > { %3564 = vmatprep.subr.bf16.mxu1 %v4190_v56  ;;  %3500 = vmatprep.mubr.bf16.mxu1 %v703_v17  ;;  %v4296_v46 = vld [vmem:[#allocation2 + $0x59] sm:$0xff]  ;;  %v707_v58 = vpack.c.bf16 %v4286_v42, %v4284_v41  ;;  %669 = vst [vmem:[#allocation2 + $0xa7] sm:$0x2] %v4327_v10 }
  0x2f   : > { %3461 = vmatmul.mubr.bf16.vlgmr.msra.gmra.mxu0 %v756_v18  ;;  %665 = vst [vmem:[#allocation2 + $0x8f] sm:$0x2] %v4265_v34  ;;  %663 = vst [vmem:[#allocation2 + $0x91] sm:$0xff] %v4265_v34  ;;  %v3886_v17 = vld [vmem:[%s5081_s6 + $0xd8] sm:$0xff]   ;;  %v4339_v18 = vld [vmem:[#allocation2 + $0x60] sm:$0xff] }
  0x30   : > { %3501 = vmatmul.mubr.bf16.vlgmr.msra.gmra.mxu1 %v704_v23  ;;  %3525 = vmatpush3.bf16.msra.mxu0 %v4173_v48  ;;  %v549_v48 = vld [vmem:[%s4100_s12 + $0x68] sm:$0xff]  ;;  %v4314_v63 = vld [vmem:[#allocation2 + $0x71] sm:$0xff]  ;;  %v4347_v23 = vmax.f32 %v582_v11, 0.0  ;;  %v3891_v11 = vld [vmem:[%s5081_s6 + $0x80] sm:$0xff]  }
  0x31   : > { %3565 = vmatpush3.bf16.msra.mxu1 %v4190_v56  ;;  %3526 = vmatprep.subr.bf16.mxu0 %v3879_v4  ;;  %v565_v52 = vmul.f32 %v4111_v12, %v549_v48  ;;  %v3883_v56 = vld [vmem:[%s5081_s6 + $0xa0] sm:$0xff]   ;;  %v4341_v19 = vld [vmem:[#allocation2 + $0x68] sm:$0xff]  ;;  %v4374_v47 = vld [vmem:[#allocation2 + $0x70] sm:$0xff] }
  0x32   : > { %3566 = vmatprep.subr.bf16.mxu1 %v3880_v25  ;;  %3464 = vmatprep.mubr.bf16.mxu0 %v757_v29  ;;  %v708_v29 = vpack.c.bf16 %v4334_v16, %v4332_v15  ;;  %673 = vst [vmem:[#allocation2 + $0xbf] sm:$0x2] %v4347_v23  ;;  %671 = vst [vmem:[#allocation2 + $0xc1] sm:$0xff] %v4347_v23  ;;  %v4376_v48 = vld [vmem:[#allocation2 + $0x78] sm:$0xff]  ;;  %v4378_v51 = vld [vmem:[#allocation2 + $0x80] sm:$0xff] }
  0x33   : > { %3504 = vmatprep.mubr.bf16.mxu1 %v705_v30  ;;  %v761_v30 = vpack.c.bf16 %v4227_v5, %v4205_v61  ;;  %v710_v2 = vpack.c.bf16 %v4376_v48, %v4374_v47  ;;  %v551_v27 = vld [vmem:[%s4100_s12 + $0x78] sm:$0xff] }
  0x34   : > { %3527 = vmatpush3.bf16.msra.mxu0 %v3879_v4  ;;  %v581_v4 = vadd.f32 %v4116_v13, %v565_v52  ;;  %v4380_v52 = vld [vmem:[#allocation2 + $0x88] sm:$0xff]  ;;  %v567_v39 = vmul.f32 %v4111_v12, %v551_v27  ;;  %v1124_v27 = vld [vmem:[#allocation2 + $0x12] sm:$0xff] }
  0x35   : > { %3567 = vmatpush3.bf16.msra.mxu1 %v3880_v25  ;;  %3528 = vmatprep.subr.bf16.mxu0 %v3881_v36  ;;  %v760_v25 = vpack.c.bf16 %v4296_v46, %v4203_v60  ;;  %v1147_v1 = vpack.c.bf16 %v4462_v53, %v1124_v27  ;;  %v4484_v27 = vld [vmem:[#allocation2 + $0x3a] sm:$0xff] }
  0x36   : > { %3568 = vmatprep.subr.bf16.mxu1 %v3882_v37  ;;  %v4330_v14 = vmax.f32 %v581_v4, 0.0  ;;  %v4343_v22 = vld [vmem:[#allocation2 + $0x89] sm:$0xff]  ;;  %v583_v8 = vadd.f32 %v4116_v13, %v567_v39 }
  0x37   : > { %3465 = vmatmul.mubr.bf16.gmra.mxu0 %v758_v44  ;;  %v3888_v44 = vld [vmem:[%s5081_s6 + $0xd0] sm:$0xff]   ;;  %v763_v4 = vpack.c.bf16 %v4343_v22, %v4262_v33  ;;  %v4466_v39 = vld [vmem:[#allocation2 + $0x22] sm:$0xff] }
  0x38   : > { %3505 = vmatmul.mubr.bf16.gmra.mxu1 %v706_v45  ;;  %3529 = vmatpush3.bf16.msra.mxu0 %v3881_v36  ;;  %668 = vst [vmem:[#allocation2 + $0xb1] sm:$0xff] %v4330_v14  ;;  %670 = vst [vmem:[#allocation2 + $0xb3] sm:$0x40] %v4330_v14  ;;  %v709_v36 = vpack.c.bf16 %v4341_v19, %v4339_v18  ;;  %v3889_v45 = vld [vmem:[%s5081_s6 + $0x88] sm:$0xff]   ;;  %v4458_v3 = vmax.f32 %v583_v8, 0.0  ;;  %v1385_v8 = vpack.c.bf16 %v4258_v31, %v4239_v21 }
  0x39   : > { %3569 = vmatpush3.bf16.msra.mxu1 %v3882_v37  ;;  %3468 = vmatprep.mubr.bf16.mxu0 %v759_v55  ;;  %v3887_v37 = vld [vmem:[%s5081_s6 + $0x90] sm:$0xff]   ;;  %v4382_v55 = vld [vmem:[#allocation2 + $0xa1] sm:$0xff]  ;;  %v1386_v21 = vpack.c.bf16 %v4284_v41, %v4260_v32 }
  0x3a   : > { %3508 = vmatprep.mubr.bf16.mxu1 %v707_v58  ;;  %3530 = vmatprep.subr.bf16.mxu0 %v3883_v56  ;;  %672 = vst [vmem:[#allocation2 + $0xc9] sm:$0xff] %v4458_v3  ;;  %674 = vst [vmem:[#allocation2 + $0xcb] sm:$0x40] %v4458_v3  ;;  %v4490_v31 = vld [vmem:[#allocation2 + $0xc0] sm:$0xff]  ;;  %v3898_v32 = vld [vmem:[%s5081_s6 + $0x168] sm:$0xff]  }
  0x3b   : > { %3570 = vmatprep.subr.bf16.mxu1 %v3884_v7  ;;  %v4507_v41 = vld [vmem:[#allocation2 + $0x42] sm:$0xff] }
  0x3c   : > { %3531 = vmatpush3.bf16.msra.mxu0 %v3883_v56  ;;  %v762_v56 = vpack.c.bf16 %v4229_v6, %v4314_v63 }
  0x3d   : > { %3571 = vmatpush3.bf16.msra.mxu1 %v3884_v7  ;;  %3532 = vmatprep.subr.bf16.mxu0 %v3885_v9  ;;  %v1123_v7 = vld [vmem:[#allocation2 + $0xa] sm:$0xff] }
  0x3e   : > { %3572 = vmatprep.subr.bf16.mxu1 %v3886_v17 }
  0x3f   : > { %3469 = vmatmul.mubr.bf16.gmra.mxu0 %v760_v25  ;;  %v4389_v58 = vld [vmem:[#allocation2 + $0xb9] sm:$0xff]  ;;  %v4441_v28 = vld [vmem:[#allocation2 + $0xb0] sm:$0xff] }
  0x40   : > { %3509 = vmatmul.mubr.bf16.gmra.mxu1 %v708_v29  ;;  %3472 = vmatprep.mubr.bf16.mxu0 %v761_v30  ;;  %v3892_v25 = vld [vmem:[%s5081_s6 + $0xc0] sm:$0xff]   ;;  %v4411_v29 = vld [vmem:[#allocation2 + $0x98] sm:$0xff] }
  0x41   : > { %3512 = vmatprep.mubr.bf16.mxu1 %v709_v36  ;;  %3533 = vmatpush3.bf16.msra.mxu0 %v3885_v9  ;;  %v4401_v9 = vpack.c.bf16 %v4380_v52, %v4378_v51  ;;  %v4413_v30 = vld [vmem:[#allocation2 + $0xa0] sm:$0xff]  ;;  %v3893_v36 = vld [vmem:[%s5081_s6 + $0x138] sm:$0xff]   ;;  %v4492_v62 = vld [vmem:[#allocation2 + $0xc8] sm:$0xff] }
  0x42   : > { %3573 = vmatpush3.bf16.msra.mxu1 %v3886_v17  ;;  %3534 = vmatprep.subr.bf16.mxu0 %v3887_v37  ;;  %v4406_v17 = vld [vmem:[#allocation2 + $0x90] sm:$0xff]  ;;  %v4443_v0 = vld [vmem:[#allocation2 + $0xb8] sm:$0xff] }
  0x43   : > { %3574 = vmatprep.subr.bf16.mxu1 %v3888_v44 }
  0x45   : > { %3535 = vmatpush3.bf16.msra.mxu0 %v3887_v37  ;;  %v4419_v37 = vld [vmem:[#allocation2 + $0xa8] sm:$0xff] }
  0x46   : > { %3575 = vmatpush3.bf16.msra.mxu1 %v3888_v44  ;;  %3536 = vmatprep.subr.bf16.mxu0 %v3889_v45  ;;  %v764_v44 = vpack.c.bf16 %v4267_v35, %v4265_v34 }
  0x47   : > { %3473 = vmatmul.mubr.bf16.gmra.mxu0 %v762_v56  ;;  %3576 = vmatprep.subr.bf16.mxu1 %v3890_v57  ;;  %v3894_v56 = vld [vmem:[%s5081_s6 + $0x178] sm:$0xff]  }
  0x48   : > { %3513 = vmatmul.mubr.bf16.gmra.mxu1 %v710_v2  ;;  %3476 = vmatprep.mubr.bf16.mxu0 %v763_v4  ;;  %v4432_v2 = vpack.c.bf16 %v4327_v10, %v4382_v55  ;;  %v1122_v4 = vld [vmem:[#allocation2 + $0x2] sm:$0xff] }
  0x49   : > { %3516 = vmatprep.mubr.bf16.mxu1 %v4401_v9  ;;  %3537 = vmatpush3.bf16.msra.mxu0 %v3889_v45  ;;  %v4428_v45 = vpack.c.bf16 %v4411_v29, %v4406_v17 }
  0x4a   : > { %3577 = vmatpush3.bf16.msra.mxu1 %v3890_v57  ;;  %3538 = vmatprep.subr.bf16.mxu0 %v3891_v11  ;;  %5094 = vst [vmem:[#allocation3_spill] sm:$0xff] %v4432_v2  ;;  %v4436_v57 = vpack.c.bf16 %v4419_v37, %v4413_v30 }
  0x4b   : > { %3578 = vmatprep.subr.bf16.mxu1 %v3892_v25 }
  0x4d   : > { %3539 = vmatpush3.bf16.msra.mxu0 %v3891_v11  ;;  %v4449_v11 = vpack.c.bf16 %v4389_v58, %v4330_v14 }
  0x4e   : > { %3579 = vmatpush3.bf16.msra.mxu1 %v3892_v25  ;;  %3604 = vmatprep.subr.bf16.mxu0 %v3893_v36  ;;  %v4453_v25 = vpack.c.bf16 %v4443_v0, %v4441_v28 }
  0x4f   : > { %3477 = vmatmul.mubr.bf16.gmra.mxu0 %v764_v44  ;;  %3644 = vmatprep.subr.bf16.mxu1 %v3894_v56  ;;  %5095 = vst [vmem:[#allocation4_spill] sm:$0xff] %v4449_v11  ;;  %v1146_v44 = vpack.c.bf16 %v1123_v7, %v1122_v4  ;;  %v3895_v7 = vld [vmem:[%s5081_s6 + $0x130] sm:$0xff]  }
  0x50   : > { %3517 = vmatmul.mubr.bf16.gmra.mxu1 %v4428_v45  ;;  %3480 = vmatprep.mubr.bf16.mxu0 %v4432_v2  ;;  %5096 = vst [vmem:[#allocation5_spill] sm:$0xff] %v4453_v25  ;;  %v3896_v4 = vld [vmem:[%s5081_s6 + $0x170] sm:$0xff]   ;;  %v3907_v2 = vld [vmem:[%s5081_s6 + $0x100] sm:$0xff]  }
  0x51   : > { %3520 = vmatprep.mubr.bf16.mxu1 %v4436_v57 }
  0x57   : > { %3481 = vmatmul.mubr.bf16.gmra.mxu0 %v4449_v11  ;;  %v3897_v11 = vld [vmem:[%s5081_s6 + $0x128] sm:$0xff]  }
  0x58   : > { %3521 = vmatmul.mubr.bf16.gmra.mxu1 %v4453_v25  ;;  %3540 = vmatprep.mubr.bf16.mxu0 %v1146_v44  ;;  %v4482_v44 = vld [vmem:[#allocation2 + $0x32] sm:$0xff] }
  0x59   : > { %3580 = vmatprep.mubr.bf16.mxu1 %v1384_v54  ;;  %v1148_v54 = vpack.c.bf16 %v4469_v20, %v4466_v39  ;;  %v4525_v25 = vld [vmem:[#allocation2 + $0x52] sm:$0xff] }
  0x5f   : > { %3541 = vmatmul.mubr.bf16.vlgmr.msra.gmra.mxu0 %v1147_v1  ;;  %v602_v1 = vmul.f32 %v4111_v12, %v600_v38  ;;  %v4532_v38 = vld [vmem:[#allocation2 + $0x5a] sm:$0xff] }
  0x60   : > { %3581 = vmatmul.mubr.bf16.vlgmr.msra.gmra.mxu1 %v1385_v8  ;;  %3605 = vmatpush3.bf16.msra.mxu0 %v3893_v36  ;;  %v4509_v36 = vld [vmem:[#allocation2 + $0x4a] sm:$0xff]  ;;  %v4513_v8 = vpack.c.bf16 %v4484_v27, %v4482_v44 }
  0x61   : > { %3645 = vmatpush3.bf16.msra.mxu1 %v3894_v56  ;;  %3606 = vmatprep.subr.bf16.mxu0 %v3895_v7  ;;  %v1387_v56 = vpack.c.bf16 %v4332_v15, %v4286_v42  ;;  %v604_v42 = vadd.f32 %v4116_v13, %v602_v1  ;;  %v3900_v15 = vld [vmem:[%s5081_s6 + $0x160] sm:$0xff]   ;;  %v3901_v1 = vld [vmem:[%s5081_s6 + $0x118] sm:$0xff]  }
  0x62   : > { %3646 = vmatprep.subr.bf16.mxu1 %v3896_v4  ;;  %3544 = vmatprep.mubr.bf16.mxu0 %v1148_v54  ;;  %5097 = vst [vmem:[#allocation6_spill] sm:$0xff] %v4513_v8  ;;  %v4521_v54 = vpack.c.bf16 %v4509_v36, %v4507_v41 }
  0x63   : > { %3584 = vmatprep.mubr.bf16.mxu1 %v1386_v21  ;;  %v1388_v21 = vpack.c.bf16 %v4339_v18, %v4334_v16  ;;  %v4539_v16 = vld [vmem:[#allocation2 + $0x6a] sm:$0xff]  ;;  %v4541_v18 = vmax.f32 %v604_v42, 0.0 }
  0x64   : > { %3607 = vmatpush3.bf16.msra.mxu0 %v3895_v7  ;;  %5098 = vst [vmem:[#allocation7_spill] sm:$0xff] %v4521_v54  ;;  %v3899_v7 = vld [vmem:[%s5081_s6 + $0x120] sm:$0xff]   ;;  %v3903_v42 = vld [vmem:[%s5081_s6 + $0x110] sm:$0xff]  }
  0x65   : > { %3647 = vmatpush3.bf16.msra.mxu1 %v3896_v4  ;;  %3608 = vmatprep.subr.bf16.mxu0 %v3897_v11  ;;  %v4537_v4 = vld [vmem:[#allocation2 + $0x62] sm:$0xff]  ;;  %5099 = vst [vmem:[#allocation8_spill] sm:$0xff] %v4541_v18  ;;  %677 = vst [vmem:[#allocation2 + $0xd7] sm:$0x2] %v4541_v18 }
  0x66   : > { %3648 = vmatprep.subr.bf16.mxu1 %v3898_v32  ;;  %675 = vst [vmem:[#allocation2 + $0xd9] sm:$0xff] %v4541_v18  ;;  %v601_v18 = vld [vmem:[%s4500_s25 + $0x8] sm:$0xff] }
  0x67   : > { %3545 = vmatmul.mubr.bf16.gmra.mxu0 %v4513_v8  ;;  %v3902_v8 = vld [vmem:[%s5081_s6 + $0x158] sm:$0xff]  }
  0x68   : > { %3585 = vmatmul.mubr.bf16.gmra.mxu1 %v1387_v56  ;;  %3609 = vmatpush3.bf16.msra.mxu0 %v3897_v11  ;;  %v4554_v11 = vpack.c.bf16 %v4532_v38, %v4525_v25  ;;  %v4560_v56 = vpack.c.bf16 %v4539_v16, %v4537_v4 }
  0x69   : > { %3649 = vmatpush3.bf16.msra.mxu1 %v3898_v32  ;;  %3548 = vmatprep.mubr.bf16.mxu0 %v4521_v54  ;;  %v1389_v32 = vpack.c.bf16 %v4374_v47, %v4341_v19  ;;  %v4568_v54 = vld [vmem:[#allocation2 + $0x72] sm:$0xff]  ;;  %v4574_v47 = vld [vmem:[#allocation2 + $0x7a] sm:$0xff] }
  0x6a   : > { %3588 = vmatprep.mubr.bf16.mxu1 %v1388_v21  ;;  %3610 = vmatprep.subr.bf16.mxu0 %v3899_v7  ;;  %5100 = vst [vmem:[#allocation9_spill] sm:$0xff] %v4554_v11  ;;  %5101 = vst [vmem:[#allocation10_spill] sm:$0xff] %v4560_v56  ;;  %v1390_v21 = vpack.c.bf16 %v4378_v51, %v4376_v48  ;;  %v3904_v19 = vld [vmem:[%s5081_s6 + $0x150] sm:$0xff]   ;;  %v4576_v48 = vld [vmem:[#allocation2 + $0x82] sm:$0xff] }
  0x6b   : > { %3650 = vmatprep.subr.bf16.mxu1 %v3900_v15  ;;  %v4578_v51 = vld [vmem:[#allocation2 + $0x8a] sm:$0xff] }
  0x6c   : > { %3611 = vmatpush3.bf16.msra.mxu0 %v3899_v7  ;;  %v3905_v7 = vld [vmem:[%s5081_s6 + $0x108] sm:$0xff]  }
  0x6d   : > { %3651 = vmatpush3.bf16.msra.mxu1 %v3900_v15  ;;  %3612 = vmatprep.subr.bf16.mxu0 %v3901_v1  ;;  %v4585_v15 = vpack.c.bf16 %v4574_v47, %v4568_v54 }
  0x6e   : > { %3652 = vmatprep.subr.bf16.mxu1 %v3902_v8 }
  0x6f   : > { %3549 = vmatmul.mubr.bf16.gmra.mxu0 %v4554_v11  ;;  %5102 = vst [vmem:[#allocation11_spill] sm:$0xff] %v4585_v15  ;;  %v4600_v11 = vld [vmem:[#allocation2 + $0xca] sm:$0xff] }
  0x70   : > { %3589 = vmatmul.mubr.bf16.gmra.mxu1 %v1389_v32  ;;  %3552 = vmatprep.mubr.bf16.mxu0 %v4560_v56  ;;  %v3906_v32 = vld [vmem:[%s5081_s6 + $0x148] sm:$0xff]  }
  0x71   : > { %3592 = vmatprep.mubr.bf16.mxu1 %v1390_v21  ;;  %3613 = vmatpush3.bf16.msra.mxu0 %v3901_v1  ;;  %v1391_v1 = vpack.c.bf16 %v4406_v17, %v4380_v52  ;;  %v1392_v21 = vpack.c.bf16 %v4413_v30, %v4411_v29  ;;  %v4598_v56 = vld [vmem:[#allocation2 + $0xc2] sm:$0xff]  ;;  %v603_v52 = vmul.f32 %v4111_v12, %v601_v18  ;;  %v4614_v30 = vld [vmem:[#allocation2 + $0x92] sm:$0xff]  ;;  %v4621_v18 = vld [vmem:[#allocation2 + $0xaa] sm:$0xff] }
  0x72   : > { %3653 = vmatpush3.bf16.msra.mxu1 %v3902_v8  ;;  %3614 = vmatprep.subr.bf16.mxu0 %v3903_v42  ;;  %v4594_v8 = vpack.c.bf16 %v4578_v51, %v4576_v48  ;;  %v3908_v29 = vld [vmem:[%s5081_s6 + $0x140] sm:$0xff]  }
  0x73   : > { %3654 = vmatprep.subr.bf16.mxu1 %v3904_v19  ;;  %v4619_v12 = vld [vmem:[#allocation2 + $0xa2] sm:$0xff] }
  0x74   : > { %5103 = vst [vmem:[#allocation12_spill] sm:$0xff] %v4594_v8 }
  0x75   : > { %3615 = vmatpush3.bf16.msra.mxu0 %v3903_v42  ;;  %v4616_v42 = vld [vmem:[#allocation2 + $0x9a] sm:$0xff] }
  0x76   : > { %3655 = vmatpush3.bf16.msra.mxu1 %v3904_v19  ;;  %3616 = vmatprep.subr.bf16.mxu0 %v3905_v7  ;;  %v605_v19 = vadd.f32 %v4116_v13, %v603_v52  ;;  %v3910_v13 = vld [vmem:[%s5081_s6 + $0x1f8] sm:$0xff]   ;;  %v4651_v52 = vld [vmem:[#allocation2 + $0xd0] sm:$0xff] }
  0x77   : > { %3553 = vmatmul.mubr.bf16.gmra.mxu0 %v4585_v15  ;;  %3656 = vmatprep.subr.bf16.mxu1 %v3906_v32  ;;  %v3912_v15 = vld [vmem:[%s5081_s6 + $0x1f0] sm:$0xff]  }
  0x78   : > { %3593 = vmatmul.mubr.bf16.gmra.mxu1 %v1391_v1  ;;  %3556 = vmatprep.mubr.bf16.mxu0 %v4594_v8  ;;  %v3909_v1 = vld [vmem:[%s5081_s6 + $0x1b8] sm:$0xff]   ;;  %v4626_v17 = vmax.f32 %v605_v19, 0.0  ;;  %v4630_v8 = vpack.c.bf16 %v4616_v42, %v4614_v30 }
  0x79   : > { %3596 = vmatprep.mubr.bf16.mxu1 %v1392_v21  ;;  %3617 = vmatpush3.bf16.msra.mxu0 %v3905_v7  ;;  %v1393_v7 = vpack.c.bf16 %v4441_v28, %v4419_v37  ;;  %v1394_v21 = vpack.c.bf16 %v4490_v31, %v4443_v0  ;;  %v4647_v28 = vld [vmem:[#allocation2 + $0xb2] sm:$0xff]  ;;  %v4649_v37 = vld [vmem:[#allocation2 + $0xba] sm:$0xff]  ;;  %v1395_v0 = vpack.c.bf16 %v4651_v52, %v4492_v62 }
  0x7a   : > { %3657 = vmatpush3.bf16.msra.mxu1 %v3906_v32  ;;  %3618 = vmatprep.subr.bf16.mxu0 %v3907_v2  ;;  %v4639_v32 = vpack.c.bf16 %v4621_v18, %v4619_v12  ;;  %676 = vst [vmem:[#allocation2 + $0xe1] sm:$0xff] %v4626_v17  ;;  %678 = vst [vmem:[#allocation2 + $0xe3] sm:$0x40] %v4626_v17  ;;  %v4655_v19 = vpack.c.bf16 %v4649_v37, %v4647_v28 }
  0x7b   : > { %3658 = vmatprep.subr.bf16.mxu1 %v3908_v29 }
  0x7d   : > { %3619 = vmatpush3.bf16.msra.mxu0 %v3907_v2  ;;  %v1860_v2 = vpack.c.bf16 %v4466_v39, %v4462_v53  ;;  %v5105_v53 = vpack.c.bf16 %v4175_v49, %v4250_v26  ;;  %v5106_v39 = vpack.c.bf16 %v4282_v40, %v4177_v50  ;;  %v3914_v49 = vld [vmem:[%s5081_s6 + $0x1e8] sm:$0xff]   ;;  %v1863_v26 = vpack.c.bf16 %v4525_v25, %v4509_v36  ;;  %v3915_v50 = vld [vmem:[%s5081_s6 + $0x1a0] sm:$0xff]   ;;  %v3920_v36 = vld [vmem:[%s5081_s6 + $0x1d0] sm:$0xff]  }
  0x7e   : > { %3659 = vmatpush3.bf16.msra.mxu1 %v3908_v29  ;;  %3684 = vmatprep.subr.bf16.mxu0 %v3909_v1  ;;  %v5104_v29 = vpack.c.bf16 %v4165_v43, %v4138_v24  ;;  %v1862_v24 = vpack.c.bf16 %v4507_v41, %v4484_v27  ;;  %v3913_v43 = vld [vmem:[%s5081_s6 + $0x1a8] sm:$0xff]   ;;  %v5107_v40 = vpack.c.bf16 %v4203_v60, %v4201_v59  ;;  %v3917_v27 = vld [vmem:[%s5081_s6 + $0x198] sm:$0xff]  }
  0x7f   : > { %3557 = vmatmul.mubr.bf16.gmra.mxu0 %v4630_v8  ;;  %3724 = vmatprep.subr.bf16.mxu1 %v3910_v13  ;;  %v5108_v25 = vpack.c.bf16 %v4205_v61, %v4296_v46  ;;  %v3918_v59 = vld [vmem:[%s5081_s6 + $0x1d8] sm:$0xff]   ;;  %v1865_v60 = vpack.c.bf16 %v4568_v54, %v4539_v16  ;;  %v1866_v61 = vpack.c.bf16 %v4576_v48, %v4574_v47  ;;  %v3919_v46 = vld [vmem:[%s5081_s6 + $0x190] sm:$0xff]   ;;  %v3924_v16 = vld [vmem:[%s5081_s6 + $0x1c0] sm:$0xff]  }
  0x80   : > { %3597 = vmatmul.mubr.bf16.gmra.mxu1 %v1393_v7  ;;  %3560 = vmatprep.mubr.bf16.mxu0 %v4639_v32  ;;  %v1861_v7 = vpack.c.bf16 %v4482_v44, %v4469_v20  ;;  %v1864_v20 = vpack.c.bf16 %v4537_v4, %v4532_v38  ;;  %v3916_v44 = vld [vmem:[%s5081_s6 + $0x1e0] sm:$0xff]   ;;  %v5109_v41 = vpack.c.bf16 %v4314_v63, %v4227_v5  ;;  %v3921_v38 = vld [vmem:[%s5081_s6 + $0x188] sm:$0xff]   ;;  %v3925_v48 = vld [vmem:[%s5081_s6 + $0x238] sm:$0xff]  }
  0x81   : > { %3600 = vmatprep.mubr.bf16.mxu1 %v1394_v21  ;;  %v3911_v21 = vld [vmem:[%s5081_s6 + $0x1b0] sm:$0xff]   ;;  %v5110_v54 = vpack.c.bf16 %v4262_v33, %v4229_v6  ;;  %v3922_v5 = vld [vmem:[%s5081_s6 + $0x1c8] sm:$0xff]   ;;  %v1867_v63 = vpack.c.bf16 %v4614_v30, %v4578_v51  ;;  %v1868_v6 = vpack.c.bf16 %v4619_v12, %v4616_v42  ;;  %v3923_v33 = vld [vmem:[%s5081_s6 + $0x180] sm:$0xff]   ;;  %v5111_v4 = vpack.c.bf16 %v4265_v34, %v4343_v22 }
  0x82   : > { %v5112_v47 = vpack.c.bf16 %v4382_v55, %v4267_v35  ;;  %v1869_v34 = vpack.c.bf16 %v4647_v28, %v4621_v18  ;;  %v1870_v22 = vpack.c.bf16 %v4598_v56, %v4649_v37  ;;  %v5113_v35 = vpack.c.bf16 %v4330_v14, %v4327_v10  ;;  %v4760_v51 = vld [vmem:[#allocation2 + $0xd1] sm:$0xff]  ;;  %v2313_v18 = vld [vmem:[#allocation2 + $0x39] sm:$0xff]  ;;  %v2077_v28 = vld [vmem:[#allocation2 + $0x48] sm:$0xff] }
  0x83   : > { %v5114_v55 = vpack.c.bf16 %v4347_v23, %v4389_v58  ;;  %v2074_v30 = vld [vmem:[#allocation2 + $0x30] sm:$0xff]  ;;  %v2075_v42 = vld [vmem:[#allocation2 + $0x38] sm:$0xff]  ;;  %v2076_v58 = vld [vmem:[#allocation2 + $0x40] sm:$0xff] }
  0x84   : > { %v2312_v12 = vld [vmem:[#allocation2 + $0x31] sm:$0xff]  ;;  %v2098_v14 = vpack.c.bf16 %v2075_v42, %v2074_v30  ;;  %v2314_v37 = vld [vmem:[#allocation2 + $0x41] sm:$0xff] }
  0x85   : > { %v5118_v30 = vld [vmem:[#allocation8_spill] sm:$0xff] }
  0x86   : > { %v2346_v42 = vpack.c.bf16 %v5118_v30, %v4760_v51 }
  0x87   : > { %3561 = vmatmul.mubr.bf16.gmra.mxu0 %v4655_v19 }
  0x88   : > { %3601 = vmatmul.mubr.bf16.gmra.mxu1 %v1395_v0  ;;  %3620 = vmatprep.mubr.bf16.mxu0 %v5104_v29  ;;  %v2315_v0 = vld [vmem:[#allocation2 + $0x49] sm:$0xff] }
  0x89   : > { %3660 = vmatprep.mubr.bf16.mxu1 %v1860_v2  ;;  %v2099_v2 = vpack.c.bf16 %v2077_v28, %v2076_v58  ;;  %v2078_v29 = vld [vmem:[#allocation2 + $0x50] sm:$0xff]  ;;  %v2571_v28 = vld [vmem:[#allocation2 + $0xda] sm:$0xff] }
  0x8f   : > { %3621 = vmatmul.mubr.bf16.vlgmr.msra.gmra.mxu0 %v5105_v53  ;;  %v2316_v53 = vld [vmem:[#allocation2 + $0x51] sm:$0xff] }
  0x90   : > { %3661 = vmatmul.mubr.bf16.vlgmr.msra.gmra.mxu1 %v1861_v7  ;;  %3685 = vmatpush3.bf16.msra.mxu0 %v3909_v1  ;;  %v1633_v1 = vpack.c.bf16 %v4760_v51, %v4458_v3  ;;  %v2079_v7 = vld [vmem:[#allocation2 + $0x58] sm:$0xff]  ;;  %v5121_v51 = vld [vmem:[#allocation6_spill] sm:$0xff] }
  0x91   : > { %3725 = vmatpush3.bf16.msra.mxu1 %v3910_v13  ;;  %3686 = vmatprep.subr.bf16.mxu0 %v3911_v21  ;;  %v2336_v13 = vpack.c.bf16 %v2313_v18, %v2312_v12  ;;  %v5120_v12 = vpack.c.bf16 %v4458_v3, %v4347_v23  ;;  %v2096_v18 = vld [vmem:[#allocation2 + $0xe0] sm:$0xff]  ;;  %v5123_v3 = vld [vmem:[#allocation9_spill] sm:$0xff] }
  0x92   : > { %3726 = vmatprep.subr.bf16.mxu1 %v3912_v15  ;;  %3624 = vmatprep.mubr.bf16.mxu0 %v5106_v39  ;;  %v2100_v39 = vpack.c.bf16 %v2079_v7, %v2078_v29 }
  0x93   : > { %3664 = vmatprep.mubr.bf16.mxu1 %v1862_v24  ;;  %v2317_v24 = vld [vmem:[#allocation2 + $0x59] sm:$0xff] }
  0x94   : > { %3687 = vmatpush3.bf16.msra.mxu0 %v3911_v21  ;;  %v2337_v21 = vpack.c.bf16 %v2315_v0, %v2314_v37 }
  0x95   : > { %3727 = vmatpush3.bf16.msra.mxu1 %v3912_v15  ;;  %3688 = vmatprep.subr.bf16.mxu0 %v3913_v43  ;;  %v4762_v15 = vld [vmem:[#allocation2 + $0xd2] sm:$0xff] }
  0x96   : > { %3728 = vmatprep.subr.bf16.mxu1 %v3914_v49  ;;  %v1871_v10 = vpack.c.bf16 %v4762_v15, %v4600_v11  ;;  %v2584_v29 = vpack.c.bf16 %v2571_v28, %v4762_v15 }
  0x97   : > { %3625 = vmatmul.mubr.bf16.gmra.mxu0 %v5107_v40  ;;  %v2319_v40 = vld [vmem:[#allocation2 + $0x69] sm:$0xff] }
  0x98   : > { %3665 = vmatmul.mubr.bf16.gmra.mxu1 %v1863_v26  ;;  %3689 = vmatpush3.bf16.msra.mxu0 %v3913_v43  ;;  %v3926_v43 = vld [vmem:[%s5081_s6 + $0x230] sm:$0xff]   ;;  %v2080_v26 = vld [vmem:[#allocation2 + $0x60] sm:$0xff] }
  0x99   : > { %3729 = vmatpush3.bf16.msra.mxu1 %v3914_v49  ;;  %3628 = vmatprep.mubr.bf16.mxu0 %v5108_v25  ;;  %v2338_v49 = vpack.c.bf16 %v2317_v24, %v2316_v53  ;;  %v2082_v25 = vld [vmem:[#allocation2 + $0x70] sm:$0xff] }
  0x9a   : > { %3668 = vmatprep.mubr.bf16.mxu1 %v1864_v20  ;;  %3690 = vmatprep.subr.bf16.mxu0 %v3915_v50  ;;  %v2081_v20 = vld [vmem:[#allocation2 + $0x68] sm:$0xff]  ;;  %v5124_v53 = vld [vmem:[#allocation10_spill] sm:$0xff] }
  0x9b   : > { %3730 = vmatprep.subr.bf16.mxu1 %v3916_v44 }
  0x9c   : > { %3691 = vmatpush3.bf16.msra.mxu0 %v3915_v50  ;;  %v2318_v50 = vld [vmem:[#allocation2 + $0x61] sm:$0xff] }
  0x9d   : > { %3731 = vmatpush3.bf16.msra.mxu1 %v3916_v44  ;;  %3692 = vmatprep.subr.bf16.mxu0 %v3917_v27  ;;  %v3927_v44 = vld [vmem:[%s5081_s6 + $0x228] sm:$0xff]  }
  0x9e   : > { %3732 = vmatprep.subr.bf16.mxu1 %v3918_v59 }
  0x9f   : > { %3629 = vmatmul.mubr.bf16.gmra.mxu0 %v5109_v41 }
  0xa0   : > { %3669 = vmatmul.mubr.bf16.gmra.mxu1 %v1865_v60  ;;  %3632 = vmatprep.mubr.bf16.mxu0 %v5110_v54  ;;  %v2320_v60 = vld [vmem:[#allocation2 + $0x71] sm:$0xff]  ;;  %v3928_v54 = vld [vmem:[%s5081_s6 + $0x220] sm:$0xff]  }
  0xa1   : > { %3672 = vmatprep.mubr.bf16.mxu1 %v1866_v61  ;;  %3693 = vmatpush3.bf16.msra.mxu0 %v3917_v27  ;;  %v2083_v27 = vld [vmem:[#allocation2 + $0x78] sm:$0xff] }
  0xa2   : > { %3733 = vmatpush3.bf16.msra.mxu1 %v3918_v59  ;;  %3694 = vmatprep.subr.bf16.mxu0 %v3919_v46  ;;  %v2101_v59 = vpack.c.bf16 %v2081_v20, %v2080_v26  ;;  %v2321_v61 = vld [vmem:[#allocation2 + $0x79] sm:$0xff]  ;;  %v2102_v41 = vpack.c.bf16 %v2083_v27, %v2082_v25  ;;  %v2572_v26 = vld [vmem:[#allocation2 + $0xe2] sm:$0xff]  ;;  %v2573_v20 = vld [vmem:[#allocation2 + $0xea] sm:$0xff] }
  0xa3   : > { %3734 = vmatprep.subr.bf16.mxu1 %v3920_v36  ;;  %v2585_v25 = vpack.c.bf16 %v2573_v20, %v2572_v26 }
  0xa5   : > { %3695 = vmatpush3.bf16.msra.mxu0 %v3919_v46  ;;  %v2339_v46 = vpack.c.bf16 %v2319_v40, %v2318_v50 }
  0xa6   : > { %3735 = vmatpush3.bf16.msra.mxu1 %v3920_v36  ;;  %3696 = vmatprep.subr.bf16.mxu0 %v3921_v38  ;;  %v2340_v36 = vpack.c.bf16 %v2321_v61, %v2320_v60 }
  0xa7   : > { %3633 = vmatmul.mubr.bf16.gmra.mxu0 %v5111_v4  ;;  %3736 = vmatprep.subr.bf16.mxu1 %v3922_v5 }
  0xa8   : > { %3673 = vmatmul.mubr.bf16.gmra.mxu1 %v1867_v63  ;;  %3636 = vmatprep.mubr.bf16.mxu0 %v5112_v47  ;;  %v3929_v63 = vld [vmem:[%s5081_s6 + $0x218] sm:$0xff]   ;;  %v3930_v47 = vld [vmem:[%s5081_s6 + $0x210] sm:$0xff]  }
  0xa9   : > { %3676 = vmatprep.mubr.bf16.mxu1 %v1868_v6  ;;  %3697 = vmatpush3.bf16.msra.mxu0 %v3921_v38  ;;  %v2322_v38 = vld [vmem:[#allocation2 + $0x81] sm:$0xff]  ;;  %v2324_v6 = vld [vmem:[#allocation2 + $0x91] sm:$0xff] }
  0xaa   : > { %3737 = vmatpush3.bf16.msra.mxu1 %v3922_v5  ;;  %3698 = vmatprep.subr.bf16.mxu0 %v3923_v33  ;;  %v2323_v5 = vld [vmem:[#allocation2 + $0x89] sm:$0xff] }
  0xab   : > { %3738 = vmatprep.subr.bf16.mxu1 %v3924_v16  ;;  %v2341_v4 = vpack.c.bf16 %v2323_v5, %v2322_v38 }
  0xad   : > { %3699 = vmatpush3.bf16.msra.mxu0 %v3923_v33  ;;  %v2325_v33 = vld [vmem:[#allocation2 + $0x99] sm:$0xff] }
  0xae   : > { %3739 = vmatpush3.bf16.msra.mxu1 %v3924_v16  ;;  %3764 = vmatprep.subr.bf16.mxu0 %v3925_v48  ;;  %v2342_v16 = vpack.c.bf16 %v2325_v33, %v2324_v6 }
  0xaf   : > { %3637 = vmatmul.mubr.bf16.gmra.mxu0 %v5113_v35  ;;  %3804 = vmatprep.subr.bf16.mxu1 %v3925_v48  ;;  %v2095_v35 = vld [vmem:[#allocation2 + $0xd8] sm:$0xff] }
  0xb0   : > { %3677 = vmatmul.mubr.bf16.gmra.mxu1 %v1869_v34  ;;  %3640 = vmatprep.mubr.bf16.mxu0 %v5114_v55  ;;  %v3932_v34 = vld [vmem:[%s5081_s6 + $0x200] sm:$0xff]   ;;  %v2108_v55 = vpack.c.bf16 %v2095_v35, %v4651_v52 }
  0xb1   : > { %3680 = vmatprep.mubr.bf16.mxu1 %v1870_v22  ;;  %v5117_v22 = vld [vmem:[#allocation4_spill] sm:$0xff] }
  0xb7   : > { %3641 = vmatmul.mubr.bf16.gmra.mxu0 %v1633_v1  ;;  %v2097_v1 = vld [vmem:[#allocation2 + $0xe8] sm:$0xff] }
  0xb8   : > { %3681 = vmatmul.mubr.bf16.gmra.mxu1 %v1871_v10  ;;  %3700 = vmatprep.mubr.bf16.mxu0 %v2098_v14  ;;  %v2335_v10 = vld [vmem:[#allocation2 + $0xe9] sm:$0xff]  ;;  %v2109_v14 = vpack.c.bf16 %v2097_v1, %v2096_v18 }
  0xb9   : > { %3740 = vmatprep.mubr.bf16.mxu1 %v2336_v13  ;;  %v2347_v52 = vpack.c.bf16 %v2335_v10, %v4626_v17 }
  0xbf   : > { %3701 = vmatmul.mubr.bf16.vlgmr.msra.gmra.mxu0 %v2099_v2 }
  0xc0   : > { %3741 = vmatmul.mubr.bf16.vlgmr.msra.gmra.mxu1 %v2337_v21  ;;  %3765 = vmatpush3.bf16.msra.mxu0 %v3925_v48 }
  0xc1   : > { %3812 = vmatpush3.bf16.msra.mxu1 %v3925_v48  ;;  %3766 = vmatprep.subr.bf16.mxu0 %v3926_v43  ;;  %v3931_v48 = vld [vmem:[%s5081_s6 + $0x208] sm:$0xff]  }
  0xc2   : > { %3805 = vmatprep.subr.bf16.mxu1 %v3926_v43  ;;  %3704 = vmatprep.mubr.bf16.mxu0 %v2100_v39 }
  0xc3   : > { %3744 = vmatprep.mubr.bf16.mxu1 %v2338_v49 }
  0xc4   : > { %3767 = vmatpush3.bf16.msra.mxu0 %v3926_v43 }
  0xc5   : > { %3813 = vmatpush3.bf16.msra.mxu1 %v3926_v43  ;;  %3768 = vmatprep.subr.bf16.mxu0 %v3927_v44  ;;  %v5126_v43 = vld [vmem:[#allocation11_spill] sm:$0xff] }
  0xc6   : > { %3806 = vmatprep.subr.bf16.mxu1 %v3927_v44 }
  0xc7   : > { %3705 = vmatmul.mubr.bf16.gmra.mxu0 %v2101_v59 }
  0xc8   : > { %3745 = vmatmul.mubr.bf16.gmra.mxu1 %v2339_v46  ;;  %3769 = vmatpush3.bf16.msra.mxu0 %v3927_v44 }
  0xc9   : > { %3814 = vmatpush3.bf16.msra.mxu1 %v3927_v44  ;;  %3708 = vmatprep.mubr.bf16.mxu0 %v2102_v41 }
  0xca   : > { %3748 = vmatprep.mubr.bf16.mxu1 %v2340_v36  ;;  %3770 = vmatprep.subr.bf16.mxu0 %v3928_v54 }
  0xcb   : > { %3807 = vmatprep.subr.bf16.mxu1 %v3928_v54 }
  0xcc   : > { %3771 = vmatpush3.bf16.msra.mxu0 %v3928_v54 }
  0xcd   : > { %3815 = vmatpush3.bf16.msra.mxu1 %v3928_v54  ;;  %3772 = vmatprep.subr.bf16.mxu0 %v3929_v63 }
  0xce   : > { %3808 = vmatprep.subr.bf16.mxu1 %v3929_v63 }
  0xcf   : > { %3709 = vmatmul.mubr.bf16.gmra.mxu0 %v4401_v9  ;;  %v5115_v9 = vld [vmem:[#allocation3_spill] sm:$0xff] }
  0xd0   : > { %3749 = vmatmul.mubr.bf16.gmra.mxu1 %v2341_v4  ;;  %3712 = vmatprep.mubr.bf16.mxu0 %v4428_v45  ;;  %v5116_v45 = vld [vmem:[#allocation5_spill] sm:$0xff] }
  0xd1   : > { %3752 = vmatprep.mubr.bf16.mxu1 %v2342_v16  ;;  %3773 = vmatpush3.bf16.msra.mxu0 %v3929_v63 }
  0xd2   : > { %3816 = vmatpush3.bf16.msra.mxu1 %v3929_v63  ;;  %3774 = vmatprep.subr.bf16.mxu0 %v3930_v47 }
  0xd3   : > { %3809 = vmatprep.subr.bf16.mxu1 %v3930_v47 }
  0xd5   : > { %3775 = vmatpush3.bf16.msra.mxu0 %v3930_v47 }
  0xd6   : > { %3817 = vmatpush3.bf16.msra.mxu1 %v3930_v47  ;;  %3776 = vmatprep.subr.bf16.mxu0 %v3931_v48 }
  0xd7   : > { %3713 = vmatmul.mubr.bf16.gmra.mxu0 %v4436_v57  ;;  %3810 = vmatprep.subr.bf16.mxu1 %v3931_v48  ;;  %v5119_v57 = vpack.c.bf16 %v4492_v62, %v4490_v31  ;;  %v5122_v31 = vld [vmem:[#allocation7_spill] sm:$0xff] }
  0xd8   : > { %3753 = vmatmul.mubr.bf16.gmra.mxu1 %v5115_v9  ;;  %3716 = vmatprep.mubr.bf16.mxu0 %v5116_v45 }
  0xd9   : > { %3756 = vmatprep.mubr.bf16.mxu1 %v5117_v22  ;;  %3777 = vmatpush3.bf16.msra.mxu0 %v3931_v48 }
  0xda   : > { %3818 = vmatpush3.bf16.msra.mxu1 %v3931_v48  ;;  %3778 = vmatprep.subr.bf16.mxu0 %v3932_v34 }
  0xdb   : > { %3811 = vmatprep.subr.bf16.mxu1 %v3932_v34 }
  0xdd   : > { %3779 = vmatpush3.bf16.msra.mxu0 %v3932_v34 }
  0xde   : > { %3819 = vmatpush3.bf16.msra.mxu1 %v3932_v34 }
  0xdf   : > { %3717 = vmatmul.mubr.bf16.gmra.mxu0 %v5119_v57 }
  0xe0   : > { %3757 = vmatmul.mubr.bf16.gmra.mxu1 %v5120_v12  ;;  %3720 = vmatprep.mubr.bf16.mxu0 %v2108_v55 }
  0xe1   : > { %3760 = vmatprep.mubr.bf16.mxu1 %v2346_v42 }
  0xe7   : > { %3721 = vmatmul.mubr.bf16.gmra.mxu0 %v2109_v14 }
  0xe8   : > { %3761 = vmatmul.mubr.bf16.gmra.mxu1 %v2347_v52  ;;  %3780 = vmatprep.mubr.bf16.mxu0 %v5121_v51 }
  0xe9   : > { %3792 = vmatprep.mubr.bf16.mxu1 %v4630_v8 }
  0xef   : > { %v3462_v62 = vpop.f32.mrf.mxu0  ;;  %3781 = vmatmul.mubr.bf16.vlgmr.msra.gmra.mxu0 %v5122_v31 }
  0xf0   : > { %v3502_v13 = vpop.f32.mrf.mxu1  ;;  %3793 = vmatmul.mubr.bf16.vlgmr.msra.gmra.mxu1 %v4639_v32  ;;  %3784 = vmatprep.mubr.bf16.mxu0 %v5123_v3 }
  0xf1   : > { %v866_v23 = vpop.f32.mrf.mxu0  ;;  %3796 = vmatprep.mubr.bf16.mxu1 %v4655_v19  ;;  %v5125_v19 = vpack.c.bf16 %v4600_v11, %v4598_v56  ;;  %v5127_v56 = vld [vmem:[#allocation12_spill] sm:$0xff] }
  0xf2   : > { %v1035_v58 = vpop.f32.mrf.mxu1 }
  0xf3   : > { %v4811_v17 = vadd.f32 %v1035_v58, %v866_v23  ;;  %v3463_v37 = vpop.f32.mrf.mxu0 }
  0xf4   : > { %v3503_v0 = vpop.f32.mrf.mxu1 }
  0xf5   : > { %v4813_v2 = vadd.f32 %v3503_v0, %v3463_v37  ;;  %v869_v8 = vpop.f32.mrf.mxu0 }
  0xf6   : > { %v1038_v7 = vpop.f32.mrf.mxu1 }
  0xf7   : > { %v4816_v21 = vadd.f32 %v1038_v7, %v869_v8  ;;  %v3466_v32 = vpop.f32.mrf.mxu0  ;;  %3785 = vmatmul.mubr.bf16.gmra.mxu0 %v5124_v53 }
  0xf8   : > { %v3506_v24 = vpop.f32.mrf.mxu1  ;;  %3797 = vmatmul.mubr.bf16.gmra.mxu1 %v5125_v19  ;;  %3788 = vmatprep.mubr.bf16.mxu0 %v5126_v43 }
  0xf9   : > { %v4823_v39 = vadd.f32 %v3506_v24, %v3466_v32  ;;  %v881_v49 = vpop.f32.mrf.mxu0  ;;  %3800 = vmatprep.mubr.bf16.mxu1 %v2584_v29 }
  0xfa   : > { %v1050_v15 = vpop.f32.mrf.mxu1 }
  0xfb   : > { %v4825_v50 = vadd.f32 %v1050_v15, %v881_v49  ;;  %v3467_v40 = vpop.f32.mrf.mxu0 }
  0xfc   : > { %v3507_v44 = vpop.f32.mrf.mxu1 }
  0xfd   : > { %v4827_v27 = vadd.f32 %v3507_v44, %v3467_v40  ;;  %v884_v59 = vpop.f32.mrf.mxu0 }
  0xfe   : > { %v1053_v60 = vpop.f32.mrf.mxu1 }
  0xff   : > { %v3470_v11 = vpop.f32.mrf.mxu0  ;;  %3789 = vmatmul.mubr.bf16.gmra.mxu0 %v5127_v56 }
 0x100   : > { %v3510_v61 = vpop.f32.mrf.mxu1  ;;  %3801 = vmatmul.mubr.bf16.gmra.mxu1 %v2585_v25 }
 0x101   : > { %v4830_v46 = vadd.f32 %v3510_v61, %v3470_v11  ;;  %v896_v41 = vpop.f32.mrf.mxu0 }
 0x102   : > { %v1065_v36 = vpop.f32.mrf.mxu1 }
 0x103   : > { %v3471_v54 = vpop.f32.mrf.mxu0 }
 0x104   : > { %v3511_v38 = vpop.f32.mrf.mxu1 }
 0x105   : > { %v898_v5 = vpop.f32.mrf.mxu0 }
 0x106   : > { %v1067_v63 = vpop.f32.mrf.mxu1 }
 0x107   : > { %v4832_v6 = vadd.f32 %v1067_v63, %v898_v5  ;;  %v3474_v33 = vpop.f32.mrf.mxu0 }
 0x108   : > { %v3514_v4 = vpop.f32.mrf.mxu1 }
 0x109   : > { %v910_v16 = vpop.f32.mrf.mxu0 }
 0x10a   : > { %v1079_v47 = vpop.f32.mrf.mxu1 }
 0x10b   : > { %v4834_v48 = vadd.f32 %v1079_v47, %v910_v16  ;;  %v3475_v34 = vpop.f32.mrf.mxu0 }
 0x10c   : > { %v3515_v9 = vpop.f32.mrf.mxu1 }
 0x10d   : > { %v4836_v45 = vadd.f32 %v3515_v9, %v3475_v34  ;;  %v913_v22 = vpop.f32.mrf.mxu0 }
 0x10e   : > { %v1082_v35 = vpop.f32.mrf.mxu1 }
 0x10f   : > { %v4838_v55 = vadd.f32 %v1082_v35, %v913_v22  ;;  %v3478_v30 = vpop.f32.mrf.mxu0 }
 0x110   : > { %v3518_v42 = vpop.f32.mrf.mxu1 }
 0x111   : > { %v4840_v57 = vadd.f32 %v3518_v42, %v3478_v30  ;;  %v925_v12 = vpop.f32.mrf.mxu0 }
 0x112   : > { %v1094_v18 = vpop.f32.mrf.mxu1 }
 0x113   : > { %v4842_v1 = vadd.f32 %v1094_v18, %v925_v12  ;;  %v3479_v10 = vpop.f32.mrf.mxu0 }
 0x114   : > { %v3519_v14 = vpop.f32.mrf.mxu1 }
 0x115   : > { %v4844_v52 = vadd.f32 %v3519_v14, %v3479_v10  ;;  %v928_v51 = vpop.f32.mrf.mxu0 }
 0x116   : > { %v1097_v62 = vpop.f32.mrf.mxu1 }
 0x117   : > { %v3482_v31 = vpop.f32.mrf.mxu0 }
 0x118   : > { %v3522_v13 = vpop.f32.mrf.mxu1 }
 0x119   : > { %v4846_v3 = vadd.f32 %v3522_v13, %v3482_v31  ;;  %v940_v23 = vpop.f32.mrf.mxu0 }
 0x11a   : > { %v1109_v58 = vpop.f32.mrf.mxu1 }
 0x11b   : > { %v3483_v28 = vpop.f32.mrf.mxu0 }
 0x11c   : > { %v3523_v37 = vpop.f32.mrf.mxu1 }
 0x11d   : > { %v942_v0 = vpop.f32.mrf.mxu0 }
 0x11e   : > { %v1111_v8 = vpop.f32.mrf.mxu1 }
 0x11f   : > { %v4848_v29 = vadd.f32 %v1111_v8, %v942_v0  ;;  %v3542_v7 = vpop.f32.mrf.mxu0 }
 0x120   : > { %v3582_v32 = vpop.f32.mrf.mxu1 }
 0x121   : > { %v1257_v53 = vpop.f32.mrf.mxu0 }
 0x122   : > { %v1344_v24 = vadd.f32 %v1257_v53, %v4811_v17  ;;  %v1495_v19 = vpop.f32.mrf.mxu1 }
 0x123   : > { %v3543_v43 = vpop.f32.mrf.mxu0 }
 0x124   : > { %v4851_v49 = vadd.f32 %v1495_v19, %v1344_v24  ;;  %v1346_v26 = vadd.f32 %v3543_v43, %v4813_v2  ;;  %v3583_v20 = vpop.f32.mrf.mxu1 }
 0x125   : > { %v1260_v15 = vpop.f32.mrf.mxu0 }
 0x126   : > { %v4854_v40 = vadd.f32 %v3583_v20, %v1346_v26  ;;  %v1345_v44 = vadd.f32 %v1260_v15, %v4816_v21  ;;  %v1498_v25 = vpop.f32.mrf.mxu1 }
 0x127   : > { %v3546_v59 = vpop.f32.mrf.mxu0 }
 0x128   : > { %v4857_v60 = vadd.f32 %v1498_v25, %v1345_v44  ;;  %v1348_v11 = vadd.f32 %v3546_v59, %v4823_v39  ;;  %v3586_v56 = vpop.f32.mrf.mxu1 }
 0x129   : > { %v1272_v17 = vpop.f32.mrf.mxu0 }
 0x12a   : > { %v4860_v61 = vadd.f32 %v3586_v56, %v1348_v11  ;;  %v1347_v41 = vadd.f32 %v1272_v17, %v4825_v50  ;;  %v1510_v36 = vpop.f32.mrf.mxu1 }
 0x12b   : > { %v3547_v2 = vpop.f32.mrf.mxu0 }
 0x12c   : > { %v4863_v54 = vadd.f32 %v1510_v36, %v1347_v41  ;;  %v1349_v38 = vadd.f32 %v3547_v2, %v4827_v27  ;;  %v3587_v5 = vpop.f32.mrf.mxu1 }
 0x12d   : > { %v1275_v21 = vpop.f32.mrf.mxu0 }
 0x12e   : > { %v4866_v63 = vadd.f32 %v3587_v5, %v1349_v38  ;;  %v1513_v33 = vpop.f32.mrf.mxu1 }
 0x12f   : > { %v3550_v4 = vpop.f32.mrf.mxu0 }
 0x130   : > { %v1351_v39 = vadd.f32 %v3550_v4, %v4830_v46  ;;  %v3590_v16 = vpop.f32.mrf.mxu1 }
 0x131   : > { %v1287_v47 = vpop.f32.mrf.mxu0 }
 0x132   : > { %v4869_v34 = vadd.f32 %v3590_v16, %v1351_v39  ;;  %v1525_v9 = vpop.f32.mrf.mxu1 }
 0x133   : > { %v3551_v50 = vpop.f32.mrf.mxu0 }
 0x134   : > { %v3591_v22 = vpop.f32.mrf.mxu1 }
 0x135   : > { %v1289_v35 = vpop.f32.mrf.mxu0 }
 0x136   : > { %v1350_v30 = vadd.f32 %v1289_v35, %v4832_v6  ;;  %v1527_v42 = vpop.f32.mrf.mxu1 }
 0x137   : > { %v3554_v27 = vpop.f32.mrf.mxu0 }
 0x138   : > { %v4872_v12 = vadd.f32 %v1527_v42, %v1350_v30  ;;  %v3594_v18 = vpop.f32.mrf.mxu1 }
 0x139   : > { %v1301_v10 = vpop.f32.mrf.mxu0 }
 0x13a   : > { %v1352_v14 = vadd.f32 %v1301_v10, %v4834_v48  ;;  %v1539_v51 = vpop.f32.mrf.mxu1 }
 0x13b   : > { %v3555_v46 = vpop.f32.mrf.mxu0 }
 0x13c   : > { %v4875_v62 = vadd.f32 %v1539_v51, %v1352_v14  ;;  %v1354_v31 = vadd.f32 %v3555_v46, %v4836_v45  ;;  %v3595_v13 = vpop.f32.mrf.mxu1 }
 0x13d   : > { %v1304_v23 = vpop.f32.mrf.mxu0 }
 0x13e   : > { %v4878_v58 = vadd.f32 %v3595_v13, %v1354_v31  ;;  %v1353_v6 = vadd.f32 %v1304_v23, %v4838_v55  ;;  %v1542_v28 = vpop.f32.mrf.mxu1 }
 0x13f   : > { %v3558_v37 = vpop.f32.mrf.mxu0 }
 0x140   : > { %v4881_v0 = vadd.f32 %v1542_v28, %v1353_v6  ;;  %v1356_v8 = vadd.f32 %v3558_v37, %v4840_v57  ;;  %v3598_v7 = vpop.f32.mrf.mxu1 }
 0x141   : > { %v1316_v48 = vpop.f32.mrf.mxu0 }
 0x142   : > { %v4884_v32 = vadd.f32 %v3598_v7, %v1356_v8  ;;  %v1355_v53 = vadd.f32 %v1316_v48, %v4842_v1  ;;  %v1554_v24 = vpop.f32.mrf.mxu1 }
 0x143   : > { %v3559_v45 = vpop.f32.mrf.mxu0 }
 0x144   : > { %v4887_v19 = vadd.f32 %v1554_v24, %v1355_v53  ;;  %v1357_v43 = vadd.f32 %v3559_v45, %v4844_v52  ;;  %v3599_v26 = vpop.f32.mrf.mxu1 }
 0x145   : > { %v1319_v55 = vpop.f32.mrf.mxu0 }
 0x146   : > { %v4890_v20 = vadd.f32 %v3599_v26, %v1357_v43  ;;  %v1557_v15 = vpop.f32.mrf.mxu1 }
 0x147   : > { %v3562_v44 = vpop.f32.mrf.mxu0 }
 0x148   : > { %v1359_v57 = vadd.f32 %v3562_v44, %v4846_v3  ;;  %v3602_v25 = vpop.f32.mrf.mxu1 }
 0x149   : > { %v1331_v59 = vpop.f32.mrf.mxu0 }
 0x14a   : > { %v4893_v11 = vadd.f32 %v3602_v25, %v1359_v57  ;;  %v1569_v56 = vpop.f32.mrf.mxu1 }
 0x14b   : > { %v3563_v1 = vpop.f32.mrf.mxu0 }
 0x14c   : > { %v3603_v17 = vpop.f32.mrf.mxu1 }
 0x14d   : > { %v1333_v41 = vpop.f32.mrf.mxu0 }
 0x14e   : > { %v1358_v36 = vadd.f32 %v1333_v41, %v4848_v29  ;;  %v1571_v2 = vpop.f32.mrf.mxu1 }
 0x14f   : > { %v3622_v52 = vpop.f32.mrf.mxu0 }
 0x150   : > { %v4896_v38 = vadd.f32 %v1571_v2, %v1358_v36  ;;  %v3662_v5 = vpop.f32.mrf.mxu1 }
 0x151   : > { %v1733_v21 = vpop.f32.mrf.mxu0 }
 0x152   : > { %v1820_v33 = vadd.f32 %v1733_v21, %v4851_v49  ;;  %v1971_v4 = vpop.f32.mrf.mxu1 }
 0x153   : > { %v3623_v3 = vpop.f32.mrf.mxu0 }
 0x154   : > { %v4899_v39 = vadd.f32 %v1971_v4, %v1820_v33  ;;  %v1822_v16 = vadd.f32 %v3623_v3, %v4854_v40  ;;  %v3663_v47 = vpop.f32.mrf.mxu1 }
 0x155   : > { %v1736_v9 = vpop.f32.mrf.mxu0 }
 0x156   : > { %v4902_v50 = vadd.f32 %v3663_v47, %v1822_v16  ;;  %v1821_v29 = vadd.f32 %v1736_v9, %v4857_v60  ;;  %v1974_v22 = vpop.f32.mrf.mxu1 }
 0x157   : > { %v3626_v35 = vpop.f32.mrf.mxu0 }
 0x158   : > { %v4905_v30 = vadd.f32 %v1974_v22, %v1821_v29  ;;  %v1824_v42 = vadd.f32 %v3626_v35, %v4860_v61  ;;  %v3666_v27 = vpop.f32.mrf.mxu1 }
 0x159   : > { %v1748_v49 = vpop.f32.mrf.mxu0 }
 0x15a   : > { %v4908_v18 = vadd.f32 %v3666_v27, %v1824_v42  ;;  %v1823_v10 = vadd.f32 %v1748_v49, %v4863_v54  ;;  %v1986_v14 = vpop.f32.mrf.mxu1 }
 0x15b   : > { %v3627_v40 = vpop.f32.mrf.mxu0 }
 0x15c   : > { %v4911_v51 = vadd.f32 %v1986_v14, %v1823_v10  ;;  %v1825_v46 = vadd.f32 %v3627_v40, %v4866_v63  ;;  %v3667_v31 = vpop.f32.mrf.mxu1 }
 0x15d   : > { %v1751_v60 = vpop.f32.mrf.mxu0 }
 0x15e   : > { %v4914_v13 = vadd.f32 %v3667_v31, %v1825_v46  ;;  %v1989_v23 = vpop.f32.mrf.mxu1 }
 0x15f   : > { %v3630_v6 = vpop.f32.mrf.mxu0 }
 0x160   : > { %v1827_v61 = vadd.f32 %v3630_v6, %v4869_v34  ;;  %v3670_v28 = vpop.f32.mrf.mxu1 }
 0x161   : > { %v1763_v37 = vpop.f32.mrf.mxu0 }
 0x162   : > { %v4917_v8 = vadd.f32 %v3670_v28, %v1827_v61  ;;  %v2001_v7 = vpop.f32.mrf.mxu1 }
 0x163   : > { %v3631_v54 = vpop.f32.mrf.mxu0 }
 0x164   : > { %v3671_v48 = vpop.f32.mrf.mxu1 }
 0x165   : > { %v1765_v53 = vpop.f32.mrf.mxu0 }
 0x166   : > { %v1826_v24 = vadd.f32 %v1765_v53, %v4872_v12  ;;  %v2003_v45 = vpop.f32.mrf.mxu1 }
 0x167   : > { %v3634_v63 = vpop.f32.mrf.mxu0 }
 0x168   : > { %v4920_v43 = vadd.f32 %v2003_v45, %v1826_v24  ;;  %v3674_v26 = vpop.f32.mrf.mxu1 }
 0x169   : > { %v1777_v55 = vpop.f32.mrf.mxu0 }
 0x16a   : > { %v1828_v15 = vadd.f32 %v1777_v55, %v4875_v62  ;;  %v2015_v44 = vpop.f32.mrf.mxu1 }
 0x16b   : > { %v3635_v34 = vpop.f32.mrf.mxu0 }
 0x16c   : > { %v4923_v57 = vadd.f32 %v2015_v44, %v1828_v15  ;;  %v1830_v25 = vadd.f32 %v3635_v34, %v4878_v58  ;;  %v3675_v59 = vpop.f32.mrf.mxu1 }
 0x16d   : > { %v1780_v56 = vpop.f32.mrf.mxu0 }
 0x16e   : > { %v4926_v1 = vadd.f32 %v3675_v59, %v1830_v25  ;;  %v1829_v12 = vadd.f32 %v1780_v56, %v4881_v0  ;;  %v2018_v17 = vpop.f32.mrf.mxu1 }
 0x16f   : > { %v3638_v41 = vpop.f32.mrf.mxu0 }
 0x170   : > { %v4929_v36 = vadd.f32 %v2018_v17, %v1829_v12  ;;  %v1832_v2 = vadd.f32 %v3638_v41, %v4884_v32  ;;  %v3678_v52 = vpop.f32.mrf.mxu1 }
 0x171   : > { %v1792_v62 = vpop.f32.mrf.mxu0 }
 0x172   : > { %v4932_v5 = vadd.f32 %v3678_v52, %v1832_v2  ;;  %v1831_v21 = vadd.f32 %v1792_v62, %v4887_v19  ;;  %v2030_v33 = vpop.f32.mrf.mxu1 }
 0x173   : > { %v3639_v58 = vpop.f32.mrf.mxu0 }
 0x174   : > { %v4935_v4 = vadd.f32 %v2030_v33, %v1831_v21  ;;  %v1833_v3 = vadd.f32 %v3639_v58, %v4890_v20  ;;  %v3679_v16 = vpop.f32.mrf.mxu1 }
 0x175   : > { %v1795_v0 = vpop.f32.mrf.mxu0 }
 0x176   : > { %v4938_v47 = vadd.f32 %v3679_v16, %v1833_v3  ;;  %v2033_v9 = vpop.f32.mrf.mxu1 }
 0x177   : > { %v3642_v29 = vpop.f32.mrf.mxu0 }
 0x178   : > { %v1835_v32 = vadd.f32 %v3642_v29, %v4893_v11  ;;  %v3682_v22 = vpop.f32.mrf.mxu1 }
 0x179   : > { %v1807_v35 = vpop.f32.mrf.mxu0 }
 0x17a   : > { %v4941_v42 = vadd.f32 %v3682_v22, %v1835_v32  ;;  %v2045_v27 = vpop.f32.mrf.mxu1 }
 0x17b   : > { %v3643_v19 = vpop.f32.mrf.mxu0 }
 0x17c   : > { %v3683_v49 = vpop.f32.mrf.mxu1 }
 0x17d   : > { %v1809_v10 = vpop.f32.mrf.mxu0 }
 0x17e   : > { %v1834_v14 = vadd.f32 %v1809_v10, %v4896_v38  ;;  %v2047_v40 = vpop.f32.mrf.mxu1 }
 0x17f   : > { %v3702_v20 = vpop.f32.mrf.mxu0 }
 0x180   : > { %v4944_v46 = vadd.f32 %v2047_v40, %v1834_v14  ;;  %v3742_v31 = vpop.f32.mrf.mxu1 }
 0x181   : > { %v2209_v60 = vpop.f32.mrf.mxu0 }
 0x182   : > { %v2447_v23 = vpop.f32.mrf.mxu1  ;;  %v2296_v10 = vadd.f32 %v2209_v60, %v4899_v39 }
 0x183   : > { %v3703_v6 = vpop.f32.mrf.mxu0 }
 0x184   : > { %v3743_v61 = vpop.f32.mrf.mxu1  ;;  %v2298_v31 = vadd.f32 %v3703_v6, %v4902_v50  ;;  %v2534_v39 = vadd.f32 %v2447_v23, %v2296_v10 }
 0x185   : > { %v2212_v11 = vpop.f32.mrf.mxu0 }
 0x186   : > { %v2450_v28 = vpop.f32.mrf.mxu1 }
 0x187   : > { %v3706_v37 = vpop.f32.mrf.mxu0 }
 0x188   : > { %v3746_v7 = vpop.f32.mrf.mxu1 }
 0x189   : > { %v2224_v54 = vpop.f32.mrf.mxu0 }
 0x18a   : > { %v4946_v48 = vpop.f32.mrf.mxu1 }
 0x18b   : > { %v3707_v53 = vpop.f32.mrf.mxu0 }
 0x18c   : > { %v3747_v24 = vpop.f32.mrf.mxu1  ;;  %v2301_v50 = vadd.f32 %v3707_v53, %v4914_v13 }
 0x18d   : > { %v2227_v45 = vpop.f32.mrf.mxu0 }
 0x18e   : > { %v2465_v38 = vpop.f32.mrf.mxu1  ;;  %v2297_v45 = vadd.f32 %v2212_v11, %v4905_v30  ;;  %v2536_v11 = vadd.f32 %v3743_v61, %v2298_v31 }
 0x18f   : > { %v4948_v63 = vpop.f32.mrf.mxu0 }
 0x190   : > { %v4950_v26 = vpop.f32.mrf.mxu1 }
 0x191   : > { %v2239_v55 = vpop.f32.mrf.mxu0 }
 0x192   : > { %v2477_v15 = vpop.f32.mrf.mxu1  ;;  %v2300_v55 = vadd.f32 %v3706_v37, %v4908_v18  ;;  %v2535_v37 = vadd.f32 %v2450_v28, %v2297_v45  ;;  %v2820_v45 = vld [vmem:[%s4978_s14 + $0x48] sm:$0xff] }
 0x193   : > { %v3711_v44 = vpop.f32.mrf.mxu0 }
 0x194   : > { %v3751_v34 = vpop.f32.mrf.mxu1 }
 0x195   : > { %v4952_v25 = vpop.f32.mrf.mxu0 }
 0x196   : > { %v4954_v59 = vpop.f32.mrf.mxu1 }
 0x197   : > { %v3714_v56 = vpop.f32.mrf.mxu0 }
 0x198   : > { %v3754_v12 = vpop.f32.mrf.mxu1  ;;  %v2538_v56 = vadd.f32 %v3746_v7, %v2300_v55 }
 0x199   : > { %v2253_v17 = vpop.f32.mrf.mxu0 }
 0x19a   : > { %v2491_v41 = vpop.f32.mrf.mxu1  ;;  %v2304_v40 = vadd.f32 %v2253_v17, %v4923_v57  ;;  %v2299_v57 = vadd.f32 %v2224_v54, %v4911_v51  ;;  %v2811_v54 = vld [vmem:[%s4978_s14] sm:$0xff]  ;;  %v2539_v17 = vadd.f32 %v3747_v24, %v2301_v50 }
 0x19b   : > { %v3715_v2 = vpop.f32.mrf.mxu0 }
 0x19c   : > { %v3755_v52 = vpop.f32.mrf.mxu1  ;;  %v2306_v15 = vadd.f32 %v3715_v2, %v4926_v1  ;;  %v2542_v30 = vadd.f32 %v2491_v41, %v2304_v40  ;;  %v4986_v1 = vld [vmem:[%s5082_s7] ss:$0 sm:$0xff]  ;;  %v2537_v12 = vadd.f32 %v4946_v48, %v2299_v57 }
 0x19d   : > { %v2256_v62 = vpop.f32.mrf.mxu0  ;;  %v2819_v2 = vld [vmem:[%s4978_s14 + $0x40] sm:$0xff] }
 0x19e   : > { %v2494_v21 = vpop.f32.mrf.mxu1  ;;  %v2305_v6 = vadd.f32 %v2256_v62, %v4929_v36  ;;  %v2544_v51 = vadd.f32 %v3755_v52, %v2306_v15  ;;  %v2813_v52 = vld [vmem:[%s4978_s14 + $0x10] sm:$0xff]  ;;  %v2815_v57 = vld [vmem:[%s4978_s14 + $0x20] sm:$0xff] }
 0x19f   : > { %v3718_v33 = vpop.f32.mrf.mxu0 }
 0x1a0   : > { %v3758_v58 = vpop.f32.mrf.mxu1  ;;  %v2308_v13 = vadd.f32 %v3718_v33, %v4932_v5  ;;  %v2543_v28 = vadd.f32 %v2494_v21, %v2305_v6  ;;  %v2823_v6 = vld [vmem:[%s4978_s14 + $0x60] sm:$0xff] }
 0x1a1   : > { %v2268_v3 = vpop.f32.mrf.mxu0 }
 0x1a2   : > { %v4956_v16 = vpop.f32.mrf.mxu1  ;;  %v2307_v5 = vadd.f32 %v2268_v3, %v4935_v4  ;;  %v2546_v10 = vadd.f32 %v3758_v58, %v2308_v13  ;;  %v2812_v3 = vld [vmem:[%s4978_s14 + $0x8] sm:$0xff] }
 0x1a3   : > { %v3719_v0 = vpop.f32.mrf.mxu0 }
 0x1a4   : > { %v4958_v9 = vpop.f32.mrf.mxu1  ;;  %v2309_v33 = vadd.f32 %v3719_v0, %v4938_v47  ;;  %v2303_v47 = vadd.f32 %v4948_v63, %v4917_v8  ;;  %v2545_v58 = vadd.f32 %v4956_v16, %v2307_v5  ;;  %v2824_v5 = vld [vmem:[%s4978_s14 + $0x68] sm:$0xff] }
 0x1a5   : > { %v2271_v29 = vpop.f32.mrf.mxu0 }
 0x1a6   : > { %v2509_v32 = vpop.f32.mrf.mxu1  ;;  %v2547_v63 = vadd.f32 %v4958_v9, %v2309_v33 }
 0x1a7   : > { %v4960_v22 = vpop.f32.mrf.mxu0 }
 0x1a8   : > { %v4962_v35 = vpop.f32.mrf.mxu1 }
 0x1a9   : > { %v2283_v27 = vpop.f32.mrf.mxu0 }
 0x1aa   : > { %v2521_v19 = vpop.f32.mrf.mxu1  ;;  %v2821_v27 = vld [vmem:[%s4978_s14 + $0x50] sm:$0xff] }
 0x1ab   : > { %v3723_v49 = vpop.f32.mrf.mxu0 }
 0x1ac   : > { %v3763_v14 = vpop.f32.mrf.mxu1 }
 0x1ad   : > { %v4966_v20 = vpop.f32.mrf.mxu0 }
 0x1ae   : > { %v4970_v38 = vpop.f32.mrf.mxu1 }
 0x1af   : > { %v3782_v44 = vpop.f32.mrf.mxu0 }
 0x1b0   : > { %v3794_v60 = vpop.f32.mrf.mxu1 }
 0x1b1   : > { %v2685_v18 = vpop.f32.mrf.mxu0 }
 0x1b2   : > { %v2772_v34 = vadd.f32 %v2685_v18, %v2534_v39  ;;  %v2729_v23 = vpop.f32.mrf.mxu1 }
 0x1b3   : > { %v2780_v53 = vadd.f32 %v2729_v23, %v2542_v30  ;;  %v3783_v36 = vpop.f32.mrf.mxu0  ;;  %v2814_v23 = vld [vmem:[%s4978_s14 + $0x18] sm:$0xff] }
 0x1b4   : > { %v2795_v41 = vadd.f32 %v4986_v1, %v2772_v34  ;;  %v2774_v61 = vadd.f32 %v3783_v36, %v2536_v11  ;;  %v3795_v62 = vpop.f32.mrf.mxu1  ;;  %v2311_v11 = vadd.f32 %v4960_v22, %v4941_v42 }
 0x1b5   : > { %v2803_v7 = vadd.f32 %v4986_v1, %v2780_v53  ;;  %v2782_v48 = vadd.f32 %v3795_v62, %v2544_v51  ;;  %v2688_v24 = vpop.f32.mrf.mxu0 }
 0x1b6   : > { %v2827_v29 = vadd.f32 %v2811_v54, %v2795_v41  ;;  %v2797_v32 = vadd.f32 %v4986_v1, %v2774_v61  ;;  %v2773_v19 = vadd.f32 %v2688_v24, %v2535_v37  ;;  %v2732_v49 = vpop.f32.mrf.mxu1  ;;  %v2822_v54 = vld [vmem:[%s4978_s14 + $0x58] sm:$0xff]  ;;  %v2541_v61 = vadd.f32 %v4950_v26, %v2303_v47 }
 0x1b7   : > { %v2835_v21 = vadd.f32 %v2819_v2, %v2803_v7  ;;  %v2805_v4 = vadd.f32 %v4986_v1, %v2782_v48  ;;  %v2781_v14 = vadd.f32 %v2732_v49, %v2543_v28  ;;  %v3786_v40 = vpop.f32.mrf.mxu0  ;;  %v2302_v26 = vadd.f32 %v4952_v25, %v4920_v43 }
 0x1b8   : > { %2843 = vst [vmem:[%s4997_s24] sm:$0xff] %v2827_v29  ;;  %v2829_v0 = vadd.f32 %v2813_v52, %v2797_v32  ;;  %v2796_v31 = vadd.f32 %v4986_v1, %v2773_v19  ;;  %v2776_v55 = vadd.f32 %v3786_v40, %v2538_v56  ;;  %v3798_v15 = vpop.f32.mrf.mxu1  ;;  %v2818_v19 = vld [vmem:[%s4978_s14 + $0x38] sm:$0xff] }
 0x1b9   : > { %2851 = vst [vmem:[%s4997_s24 + $0x40] sm:$0xff] %v2835_v21  ;;  %v2837_v44 = vadd.f32 %v2821_v27, %v2805_v4  ;;  %v2804_v39 = vadd.f32 %v4986_v1, %v2781_v14  ;;  %v2784_v50 = vadd.f32 %v3798_v15, %v2546_v10  ;;  %v2700_v8 = vpop.f32.mrf.mxu0  ;;  %v2310_v27 = vadd.f32 %v4966_v20, %v4944_v46  ;;  %v2826_v4 = vld [vmem:[%s4978_s14 + $0x78] sm:$0xff] }
 0x1ba   : > { %2845 = vst [vmem:[%s4997_s24 + $0x10] sm:$0xff] %v2829_v0  ;;  %v2828_v60 = vadd.f32 %v2812_v3, %v2796_v31  ;;  %v2799_v30 = vadd.f32 %v4986_v1, %v2776_v55  ;;  %v2775_v18 = vadd.f32 %v2700_v8, %v2537_v12  ;;  %v2744_v16 = vpop.f32.mrf.mxu1  ;;  %v2816_v12 = vld [vmem:[%s4978_s14 + $0x28] sm:$0xff]  ;;  %v2540_v46 = vadd.f32 %v4954_v59, %v2302_v26  ;;  %v2817_v55 = vld [vmem:[%s4978_s14 + $0x30] sm:$0xff] }
 0x1bb   : > { %2853 = vst [vmem:[%s4997_s24 + $0x50] sm:$0xff] %v2837_v44  ;;  %v2836_v37 = vadd.f32 %v2820_v45, %v2804_v39  ;;  %v2807_v34 = vadd.f32 %v4986_v1, %v2784_v50  ;;  %v2783_v9 = vadd.f32 %v2744_v16, %v2545_v58  ;;  %v3787_v56 = vpop.f32.mrf.mxu0  ;;  %v2548_v40 = vadd.f32 %v4970_v38, %v2310_v27  ;;  %v2825_v44 = vld [vmem:[%s4978_s14 + $0x70] sm:$0xff] }
 0x1bc   : > { %2844 = vst [vmem:[%s4997_s24 + $0x8] sm:$0xff] %v2828_v60  ;;  %v2831_v51 = vadd.f32 %v2815_v57, %v2799_v30  ;;  %v2798_v13 = vadd.f32 %v4986_v1, %v2775_v18  ;;  %v2777_v53 = vadd.f32 %v3787_v56, %v2539_v17  ;;  %v3799_v36 = vpop.f32.mrf.mxu1  ;;  %v2549_v17 = vadd.f32 %v4962_v35, %v2311_v11 }
 0x1bd   : > { %2852 = vst [vmem:[%s4997_s24 + $0x48] sm:$0xff] %v2836_v37  ;;  %v2839_v42 = vadd.f32 %v2823_v6, %v2807_v34  ;;  %v2806_v22 = vadd.f32 %v4986_v1, %v2783_v9  ;;  %v2785_v41 = vadd.f32 %v3799_v36, %v2547_v63  ;;  %v2703_v2 = vpop.f32.mrf.mxu0 }
 0x1be   : > { %2847 = vst [vmem:[%s4997_s24 + $0x20] sm:$0xff] %v2831_v51  ;;  %v2830_v62 = vadd.f32 %v2814_v23, %v2798_v13  ;;  %v2800_v28 = vadd.f32 %v4986_v1, %v2777_v53  ;;  %v2747_v7 = vpop.f32.mrf.mxu1 }
 0x1bf   : > { %2855 = vst [vmem:[%s4997_s24 + $0x60] sm:$0xff] %v2839_v42  ;;  %v2838_v52 = vadd.f32 %v2822_v54, %v2806_v22  ;;  %v2808_v48 = vadd.f32 %v4986_v1, %v2785_v41  ;;  %v3790_v24 = vpop.f32.mrf.mxu0 }
 0x1c0   : > { %2846 = vst [vmem:[%s4997_s24 + $0x18] sm:$0xff] %v2830_v62  ;;  %v2832_v33 = vadd.f32 %v2816_v12, %v2800_v28  ;;  %v2779_v29 = vadd.f32 %v3790_v24, %v2541_v61  ;;  %v3802_v32 = vpop.f32.mrf.mxu1 }
 0x1c1   : > { %2854 = vst [vmem:[%s4997_s24 + $0x58] sm:$0xff] %v2838_v52  ;;  %v2840_v35 = vadd.f32 %v2824_v5, %v2808_v48  ;;  %v2787_v49 = vadd.f32 %v3802_v32, %v2549_v17  ;;  %v2715_v10 = vpop.f32.mrf.mxu0 }
 0x1c2   : > { %2848 = vst [vmem:[%s4997_s24 + $0x28] sm:$0xff] %v2832_v33  ;;  %v2802_v21 = vadd.f32 %v4986_v1, %v2779_v29  ;;  %v2759_v43 = vpop.f32.mrf.mxu1 }
 0x1c3   : > { %2856 = vst [vmem:[%s4997_s24 + $0x68] sm:$0xff] %v2840_v35  ;;  %v2810_v25 = vadd.f32 %v4986_v1, %v2787_v49  ;;  %v3791_v3 = vpop.f32.mrf.mxu0 }
 0x1c4   : > { %v2834_v20 = vadd.f32 %v2818_v19, %v2802_v21  ;;  %v3803_v14 = vpop.f32.mrf.mxu1 }
 0x1c5   : > { %v2842_v47 = vadd.f32 %v2826_v4, %v2810_v25  ;;  %v2717_v0 = vpop.f32.mrf.mxu0 }
 0x1c6   : > { %2850 = vst [vmem:[%s4997_s24 + $0x38] sm:$0xff] %v2834_v20  ;;  %v2778_v31 = vadd.f32 %v2717_v0, %v2540_v46  ;;  %v2761_v45 = vpop.f32.mrf.mxu1 }
 0x1c7   : > { %2858 = vst [vmem:[%s4997_s24 + $0x78] sm:$0xff] %v2842_v47  ;;  %v2786_v15 = vadd.f32 %v2761_v45, %v2548_v40 }
 0x1c8   : > { %v2801_v58 = vadd.f32 %v4986_v1, %v2778_v31 }
 0x1c9   : > { %v2809_v39 = vadd.f32 %v4986_v1, %v2786_v15 }
 0x1ca   : > { %v2833_v59 = vadd.f32 %v2817_v55, %v2801_v58 }
 0x1cb   : > { %v2841_v57 = vadd.f32 %v2825_v44, %v2809_v39 }
 0x1cc   : > { %2849 = vst [vmem:[%s4997_s24 + $0x30] sm:$0xff] %v2833_v59 }
 0x1cd   : > { %2857 = vst [vmem:[%s4997_s24 + $0x70] sm:$0xff] %v2841_v57 }
 0x1ce PF: > { %s18_s9 = sadd.s32 1, %s3971_s9   ;;  %s5128_s27 = smov %s3963_s29 }
 0x1cf   : > { %p15_p11 = scmp.ge.s32.totalorder %s18_s9, 6   ;;  %s5129_s28 = smov %s3967_s30 }
 0x1d0   : > { %s5130_s29 = smov %s5133_s10  ;;  %s5131_s30 = smov %s5137_s11 }
 0x1d1   :  { %17 = sbr.rel (!%p15_p11) target bundleno = 3 (0x3), region = 99 }

</bundles_post_ra>
